<compile_context>
chip_gen: v7x
topology: tpu7x:2x2x1
jax: 0.10.0
libtpu: 0.0.40
codegen_flags: <defaults>
</compile_context>

<pallas_src>
import functools

import numpy as np

import jax
import jax.numpy as jnp
from jax.experimental import pallas as pl
from jax.experimental.pallas import tpu as pltpu

ALPHA = 1.0   # weight on MSE term
BETA = 0.5    # weight on perceptual term

# LPIPS input scaling constants (per RGB channel).
SHIFT = jnp.array([-0.030, -0.088, -0.188], jnp.float32)
SCALE = jnp.array([0.458, 0.448, 0.450], jnp.float32)

CIN_PAD = 8   # pad RGB->8 input channels so every GEMM K is sublane aligned


# --------------------------------- kernel ----------------------------------- #

def _fused_loss_kernel(x1_ref, w1_ref, b1_ref, lin1_ref, selp_ref,
                       w2_ref, b2_ref, lin2_ref, m1w_ref, m2w_ref, sc2_ref,
                       loss_ref, f1s_ref, p2s_ref, *,
                       n_samples, h, w, cin_pad, c1, c2,
                       alpha, beta, mse_count):
    hp, wp = h + 2, w + 2                 # padded stage-1 image grid
    sp1 = hp * wp                         # flat padded pixels per image (stage 1)
    half1 = n_samples * sp1               # columns of the "out" half (== "tgt" half)
    mpad1 = 2 * half1
    g1 = wp + 1                           # guard width (max |tap shift|)

    ho, wo = h // 2, w // 2               # pooled spatial dims
    hpo, wpo = ho + 2, wo + 2
    sp2 = hpo * wpo
    half2 = n_samples * sp2
    mpad2 = 2 * half2
    g2 = wpo + 1

    # ---- stage-1 3x3 'same' conv: 9 shifted-slice GEMMs + bias + ReLU --------
    acc1 = None
    for ka in range(3):
        for kb in range(3):
            s = (ka - 1) * wp + (kb - 1)
            tap = ka * 3 + kb
            slab = x1_ref[:, g1 + s: g1 + s + mpad1]                 # (cin_pad, mpad1)
            wt = w1_ref[:, tap * cin_pad:(tap + 1) * cin_pad]        # (c1, cin_pad)
            part = jnp.dot(wt, slab, preferred_element_type=jnp.float32)
            acc1 = part if acc1 is None else acc1 + part
    f1 = jnp.maximum(acc1 + b1_ref[...], 0.0)                        # (c1, mpad1)

    # ---- 2x2 maxpool: max over shifts {0, 1, wp, wp+1} of a guarded scratch --
    # Zero-init first: guard columns feed the selection GEMM below with weight 0
    # and stale VMEM NaN/Inf would otherwise poison it (NaN * 0 == NaN).
    f1s_ref[...] = jnp.zeros_like(f1s_ref)
    f1s_ref[:, :mpad1] = f1
    mx = jnp.maximum(
        jnp.maximum(f1, f1s_ref[:, 1:1 + mpad1]),
        jnp.maximum(f1s_ref[:, wp:wp + mpad1], f1s_ref[:, wp + 1:wp + 1 + mpad1]))

    # ---- stride-2 downsample + re-pad (interior of a 10x10 grid) per image ---
    # One (c1, sp1) x (sp1, sp2) selection GEMM per image replaces strided loads;
    # the selection matrix also writes the stage-2 zero-padding ring.
    p2s_ref[...] = jnp.zeros_like(p2s_ref)          # guards + cross-image safety
    selp = selp_ref[...]
    for img in range(2 * n_samples):
        blk = mx[:, img * sp1:(img + 1) * sp1]                       # (c1, sp1)
        p2s_ref[:, g2 + img * sp2: g2 + (img + 1) * sp2] = jnp.dot(
            blk, selp, preferred_element_type=jnp.float32)

    # ---- stage-2 3x3 'same' conv on pooled features ---------------------------
    acc2 = None
    for ka in range(3):
        for kb in range(3):
            s = (ka - 1) * wpo + (kb - 1)
            tap = ka * 3 + kb
            slab = p2s_ref[:, g2 + s: g2 + s + mpad2]                # (c1, mpad2)
            wt = w2_ref[:, tap * c1:(tap + 1) * c1]                  # (c2, c1)
            part = jnp.dot(wt, slab, preferred_element_type=jnp.float32)
            acc2 = part if acc2 is None else acc2 + part
    f2 = jnp.maximum(acc2 + b2_ref[...], 0.0)                        # (c2, mpad2)

    # ---- LPIPS stage distance: channel-unit norm -> weighted sq diff ---------
    #      -> masked spatial mean (mask carries validity * 1/hw), summed over
    #      samples (all samples share hw so the sum collapses to one reduce).
    def stage_dist(f, lin, half, maskw):
        fo, ft = f[:, :half], f[:, half:]
        eps = 1e-10
        inv_o = pl.reciprocal(
            jnp.sqrt(jnp.sum(fo * fo, axis=0, keepdims=True)) + eps, approx=True)
        inv_t = pl.reciprocal(
            jnp.sqrt(jnp.sum(ft * ft, axis=0, keepdims=True)) + eps, approx=True)
        d = fo * inv_o - ft * inv_t
        ch = jnp.sum(d * d * lin, axis=0, keepdims=True)             # (1, half)
        return jnp.sum(ch * maskw)

    d_sum = (stage_dist(f1, lin1_ref[...], half1, m1w_ref[...])
             + stage_dist(f2, lin2_ref[...], half2, m2w_ref[...]))

    # ---- MSE from the centre columns of the scaled input ---------------------
    # (xo_s - xt_s) * SCALE[c] == xo - xt, and the padded columns diff to 0.
    xd = x1_ref[:, g1:g1 + half1] - x1_ref[:, g1 + half1:g1 + mpad1]
    mse = jnp.sum(xd * xd * sc2_ref[...]) / mse_count

    loss = alpha * mse + (beta / n_samples) * d_sum
    loss_ref[...] = jnp.zeros((1, 128), jnp.float32) + loss          # lane-dense row


# --------------------------- model (VGG-lite LPIPS) ------------------------- #

def init_params(key):
    k1, k2, k3, k4 = jax.random.split(key, 4)
    return {
        "w1": jax.random.normal(k1, (9 * 3, 8), jnp.float32) * 0.1,    # conv1: 3 -> 8
        "b1": jnp.zeros((1, 8), jnp.float32),
        "w2": jax.random.normal(k2, (9 * 8, 16), jnp.float32) * 0.1,   # conv2: 8 -> 16
        "b2": jnp.zeros((1, 16), jnp.float32),
        "lin1": jnp.abs(jax.random.normal(k3, (1, 8), jnp.float32)) * 0.1,
        "lin2": jnp.abs(jax.random.normal(k4, (1, 16), jnp.float32)) * 0.1,
    }


# --------------------------------- public API -------------------------------- #

def custom_loss(output, target, params, alpha=ALPHA, beta=BETA):
    """Matches CustomLoss.forward: alpha*MSE + beta * (sum_i lpips(out[i], tgt[i])) / N."""
    n, cin, h, w = output.shape
    assert cin <= CIN_PAD and h % 2 == 0 and w % 2 == 0
    cin_pad = CIN_PAD
    c1 = params["w1"].shape[1]
    c2 = params["w2"].shape[1]

    hp, wp = h + 2, w + 2
    sp1 = hp * wp
    half1 = n * sp1
    mpad1 = 2 * half1
    g1 = wp + 1

    ho, wo = h // 2, w // 2
    hpo, wpo = ho + 2, wo + 2
    sp2 = hpo * wpo
    half2 = n * sp2
    mpad2 = 2 * half2
    g2 = wpo + 1

    # ---- input: shift/scale, stack out+tgt, channel-major, spatial pad, guards
    x = jnp.concatenate([output, target], axis=0).astype(jnp.float32)   # (2N,3,H,W)
    x = (x - SHIFT.reshape(1, cin, 1, 1)) / SCALE.reshape(1, cin, 1, 1)
    x = jnp.transpose(x, (1, 0, 2, 3))                                   # (3,2N,H,W)
    x = jnp.pad(x, ((0, cin_pad - cin), (0, 0), (1, 1), (1, 1)))         # (8,2N,H+2,W+2)
    x1 = jnp.pad(x.reshape(cin_pad, mpad1), ((0, 0), (g1, g1)))          # (8, mpad1+2*g1)

    # ---- weights reorganized for the transposed channel-major GEMMs ----------
    w1 = params["w1"].reshape(9, cin, c1)
    w1 = jnp.pad(w1, ((0, 0), (0, cin_pad - cin), (0, 0))).reshape(9 * cin_pad, c1)
    w1k = w1.T.astype(jnp.float32)                                       # (c1, 9*cin_pad)
    b1k = params["b1"].T.astype(jnp.float32)                             # (c1, 1)
    lin1k = params["lin1"].T.astype(jnp.float32)                         # (c1, 1)
    w2k = params["w2"].T.astype(jnp.float32)                             # (c2, 9*c1)
    b2k = params["b2"].T.astype(jnp.float32)                             # (c2, 1)
    lin2k = params["lin2"].T.astype(jnp.float32)                         # (c2, 1)
    sc2 = jnp.pad((SCALE ** 2).reshape(cin, 1), ((0, cin_pad - cin), (0, 0)))

    # ---- compile-time constants: pool-selection matrix and validity masks ----
    selp_np = np.zeros((sp1, sp2), np.float32)
    yo, xo = np.meshgrid(np.arange(ho), np.arange(wo), indexing="ij")
    src = (2 * yo + 1) * wp + (2 * xo + 1)        # anchor of each 2x2 max
    dst = (yo + 1) * wpo + (xo + 1)               # interior of the padded pooled grid
    selp_np[src.ravel(), dst.ravel()] = 1.0
    selp = jnp.asarray(selp_np)

    m_img1 = np.zeros((hp, wp), np.float32)
    m_img1[1:1 + h, 1:1 + w] = 1.0 / (h * w)
    m1w = jnp.asarray(np.tile(m_img1.reshape(1, sp1), (1, n)))           # (1, half1)
    m_img2 = np.zeros((hpo, wpo), np.float32)
    m_img2[1:1 + ho, 1:1 + wo] = 1.0 / (ho * wo)
    m2w = jnp.asarray(np.tile(m_img2.reshape(1, sp2), (1, n)))           # (1, half2)

    inputs = (x1, w1k, b1k, lin1k, selp, w2k, b2k, lin2k, m1w, m2w, sc2)

    flops = 2 * (9 * cin_pad * c1 * mpad1 + 2 * n * c1 * sp1 * sp2 + 9 * c1 * c2 * mpad2)
    bytes_accessed = 4 * (sum(int(np.prod(a.shape)) for a in inputs) + 128)
    transcendentals = 2 * (half1 + half2)

    stats = pl.pallas_call(
        functools.partial(_fused_loss_kernel, n_samples=n, h=h, w=w,
                          cin_pad=cin_pad, c1=c1, c2=c2,
                          alpha=float(alpha), beta=float(beta),
                          mse_count=float(output.size)),
        out_shape=jax.ShapeDtypeStruct((1, 128), jnp.float32),
        grid=(1,),
        in_specs=[pl.BlockSpec(a.shape, lambda i: (0, 0)) for a in inputs],
        out_specs=pl.BlockSpec((1, 128), lambda i: (0, 0)),
        scratch_shapes=[
            pltpu.VMEM((c1, mpad1 + wp + 1), jnp.float32),   # guarded f1 (maxpool shifts)
            pltpu.VMEM((c1, mpad2 + 2 * g2), jnp.float32),   # guarded pooled features
        ],
        compiler_params=pltpu.CompilerParams(dimension_semantics=("arbitrary",)),
        cost_estimate=pl.CostEstimate(flops=int(flops),
                                      transcendentals=int(transcendentals),
                                      bytes_accessed=int(bytes_accessed)),
    )(*inputs)

    return stats[0, 0]


if __name__ == "__main__":
    key = jax.random.PRNGKey(0)
    kp, ko, kt = jax.random.split(key, 3)
    params = init_params(kp)
    output = jax.random.uniform(ko, (2, 3, 16, 16), dtype=jnp.float32)
    target = jax.random.uniform(kt, (2, 3, 16, 16), dtype=jnp.float32)
    loss_fn = jax.jit(custom_loss)
    loss = loss_fn(output, target, params)
    jax.block_until_ready(loss)
    assert loss.shape == () and jnp.isfinite(loss)
    print("KERNEL_OK")
</pallas_src>

<mosaic_0001>
module attributes {stable_mosaic.version = 11 : i64} {
  func.func @_fused_loss_kernel(%arg0: i32, %arg1: memref<8x1334xf32, #tpu.memory_space<vmem>>, %arg2: memref<8x72xf32, #tpu.memory_space<vmem>>, %arg3: memref<8x1xf32, #tpu.memory_space<vmem>>, %arg4: memref<8x1xf32, #tpu.memory_space<vmem>>, %arg5: memref<324x100xf32, #tpu.memory_space<vmem>>, %arg6: memref<16x72xf32, #tpu.memory_space<vmem>>, %arg7: memref<16x1xf32, #tpu.memory_space<vmem>>, %arg8: memref<16x1xf32, #tpu.memory_space<vmem>>, %arg9: memref<1x648xf32, #tpu.memory_space<vmem>>, %arg10: memref<1x200xf32, #tpu.memory_space<vmem>>, %arg11: memref<8x1xf32, #tpu.memory_space<vmem>>, %arg12: memref<1x128xf32, #tpu.memory_space<vmem>>, %arg13: memref<8x1315xf32, #tpu.memory_space<vmem>>, %arg14: memref<8x422xf32, #tpu.memory_space<vmem>>) attributes {dimension_semantics = [#tpu.dimension_semantics<arbitrary>], iteration_bounds = array<i64: 1>, scalar_prefetch = 0 : i64, scratch_operands = 2 : i64, tpu.core_type = #tpu.core_type<tc>, window_params = [{pipeline_mode = #tpu.pipeline_mode<synchronous>, transform_indices = @transform_0, window_bounds = array<i64: 8, 1334>}, {pipeline_mode = #tpu.pipeline_mode<synchronous>, transform_indices = @transform_1, window_bounds = array<i64: 8, 72>}, {pipeline_mode = #tpu.pipeline_mode<synchronous>, transform_indices = @transform_2, window_bounds = array<i64: 8, 1>}, {pipeline_mode = #tpu.pipeline_mode<synchronous>, transform_indices = @transform_3, window_bounds = array<i64: 8, 1>}, {pipeline_mode = #tpu.pipeline_mode<synchronous>, transform_indices = @transform_4, window_bounds = array<i64: 324, 100>}, {pipeline_mode = #tpu.pipeline_mode<synchronous>, transform_indices = @transform_5, window_bounds = array<i64: 16, 72>}, {pipeline_mode = #tpu.pipeline_mode<synchronous>, transform_indices = @transform_6, window_bounds = array<i64: 16, 1>}, {pipeline_mode = #tpu.pipeline_mode<synchronous>, transform_indices = @transform_7, window_bounds = array<i64: 16, 1>}, {pipeline_mode = #tpu.pipeline_mode<synchronous>, transform_indices = @transform_8, window_bounds = array<i64: 1, 648>}, {pipeline_mode = #tpu.pipeline_mode<synchronous>, transform_indices = @transform_9, window_bounds = array<i64: 1, 200>}, {pipeline_mode = #tpu.pipeline_mode<synchronous>, transform_indices = @transform_10, window_bounds = array<i64: 8, 1>}, {pipeline_mode = #tpu.pipeline_mode<synchronous>, transform_indices = @transform_11, window_bounds = array<i64: 1, 128>}]} {
    %c0 = arith.constant 0 : index
    %c0_0 = arith.constant 0 : index
    %0 = vector.load %arg1[%c0, %c0_0] : memref<8x1334xf32, #tpu.memory_space<vmem>>, vector<8x1296xf32>
    %c0_1 = arith.constant 0 : index
    %c0_2 = arith.constant 0 : index
    %1 = vector.load %arg2[%c0_1, %c0_2] : memref<8x72xf32, #tpu.memory_space<vmem>>, vector<8x8xf32>
    %cst = arith.constant dense<0.000000e+00> : vector<8x1296xf32>
    %2 = tpu.matmul %1, %0, %cst {dimension_numbers = #tpu.dot_dimension_numbers<[1], [0], [0], [1], [0, 0, 1, 1], [], []>} : vector<8x8xf32>, vector<8x1296xf32>, vector<8x1296xf32> -> vector<8x1296xf32>
    %c0_3 = arith.constant 0 : index
    %c1 = arith.constant 1 : index
    %3 = vector.load %arg1[%c0_3, %c1] : memref<8x1334xf32, #tpu.memory_space<vmem>>, vector<8x1296xf32>
    %c0_4 = arith.constant 0 : index
    %c8 = arith.constant 8 : index
    %4 = vector.load %arg2[%c0_4, %c8] : memref<8x72xf32, #tpu.memory_space<vmem>>, vector<8x8xf32>
    %cst_5 = arith.constant dense<0.000000e+00> : vector<8x1296xf32>
    %5 = tpu.matmul %4, %3, %cst_5 {dimension_numbers = #tpu.dot_dimension_numbers<[1], [0], [0], [1], [0, 0, 1, 1], [], []>} : vector<8x8xf32>, vector<8x1296xf32>, vector<8x1296xf32> -> vector<8x1296xf32>
    %6 = arith.addf %2, %5 : vector<8x1296xf32>
    %c0_6 = arith.constant 0 : index
    %c2 = arith.constant 2 : index
    %7 = vector.load %arg1[%c0_6, %c2] : memref<8x1334xf32, #tpu.memory_space<vmem>>, vector<8x1296xf32>
    %c0_7 = arith.constant 0 : index
    %c16 = arith.constant 16 : index
    %8 = vector.load %arg2[%c0_7, %c16] : memref<8x72xf32, #tpu.memory_space<vmem>>, vector<8x8xf32>
    %cst_8 = arith.constant dense<0.000000e+00> : vector<8x1296xf32>
    %9 = tpu.matmul %8, %7, %cst_8 {dimension_numbers = #tpu.dot_dimension_numbers<[1], [0], [0], [1], [0, 0, 1, 1], [], []>} : vector<8x8xf32>, vector<8x1296xf32>, vector<8x1296xf32> -> vector<8x1296xf32>
    %10 = arith.addf %6, %9 : vector<8x1296xf32>
    %c0_9 = arith.constant 0 : index
    %c18 = arith.constant 18 : index
    %11 = vector.load %arg1[%c0_9, %c18] : memref<8x1334xf32, #tpu.memory_space<vmem>>, vector<8x1296xf32>
    %c0_10 = arith.constant 0 : index
    %c24 = arith.constant 24 : index
    %12 = vector.load %arg2[%c0_10, %c24] : memref<8x72xf32, #tpu.memory_space<vmem>>, vector<8x8xf32>
    %cst_11 = arith.constant dense<0.000000e+00> : vector<8x1296xf32>
    %13 = tpu.matmul %12, %11, %cst_11 {dimension_numbers = #tpu.dot_dimension_numbers<[1], [0], [0], [1], [0, 0, 1, 1], [], []>} : vector<8x8xf32>, vector<8x1296xf32>, vector<8x1296xf32> -> vector<8x1296xf32>
    %14 = arith.addf %10, %13 : vector<8x1296xf32>
    %c0_12 = arith.constant 0 : index
    %c19 = arith.constant 19 : index
    %15 = vector.load %arg1[%c0_12, %c19] : memref<8x1334xf32, #tpu.memory_space<vmem>>, vector<8x1296xf32>
    %c0_13 = arith.constant 0 : index
    %c32 = arith.constant 32 : index
    %16 = vector.load %arg2[%c0_13, %c32] : memref<8x72xf32, #tpu.memory_space<vmem>>, vector<8x8xf32>
    %cst_14 = arith.constant dense<0.000000e+00> : vector<8x1296xf32>
    %17 = tpu.matmul %16, %15, %cst_14 {dimension_numbers = #tpu.dot_dimension_numbers<[1], [0], [0], [1], [0, 0, 1, 1], [], []>} : vector<8x8xf32>, vector<8x1296xf32>, vector<8x1296xf32> -> vector<8x1296xf32>
    %18 = arith.addf %14, %17 : vector<8x1296xf32>
    %c0_15 = arith.constant 0 : index
    %c20 = arith.constant 20 : index
    %19 = vector.load %arg1[%c0_15, %c20] : memref<8x1334xf32, #tpu.memory_space<vmem>>, vector<8x1296xf32>
    %c0_16 = arith.constant 0 : index
    %c40 = arith.constant 40 : index
    %20 = vector.load %arg2[%c0_16, %c40] : memref<8x72xf32, #tpu.memory_space<vmem>>, vector<8x8xf32>
    %cst_17 = arith.constant dense<0.000000e+00> : vector<8x1296xf32>
    %21 = tpu.matmul %20, %19, %cst_17 {dimension_numbers = #tpu.dot_dimension_numbers<[1], [0], [0], [1], [0, 0, 1, 1], [], []>} : vector<8x8xf32>, vector<8x1296xf32>, vector<8x1296xf32> -> vector<8x1296xf32>
    %22 = arith.addf %18, %21 : vector<8x1296xf32>
    %c0_18 = arith.constant 0 : index
    %c36 = arith.constant 36 : index
    %23 = vector.load %arg1[%c0_18, %c36] : memref<8x1334xf32, #tpu.memory_space<vmem>>, vector<8x1296xf32>
    %c0_19 = arith.constant 0 : index
    %c48 = arith.constant 48 : index
    %24 = vector.load %arg2[%c0_19, %c48] : memref<8x72xf32, #tpu.memory_space<vmem>>, vector<8x8xf32>
    %cst_20 = arith.constant dense<0.000000e+00> : vector<8x1296xf32>
    %25 = tpu.matmul %24, %23, %cst_20 {dimension_numbers = #tpu.dot_dimension_numbers<[1], [0], [0], [1], [0, 0, 1, 1], [], []>} : vector<8x8xf32>, vector<8x1296xf32>, vector<8x1296xf32> -> vector<8x1296xf32>
    %26 = arith.addf %22, %25 : vector<8x1296xf32>
    %c0_21 = arith.constant 0 : index
    %c37 = arith.constant 37 : index
    %27 = vector.load %arg1[%c0_21, %c37] : memref<8x1334xf32, #tpu.memory_space<vmem>>, vector<8x1296xf32>
    %c0_22 = arith.constant 0 : index
    %c56 = arith.constant 56 : index
    %28 = vector.load %arg2[%c0_22, %c56] : memref<8x72xf32, #tpu.memory_space<vmem>>, vector<8x8xf32>
    %cst_23 = arith.constant dense<0.000000e+00> : vector<8x1296xf32>
    %29 = tpu.matmul %28, %27, %cst_23 {dimension_numbers = #tpu.dot_dimension_numbers<[1], [0], [0], [1], [0, 0, 1, 1], [], []>} : vector<8x8xf32>, vector<8x1296xf32>, vector<8x1296xf32> -> vector<8x1296xf32>
    %30 = arith.addf %26, %29 : vector<8x1296xf32>
    %c0_24 = arith.constant 0 : index
    %c38 = arith.constant 38 : index
    %31 = vector.load %arg1[%c0_24, %c38] : memref<8x1334xf32, #tpu.memory_space<vmem>>, vector<8x1296xf32>
    %c0_25 = arith.constant 0 : index
    %c64 = arith.constant 64 : index
    %32 = vector.load %arg2[%c0_25, %c64] : memref<8x72xf32, #tpu.memory_space<vmem>>, vector<8x8xf32>
    %cst_26 = arith.constant dense<0.000000e+00> : vector<8x1296xf32>
    %33 = tpu.matmul %32, %31, %cst_26 {dimension_numbers = #tpu.dot_dimension_numbers<[1], [0], [0], [1], [0, 0, 1, 1], [], []>} : vector<8x8xf32>, vector<8x1296xf32>, vector<8x1296xf32> -> vector<8x1296xf32>
    %34 = arith.addf %30, %33 : vector<8x1296xf32>
    %c0_27 = arith.constant 0 : index
    %c0_28 = arith.constant 0 : index
    %35 = vector.load %arg3[%c0_27, %c0_28] : memref<8x1xf32, #tpu.memory_space<vmem>>, vector<8x1xf32>
    %36 = vector.broadcast %35 : vector<8x1xf32> to vector<8x1296xf32>
    %37 = arith.addf %34, %36 : vector<8x1296xf32>
    %cst_29 = arith.constant 0.000000e+00 : f32
    %38 = vector.broadcast %cst_29 : f32 to vector<8x1296xf32>
    %39 = arith.maximumf %37, %38 : vector<8x1296xf32>
    %cst_30 = arith.constant 0.000000e+00 : f32
    %40 = vector.broadcast %cst_30 : f32 to vector<8x1315xf32>
    %c0_31 = arith.constant 0 : index
    %c0_32 = arith.constant 0 : index
    %41 = vector.load %arg13[%c0_31, %c0_32] : memref<8x1315xf32, #tpu.memory_space<vmem>>, vector<8x1315xf32>
    tpu.vector_store %arg13[%c0_31, %c0_32], %40 {strides = array<i32>} : memref<8x1315xf32, #tpu.memory_space<vmem>>, vector<8x1315xf32>,
    %c0_33 = arith.constant 0 : index
    %c0_34 = arith.constant 0 : index
    %42 = vector.load %arg13[%c0_33, %c0_34] : memref<8x1315xf32, #tpu.memory_space<vmem>>, vector<8x1296xf32>
    tpu.vector_store %arg13[%c0_33, %c0_34], %39 {strides = array<i32>} : memref<8x1315xf32, #tpu.memory_space<vmem>>, vector<8x1296xf32>,
    %c0_35 = arith.constant 0 : index
    %c1_36 = arith.constant 1 : index
    %43 = vector.load %arg13[%c0_35, %c1_36] : memref<8x1315xf32, #tpu.memory_space<vmem>>, vector<8x1296xf32>
    %44 = arith.maximumf %39, %43 : vector<8x1296xf32>
    %c0_37 = arith.constant 0 : index
    %c18_38 = arith.constant 18 : index
    %45 = vector.load %arg13[%c0_37, %c18_38] : memref<8x1315xf32, #tpu.memory_space<vmem>>, vector<8x1296xf32>
    %c0_39 = arith.constant 0 : index
    %c19_40 = arith.constant 19 : index
    %46 = vector.load %arg13[%c0_39, %c19_40] : memref<8x1315xf32, #tpu.memory_space<vmem>>, vector<8x1296xf32>
    %47 = arith.maximumf %45, %46 : vector<8x1296xf32>
    %48 = arith.maximumf %44, %47 : vector<8x1296xf32>
    %cst_41 = arith.constant 0.000000e+00 : f32
    %49 = vector.broadcast %cst_41 : f32 to vector<8x422xf32>
    %c0_42 = arith.constant 0 : index
    %c0_43 = arith.constant 0 : index
    %50 = vector.load %arg14[%c0_42, %c0_43] : memref<8x422xf32, #tpu.memory_space<vmem>>, vector<8x422xf32>
    tpu.vector_store %arg14[%c0_42, %c0_43], %49 {strides = array<i32>} : memref<8x422xf32, #tpu.memory_space<vmem>>, vector<8x422xf32>,
    %c0_44 = arith.constant 0 : index
    %c0_45 = arith.constant 0 : index
    %51 = vector.load %arg5[%c0_44, %c0_45] : memref<324x100xf32, #tpu.memory_space<vmem>>, vector<324x100xf32>
    %52 = vector.extract_strided_slice %48 {offsets = [0, 0], sizes = [8, 324], strides = [1, 1]} : vector<8x1296xf32> to vector<8x324xf32>
    %cst_46 = arith.constant dense<0.000000e+00> : vector<8x100xf32>
    %53 = tpu.matmul %52, %51, %cst_46 {dimension_numbers = #tpu.dot_dimension_numbers<[1], [0], [0], [1], [0, 0, 1, 1], [], []>} : vector<8x324xf32>, vector<324x100xf32>, vector<8x100xf32> -> vector<8x100xf32>
    %c0_47 = arith.constant 0 : index
    %c11 = arith.constant 11 : index
    %54 = vector.load %arg14[%c0_47, %c11] : memref<8x422xf32, #tpu.memory_space<vmem>>, vector<8x100xf32>
    tpu.vector_store %arg14[%c0_47, %c11], %53 {strides = array<i32>} : memref<8x422xf32, #tpu.memory_space<vmem>>, vector<8x100xf32>,
    %55 = vector.extract_strided_slice %48 {offsets = [0, 324], sizes = [8, 324], strides = [1, 1]} : vector<8x1296xf32> to vector<8x324xf32>
    %cst_48 = arith.constant dense<0.000000e+00> : vector<8x100xf32>
    %56 = tpu.matmul %55, %51, %cst_48 {dimension_numbers = #tpu.dot_dimension_numbers<[1], [0], [0], [1], [0, 0, 1, 1], [], []>} : vector<8x324xf32>, vector<324x100xf32>, vector<8x100xf32> -> vector<8x100xf32>
    %c0_49 = arith.constant 0 : index
    %c111 = arith.constant 111 : index
    %57 = vector.load %arg14[%c0_49, %c111] : memref<8x422xf32, #tpu.memory_space<vmem>>, vector<8x100xf32>
    tpu.vector_store %arg14[%c0_49, %c111], %56 {strides = array<i32>} : memref<8x422xf32, #tpu.memory_space<vmem>>, vector<8x100xf32>,
    %58 = vector.extract_strided_slice %48 {offsets = [0, 648], sizes = [8, 324], strides = [1, 1]} : vector<8x1296xf32> to vector<8x324xf32>
    %cst_50 = arith.constant dense<0.000000e+00> : vector<8x100xf32>
    %59 = tpu.matmul %58, %51, %cst_50 {dimension_numbers = #tpu.dot_dimension_numbers<[1], [0], [0], [1], [0, 0, 1, 1], [], []>} : vector<8x324xf32>, vector<324x100xf32>, vector<8x100xf32> -> vector<8x100xf32>
    %c0_51 = arith.constant 0 : index
    %c211 = arith.constant 211 : index
    %60 = vector.load %arg14[%c0_51, %c211] : memref<8x422xf32, #tpu.memory_space<vmem>>, vector<8x100xf32>
    tpu.vector_store %arg14[%c0_51, %c211], %59 {strides = array<i32>} : memref<8x422xf32, #tpu.memory_space<vmem>>, vector<8x100xf32>,
    %61 = vector.extract_strided_slice %48 {offsets = [0, 972], sizes = [8, 324], strides = [1, 1]} : vector<8x1296xf32> to vector<8x324xf32>
    %cst_52 = arith.constant dense<0.000000e+00> : vector<8x100xf32>
    %62 = tpu.matmul %61, %51, %cst_52 {dimension_numbers = #tpu.dot_dimension_numbers<[1], [0], [0], [1], [0, 0, 1, 1], [], []>} : vector<8x324xf32>, vector<324x100xf32>, vector<8x100xf32> -> vector<8x100xf32>
    %c0_53 = arith.constant 0 : index
    %c311 = arith.constant 311 : index
    %63 = vector.load %arg14[%c0_53, %c311] : memref<8x422xf32, #tpu.memory_space<vmem>>, vector<8x100xf32>
    tpu.vector_store %arg14[%c0_53, %c311], %62 {strides = array<i32>} : memref<8x422xf32, #tpu.memory_space<vmem>>, vector<8x100xf32>,
    %c0_54 = arith.constant 0 : index
    %c0_55 = arith.constant 0 : index
    %64 = vector.load %arg14[%c0_54, %c0_55] : memref<8x422xf32, #tpu.memory_space<vmem>>, vector<8x400xf32>
    %c0_56 = arith.constant 0 : index
    %c0_57 = arith.constant 0 : index
    %65 = vector.load %arg6[%c0_56, %c0_57] : memref<16x72xf32, #tpu.memory_space<vmem>>, vector<16x8xf32>
    %cst_58 = arith.constant dense<0.000000e+00> : vector<16x400xf32>
    %66 = tpu.matmul %65, %64, %cst_58 {dimension_numbers = #tpu.dot_dimension_numbers<[1], [0], [0], [1], [0, 0, 1, 1], [], []>} : vector<16x8xf32>, vector<8x400xf32>, vector<16x400xf32> -> vector<16x400xf32>
    %c0_59 = arith.constant 0 : index
    %c1_60 = arith.constant 1 : index
    %67 = vector.load %arg14[%c0_59, %c1_60] : memref<8x422xf32, #tpu.memory_space<vmem>>, vector<8x400xf32>
    %c0_61 = arith.constant 0 : index
    %c8_62 = arith.constant 8 : index
    %68 = vector.load %arg6[%c0_61, %c8_62] : memref<16x72xf32, #tpu.memory_space<vmem>>, vector<16x8xf32>
    %cst_63 = arith.constant dense<0.000000e+00> : vector<16x400xf32>
    %69 = tpu.matmul %68, %67, %cst_63 {dimension_numbers = #tpu.dot_dimension_numbers<[1], [0], [0], [1], [0, 0, 1, 1], [], []>} : vector<16x8xf32>, vector<8x400xf32>, vector<16x400xf32> -> vector<16x400xf32>
    %70 = arith.addf %66, %69 : vector<16x400xf32>
    %c0_64 = arith.constant 0 : index
    %c2_65 = arith.constant 2 : index
    %71 = vector.load %arg14[%c0_64, %c2_65] : memref<8x422xf32, #tpu.memory_space<vmem>>, vector<8x400xf32>
    %c0_66 = arith.constant 0 : index
    %c16_67 = arith.constant 16 : index
    %72 = vector.load %arg6[%c0_66, %c16_67] : memref<16x72xf32, #tpu.memory_space<vmem>>, vector<16x8xf32>
    %cst_68 = arith.constant dense<0.000000e+00> : vector<16x400xf32>
    %73 = tpu.matmul %72, %71, %cst_68 {dimension_numbers = #tpu.dot_dimension_numbers<[1], [0], [0], [1], [0, 0, 1, 1], [], []>} : vector<16x8xf32>, vector<8x400xf32>, vector<16x400xf32> -> vector<16x400xf32>
    %74 = arith.addf %70, %73 : vector<16x400xf32>
    %c0_69 = arith.constant 0 : index
    %c10 = arith.constant 10 : index
    %75 = vector.load %arg14[%c0_69, %c10] : memref<8x422xf32, #tpu.memory_space<vmem>>, vector<8x400xf32>
    %c0_70 = arith.constant 0 : index
    %c24_71 = arith.constant 24 : index
    %76 = vector.load %arg6[%c0_70, %c24_71] : memref<16x72xf32, #tpu.memory_space<vmem>>, vector<16x8xf32>
    %cst_72 = arith.constant dense<0.000000e+00> : vector<16x400xf32>
    %77 = tpu.matmul %76, %75, %cst_72 {dimension_numbers = #tpu.dot_dimension_numbers<[1], [0], [0], [1], [0, 0, 1, 1], [], []>} : vector<16x8xf32>, vector<8x400xf32>, vector<16x400xf32> -> vector<16x400xf32>
    %78 = arith.addf %74, %77 : vector<16x400xf32>
    %c0_73 = arith.constant 0 : index
    %c11_74 = arith.constant 11 : index
    %79 = vector.load %arg14[%c0_73, %c11_74] : memref<8x422xf32, #tpu.memory_space<vmem>>, vector<8x400xf32>
    %c0_75 = arith.constant 0 : index
    %c32_76 = arith.constant 32 : index
    %80 = vector.load %arg6[%c0_75, %c32_76] : memref<16x72xf32, #tpu.memory_space<vmem>>, vector<16x8xf32>
    %cst_77 = arith.constant dense<0.000000e+00> : vector<16x400xf32>
    %81 = tpu.matmul %80, %79, %cst_77 {dimension_numbers = #tpu.dot_dimension_numbers<[1], [0], [0], [1], [0, 0, 1, 1], [], []>} : vector<16x8xf32>, vector<8x400xf32>, vector<16x400xf32> -> vector<16x400xf32>
    %82 = arith.addf %78, %81 : vector<16x400xf32>
    %c0_78 = arith.constant 0 : index
    %c12 = arith.constant 12 : index
    %83 = vector.load %arg14[%c0_78, %c12] : memref<8x422xf32, #tpu.memory_space<vmem>>, vector<8x400xf32>
    %c0_79 = arith.constant 0 : index
    %c40_80 = arith.constant 40 : index
    %84 = vector.load %arg6[%c0_79, %c40_80] : memref<16x72xf32, #tpu.memory_space<vmem>>, vector<16x8xf32>
    %cst_81 = arith.constant dense<0.000000e+00> : vector<16x400xf32>
    %85 = tpu.matmul %84, %83, %cst_81 {dimension_numbers = #tpu.dot_dimension_numbers<[1], [0], [0], [1], [0, 0, 1, 1], [], []>} : vector<16x8xf32>, vector<8x400xf32>, vector<16x400xf32> -> vector<16x400xf32>
    %86 = arith.addf %82, %85 : vector<16x400xf32>
    %c0_82 = arith.constant 0 : index
    %c20_83 = arith.constant 20 : index
    %87 = vector.load %arg14[%c0_82, %c20_83] : memref<8x422xf32, #tpu.memory_space<vmem>>, vector<8x400xf32>
    %c0_84 = arith.constant 0 : index
    %c48_85 = arith.constant 48 : index
    %88 = vector.load %arg6[%c0_84, %c48_85] : memref<16x72xf32, #tpu.memory_space<vmem>>, vector<16x8xf32>
    %cst_86 = arith.constant dense<0.000000e+00> : vector<16x400xf32>
    %89 = tpu.matmul %88, %87, %cst_86 {dimension_numbers = #tpu.dot_dimension_numbers<[1], [0], [0], [1], [0, 0, 1, 1], [], []>} : vector<16x8xf32>, vector<8x400xf32>, vector<16x400xf32> -> vector<16x400xf32>
    %90 = arith.addf %86, %89 : vector<16x400xf32>
    %c0_87 = arith.constant 0 : index
    %c21 = arith.constant 21 : index
    %91 = vector.load %arg14[%c0_87, %c21] : memref<8x422xf32, #tpu.memory_space<vmem>>, vector<8x400xf32>
    %c0_88 = arith.constant 0 : index
    %c56_89 = arith.constant 56 : index
    %92 = vector.load %arg6[%c0_88, %c56_89] : memref<16x72xf32, #tpu.memory_space<vmem>>, vector<16x8xf32>
    %cst_90 = arith.constant dense<0.000000e+00> : vector<16x400xf32>
    %93 = tpu.matmul %92, %91, %cst_90 {dimension_numbers = #tpu.dot_dimension_numbers<[1], [0], [0], [1], [0, 0, 1, 1], [], []>} : vector<16x8xf32>, vector<8x400xf32>, vector<16x400xf32> -> vector<16x400xf32>
    %94 = arith.addf %90, %93 : vector<16x400xf32>
    %c0_91 = arith.constant 0 : index
    %c22 = arith.constant 22 : index
    %95 = vector.load %arg14[%c0_91, %c22] : memref<8x422xf32, #tpu.memory_space<vmem>>, vector<8x400xf32>
    %c0_92 = arith.constant 0 : index
    %c64_93 = arith.constant 64 : index
    %96 = vector.load %arg6[%c0_92, %c64_93] : memref<16x72xf32, #tpu.memory_space<vmem>>, vector<16x8xf32>
    %cst_94 = arith.constant dense<0.000000e+00> : vector<16x400xf32>
    %97 = tpu.matmul %96, %95, %cst_94 {dimension_numbers = #tpu.dot_dimension_numbers<[1], [0], [0], [1], [0, 0, 1, 1], [], []>} : vector<16x8xf32>, vector<8x400xf32>, vector<16x400xf32> -> vector<16x400xf32>
    %98 = arith.addf %94, %97 : vector<16x400xf32>
    %c0_95 = arith.constant 0 : index
    %c0_96 = arith.constant 0 : index
    %99 = vector.load %arg7[%c0_95, %c0_96] : memref<16x1xf32, #tpu.memory_space<vmem>>, vector<16x1xf32>
    %100 = vector.broadcast %99 : vector<16x1xf32> to vector<16x400xf32>
    %101 = arith.addf %98, %100 : vector<16x400xf32>
    %cst_97 = arith.constant 0.000000e+00 : f32
    %102 = vector.broadcast %cst_97 : f32 to vector<16x400xf32>
    %103 = arith.maximumf %101, %102 : vector<16x400xf32>
    %c0_98 = arith.constant 0 : index
    %c0_99 = arith.constant 0 : index
    %104 = vector.load %arg4[%c0_98, %c0_99] : memref<8x1xf32, #tpu.memory_space<vmem>>, vector<8x1xf32>
    %c0_100 = arith.constant 0 : index
    %c0_101 = arith.constant 0 : index
    %105 = vector.load %arg9[%c0_100, %c0_101] : memref<1x648xf32, #tpu.memory_space<vmem>>, vector<1x648xf32>
    %106 = vector.extract_strided_slice %39 {offsets = [0, 0], sizes = [8, 648], strides = [1, 1]} : vector<8x1296xf32> to vector<8x648xf32>
    %107 = vector.extract_strided_slice %39 {offsets = [0, 648], sizes = [8, 648], strides = [1, 1]} : vector<8x1296xf32> to vector<8x648xf32>
    %108 = arith.mulf %106, %106 : vector<8x648xf32>
    %cst_102 = arith.constant dense<0.000000e+00> : vector<648xf32>
    %109 = vector.multi_reduction <add>, %108, %cst_102 [0] : vector<8x648xf32> to vector<648xf32>
    %110 = vector.shape_cast %109 : vector<648xf32> to vector<1x648xf32>
    %111 = math.sqrt %110 : vector<1x648xf32>
    %cst_103 = arith.constant 1.000000e-10 : f32
    %112 = vector.broadcast %cst_103 : f32 to vector<1x648xf32>
    %113 = arith.addf %111, %112 : vector<1x648xf32>
    %114 = tpu.reciprocal %113 {approx = true} : vector<1x648xf32> -> vector<1x648xf32>
    %115 = arith.mulf %107, %107 : vector<8x648xf32>
    %cst_104 = arith.constant dense<0.000000e+00> : vector<648xf32>
    %116 = vector.multi_reduction <add>, %115, %cst_104 [0] : vector<8x648xf32> to vector<648xf32>
    %117 = vector.shape_cast %116 : vector<648xf32> to vector<1x648xf32>
    %118 = math.sqrt %117 : vector<1x648xf32>
    %cst_105 = arith.constant 1.000000e-10 : f32
    %119 = vector.broadcast %cst_105 : f32 to vector<1x648xf32>
    %120 = arith.addf %118, %119 : vector<1x648xf32>
    %121 = tpu.reciprocal %120 {approx = true} : vector<1x648xf32> -> vector<1x648xf32>
    %122 = vector.broadcast %114 : vector<1x648xf32> to vector<8x648xf32>
    %123 = arith.mulf %106, %122 : vector<8x648xf32>
    %124 = vector.broadcast %121 : vector<1x648xf32> to vector<8x648xf32>
    %125 = arith.mulf %107, %124 : vector<8x648xf32>
    %126 = arith.subf %123, %125 : vector<8x648xf32>
    %127 = arith.mulf %126, %126 : vector<8x648xf32>
    %128 = vector.broadcast %104 : vector<8x1xf32> to vector<8x648xf32>
    %129 = arith.mulf %127, %128 : vector<8x648xf32>
    %cst_106 = arith.constant dense<0.000000e+00> : vector<648xf32>
    %130 = vector.multi_reduction <add>, %129, %cst_106 [0] : vector<8x648xf32> to vector<648xf32>
    %131 = vector.shape_cast %130 : vector<648xf32> to vector<1x648xf32>
    %132 = arith.mulf %131, %105 : vector<1x648xf32>
    %133 = vector.shape_cast %132 : vector<1x648xf32> to vector<1x1x648xf32>
    %cst_107 = arith.constant dense<0.000000e+00> : vector<1xf32>
    %134 = vector.multi_reduction <add>, %133, %cst_107 [1, 2] : vector<1x1x648xf32> to vector<1xf32>
    %135 = vector.shape_cast %134 : vector<1xf32> to vector<1x1x1xf32>
    %136 = vector.extract %135[0, 0, 0] : f32 from vector<1x1x1xf32>
    %c0_108 = arith.constant 0 : index
    %c0_109 = arith.constant 0 : index
    %137 = vector.load %arg8[%c0_108, %c0_109] : memref<16x1xf32, #tpu.memory_space<vmem>>, vector<16x1xf32>
    %c0_110 = arith.constant 0 : index
    %c0_111 = arith.constant 0 : index
    %138 = vector.load %arg10[%c0_110, %c0_111] : memref<1x200xf32, #tpu.memory_space<vmem>>, vector<1x200xf32>
    %139 = vector.extract_strided_slice %103 {offsets = [0, 0], sizes = [16, 200], strides = [1, 1]} : vector<16x400xf32> to vector<16x200xf32>
    %140 = vector.extract_strided_slice %103 {offsets = [0, 200], sizes = [16, 200], strides = [1, 1]} : vector<16x400xf32> to vector<16x200xf32>
    %141 = arith.mulf %139, %139 : vector<16x200xf32>
    %cst_112 = arith.constant dense<0.000000e+00> : vector<200xf32>
    %142 = vector.multi_reduction <add>, %141, %cst_112 [0] : vector<16x200xf32> to vector<200xf32>
    %143 = vector.shape_cast %142 : vector<200xf32> to vector<1x200xf32>
    %144 = math.sqrt %143 : vector<1x200xf32>
    %cst_113 = arith.constant 1.000000e-10 : f32
    %145 = vector.broadcast %cst_113 : f32 to vector<1x200xf32>
    %146 = arith.addf %144, %145 : vector<1x200xf32>
    %147 = tpu.reciprocal %146 {approx = true} : vector<1x200xf32> -> vector<1x200xf32>
    %148 = arith.mulf %140, %140 : vector<16x200xf32>
    %cst_114 = arith.constant dense<0.000000e+00> : vector<200xf32>
    %149 = vector.multi_reduction <add>, %148, %cst_114 [0] : vector<16x200xf32> to vector<200xf32>
    %150 = vector.shape_cast %149 : vector<200xf32> to vector<1x200xf32>
    %151 = math.sqrt %150 : vector<1x200xf32>
    %cst_115 = arith.constant 1.000000e-10 : f32
    %152 = vector.broadcast %cst_115 : f32 to vector<1x200xf32>
    %153 = arith.addf %151, %152 : vector<1x200xf32>
    %154 = tpu.reciprocal %153 {approx = true} : vector<1x200xf32> -> vector<1x200xf32>
    %155 = vector.broadcast %147 : vector<1x200xf32> to vector<16x200xf32>
    %156 = arith.mulf %139, %155 : vector<16x200xf32>
    %157 = vector.broadcast %154 : vector<1x200xf32> to vector<16x200xf32>
    %158 = arith.mulf %140, %157 : vector<16x200xf32>
    %159 = arith.subf %156, %158 : vector<16x200xf32>
    %160 = arith.mulf %159, %159 : vector<16x200xf32>
    %161 = vector.broadcast %137 : vector<16x1xf32> to vector<16x200xf32>
    %162 = arith.mulf %160, %161 : vector<16x200xf32>
    %cst_116 = arith.constant dense<0.000000e+00> : vector<200xf32>
    %163 = vector.multi_reduction <add>, %162, %cst_116 [0] : vector<16x200xf32> to vector<200xf32>
    %164 = vector.shape_cast %163 : vector<200xf32> to vector<1x200xf32>
    %165 = arith.mulf %164, %138 : vector<1x200xf32>
    %166 = vector.shape_cast %165 : vector<1x200xf32> to vector<1x1x200xf32>
    %cst_117 = arith.constant dense<0.000000e+00> : vector<1xf32>
    %167 = vector.multi_reduction <add>, %166, %cst_117 [1, 2] : vector<1x1x200xf32> to vector<1xf32>
    %168 = vector.shape_cast %167 : vector<1xf32> to vector<1x1x1xf32>
    %169 = vector.extract %168[0, 0, 0] : f32 from vector<1x1x1xf32>
    %170 = arith.addf %136, %169 : f32
    %c0_118 = arith.constant 0 : index
    %c19_119 = arith.constant 19 : index
    %171 = vector.load %arg1[%c0_118, %c19_119] : memref<8x1334xf32, #tpu.memory_space<vmem>>, vector<8x648xf32>
    %c0_120 = arith.constant 0 : index
    %c667 = arith.constant 667 : index
    %172 = vector.load %arg1[%c0_120, %c667] : memref<8x1334xf32, #tpu.memory_space<vmem>>, vector<8x648xf32>
    %173 = arith.subf %171, %172 : vector<8x648xf32>
    %174 = arith.mulf %173, %173 : vector<8x648xf32>
    %c0_121 = arith.constant 0 : index
    %c0_122 = arith.constant 0 : index
    %175 = vector.load %arg11[%c0_121, %c0_122] : memref<8x1xf32, #tpu.memory_space<vmem>>, vector<8x1xf32>
    %176 = vector.broadcast %175 : vector<8x1xf32> to vector<8x648xf32>
    %177 = arith.mulf %174, %176 : vector<8x648xf32>
    %178 = vector.shape_cast %177 : vector<8x648xf32> to vector<1x8x648xf32>
    %cst_123 = arith.constant dense<0.000000e+00> : vector<1xf32>
    %179 = vector.multi_reduction <add>, %178, %cst_123 [1, 2] : vector<1x8x648xf32> to vector<1xf32>
    %180 = vector.shape_cast %179 : vector<1xf32> to vector<1x1x1xf32>
    %181 = vector.extract %180[0, 0, 0] : f32 from vector<1x1x1xf32>
    %cst_124 = arith.constant 1.536000e+03 : f32
    %182 = arith.divf %181, %cst_124 : f32
    %cst_125 = arith.constant 1.000000e+00 : f32
    %183 = arith.mulf %cst_125, %182 : f32
    %cst_126 = arith.constant 2.500000e-01 : f32
    %184 = arith.mulf %cst_126, %170 : f32
    %185 = arith.addf %183, %184 : f32
    %cst_127 = arith.constant 0.000000e+00 : f32
    %186 = vector.broadcast %cst_127 : f32 to vector<1x128xf32>
    %187 = vector.broadcast %185 : f32 to vector<1x128xf32>
    %188 = arith.addf %186, %187 : vector<1x128xf32>
    %c0_128 = arith.constant 0 : index
    %c0_129 = arith.constant 0 : index
    %189 = vector.load %arg12[%c0_128, %c0_129] : memref<1x128xf32, #tpu.memory_space<vmem>>, vector<1x128xf32>
    tpu.vector_store %arg12[%c0_128, %c0_129], %188 {strides = array<i32>} : memref<1x128xf32, #tpu.memory_space<vmem>>, vector<1x128xf32>,
    return
  }
  func.func @transform_0(%arg0: i32) -> (i32, i32) {
    %c0_i32 = arith.constant 0 : i32
    %c0_i32_0 = arith.constant 0 : i32
    %c0_i32_1 = arith.constant 0 : i32
    return %c0_i32, %c0_i32_0 : i32, i32
  }
  func.func @transform_1(%arg0: i32) -> (i32, i32) {
    %c0_i32 = arith.constant 0 : i32
    %c0_i32_0 = arith.constant 0 : i32
    %c0_i32_1 = arith.constant 0 : i32
    return %c0_i32, %c0_i32_0 : i32, i32
  }
  func.func @transform_2(%arg0: i32) -> (i32, i32) {
    %c0_i32 = arith.constant 0 : i32
    %c0_i32_0 = arith.constant 0 : i32
    %c0_i32_1 = arith.constant 0 : i32
    return %c0_i32, %c0_i32_0 : i32, i32
  }
  func.func @transform_3(%arg0: i32) -> (i32, i32) {
    %c0_i32 = arith.constant 0 : i32
    %c0_i32_0 = arith.constant 0 : i32
    %c0_i32_1 = arith.constant 0 : i32
    return %c0_i32, %c0_i32_0 : i32, i32
  }
  func.func @transform_4(%arg0: i32) -> (i32, i32) {
    %c0_i32 = arith.constant 0 : i32
    %c0_i32_0 = arith.constant 0 : i32
    %c0_i32_1 = arith.constant 0 : i32
    return %c0_i32, %c0_i32_0 : i32, i32
  }
  func.func @transform_5(%arg0: i32) -> (i32, i32) {
    %c0_i32 = arith.constant 0 : i32
    %c0_i32_0 = arith.constant 0 : i32
    %c0_i32_1 = arith.constant 0 : i32
    return %c0_i32, %c0_i32_0 : i32, i32
  }
  func.func @transform_6(%arg0: i32) -> (i32, i32) {
    %c0_i32 = arith.constant 0 : i32
    %c0_i32_0 = arith.constant 0 : i32
    %c0_i32_1 = arith.constant 0 : i32
    return %c0_i32, %c0_i32_0 : i32, i32
  }
  func.func @transform_7(%arg0: i32) -> (i32, i32) {
    %c0_i32 = arith.constant 0 : i32
    %c0_i32_0 = arith.constant 0 : i32
    %c0_i32_1 = arith.constant 0 : i32
    return %c0_i32, %c0_i32_0 : i32, i32
  }
  func.func @transform_8(%arg0: i32) -> (i32, i32) {
    %c0_i32 = arith.constant 0 : i32
    %c0_i32_0 = arith.constant 0 : i32
    %c0_i32_1 = arith.constant 0 : i32
    return %c0_i32, %c0_i32_0 : i32, i32
  }
  func.func @transform_9(%arg0: i32) -> (i32, i32) {
    %c0_i32 = arith.constant 0 : i32
    %c0_i32_0 = arith.constant 0 : i32
    %c0_i32_1 = arith.constant 0 : i32
    return %c0_i32, %c0_i32_0 : i32, i32
  }
  func.func @transform_10(%arg0: i32) -> (i32, i32) {
    %c0_i32 = arith.constant 0 : i32
    %c0_i32_0 = arith.constant 0 : i32
    %c0_i32_1 = arith.constant 0 : i32
    return %c0_i32, %c0_i32_0 : i32, i32
  }
  func.func @transform_11(%arg0: i32) -> (i32, i32) {
    %c0_i32 = arith.constant 0 : i32
    %c0_i32_0 = arith.constant 0 : i32
    %c0_i32_1 = arith.constant 0 : i32
    return %c0_i32, %c0_i32_0 : i32, i32
  }
}

</mosaic_0001>

<bundles_post_ra>
// kernel: custom_loss.1
= control target key start
LH: loop header
LB: loop body
LE: loop exit
PB: predicated region body
PF: predicated region fallthrough
CT: control target
= control target key end

     0   :  { %s8531_s21 = smov 127   ;;  %v8532_v4 = vmov 0.0   ;;  %s10183_s0 = inlined_call_operand.vmem [shape: f32[8,1334], index: 0, kind: input, shape index: {}]   ;;  %s10184_s1 = inlined_call_operand.vmem [shape: f32[8,72], index: 1, kind: input, shape index: {}]   ;;  %s10185_s2 = inlined_call_operand.vmem [shape: f32[8,1], index: 2, kind: input, shape index: {}]   ;;  %s10186_s3 = inlined_call_operand.vmem [shape: f32[8,1], index: 3, kind: input, shape index: {}]   ;;  %s10187_s4 = inlined_call_operand.vmem [shape: f32[324,100], index: 4, kind: input, shape index: {}]   ;;  %s10188_s5 = inlined_call_operand.vmem [shape: f32[16,72], index: 5, kind: input, shape index: {}]   ;;  %s10189_s6 = inlined_call_operand.vmem [shape: f32[16,1], index: 6, kind: input, shape index: {}]   ;;  %s10190_s7 = inlined_call_operand.vmem [shape: f32[16,1], index: 7, kind: input, shape index: {}]   ;;  %s10191_s8 = inlined_call_operand.vmem [shape: f32[1,648], index: 8, kind: input, shape index: {}]   ;;  %s10192_s9 = inlined_call_operand.vmem [shape: f32[1,200], index: 9, kind: input, shape index: {}]   ;;  %s10193_s10 = inlined_call_operand.vmem [shape: f32[8,1], index: 10, kind: input, shape index: {}]   ;;  %s10194_s11 = inlined_call_operand.hbm [shape: f32[1,128], index: 11, kind: output, shape index: {}]  }
   0x1   :  { %v8627_v0 = vld [vmem:[%s10183_s0 + $0x8] sm:$0xff]  ;;  %v8632_v1 = vld [vmem:[%s10183_s0] sm:$0xff]  ;;  %v8641_v2 = vld [vmem:[%s10183_s0 + $0x10] sm:$0xff]  ;;  %176 = vmatprep.mubr.f32.mxu0 %v8532_v4  ;;  %4556 = vst [vmem:[#allocation3] sm:$0xff] %v8532_v4  ;;  %247 = vmatprep.mubr.f32.mxu1 %v8532_v4 }
   0x2   :  { %67 = vrot.lane.b32.xlu0 %v8627_v0, %s8531_s21  ;;  %65 = vrot.lane.b32.xlu1 %v8632_v1, %s8531_s21  ;;  %v8646_v3 = vld [vmem:[%s10183_s0 + $0x18] sm:$0xff]  ;;  %4557 = vst [vmem:[#allocation3 + $0x8] sm:$0xff] %v8532_v4  ;;  %4558 = vst [vmem:[#allocation3 + $0x10] sm:$0xff] %v8532_v4 }
   0x3   :  { %16 = vsyncpa [#allocation5], 0  ;;  %v8660_v5 = vld [vmem:[%s10183_s0 + $0x20] sm:$0xff]  ;;  %s8533_s30 = smov 120   ;;  %v8674_v7 = vld [vmem:[%s10183_s0 + $0x28] sm:$0xff]  ;;  %s8534_s24 = smov 126  }
   0x4   :  { %v8665_v6 = vld [vmem:[%s10184_s1] sm:$0xff]  ;;  %v8679_v8 = vld [vmem:[%s10183_s0 + $0x30] sm:$0xff]  ;;  %v8688_v9 = vld [vmem:[%s10183_s0 + $0x38] sm:$0xff]  ;;  %s8535_s25 = smov 112   ;;  %s8536_s26 = smov 110   ;;  %vm87_vm0 = vcmask 1039360  }
   0x5   :  { %v8693_v10 = vld [vmem:[%s10183_s0 + $0x40] sm:$0xff]  ;;  %v8702_v11 = vld [vmem:[%s10183_s0 + $0x48] sm:$0xff]  ;;  %v8707_v12 = vld [vmem:[%s10183_s0 + $0x50] sm:$0xff]  ;;  %s8537_s27 = smov 104   ;;  %s10195_s28 = smov 109   ;;  %vm109_vm1 = vcmask 64512  }
   0x6   :  { %69 = vrot.lane.b32.xlu0 %v8641_v2, %s8531_s21  ;;  %71 = vrot.lane.b32.xlu1 %v8646_v3, %s8531_s21  ;;  %s8539_s29 = smov 96   ;;  %s8540_s12 = smov 108   ;;  %vm8544_vm2 = vmmov 0   ;;  %vm988_vm3 = vcmask 1031168   ;;  %vm1472_vm4 = vcmask 900096   ;;  %vm1956_vm5 = vcmask 891904  }
   0x7   :  { %s8541_s13 = smov 88   ;;  %s8542_s14 = smov 92   ;;  %vm2440_vm6 = vcmask 883712   ;;  %vm2924_vm7 = vcmask 752640   ;;  %vm3408_vm8 = vcmask 744448   ;;  %vm3892_vm9 = vcmask 736256  }
   0x8   :  { %s8543_s15 = smov 80   ;;  %s8545_s1 = smov 91   ;;  %vm4390_vm10 = vcmask 285696   ;;  %vm4402_vm11 = vcmask 130048   ;;  %vm4606_vm12 = vcmask 1043456   ;;  %vm4602_vm13 = vcmask 556032  }
   0x9   :  { %s8546_s16 = smov 72   ;;  %s8547_s17 = smov 90   ;;  %vm4767_vm14 = vcmask 490496   ;;  %vm4931_vm15 = vcmask 982016  }
   0xa   :  { %73 = vrot.lane.b32.xlu0 %v8660_v5, %s8531_s21  ;;  %52 = vrot.lane.b32.xlu1 %v8665_v6, %s8533_s30  ;;  %s10197_s18 = smov 64   ;;  %s8556_s22 = smov 55  }
   0xb   :  { %s8559_s23 = smov 116  }
   0xe   :  { %75 = vrot.lane.b32.xlu0 %v8674_v7, %s8531_s21  ;;  %77 = vrot.lane.b32.xlu1 %v8679_v8, %s8531_s21 }
  0x12   :  { %79 = vrot.lane.b32.xlu0 %v8688_v9, %s8531_s21  ;;  %81 = vrot.lane.b32.xlu1 %v8693_v10, %s8531_s21 }
  0x16   :  { %83 = vrot.lane.b32.xlu0 %v8702_v11, %s8531_s21  ;;  %85 = vrot.lane.b32.xlu1 %v8707_v12, %s8531_s21 }
  0x1a   :  { %968 = vrot.lane.b32.xlu0 %v8627_v0, %s8534_s24  ;;  %970 = vrot.lane.b32.xlu1 %v8641_v2, %s8534_s24 }
  0x1e   :  { %966 = vrot.lane.b32.xlu0 %v8632_v1, %s8534_s24  ;;  %972 = vrot.lane.b32.xlu1 %v8646_v3, %s8534_s24 }
  0x22   :  { %974 = vrot.lane.b32.xlu0 %v8660_v5, %s8534_s24  ;;  %964 = vrot.lane.b32.xlu1 %v8665_v6, %s8535_s25 }
  0x26   :  { %976 = vrot.lane.b32.xlu0 %v8674_v7, %s8534_s24  ;;  %978 = vrot.lane.b32.xlu1 %v8679_v8, %s8534_s24 }
  0x2a   :  { %980 = vrot.lane.b32.xlu0 %v8688_v9, %s8534_s24  ;;  %982 = vrot.lane.b32.xlu1 %v8693_v10, %s8534_s24 }
  0x2e   :  { %984 = vrot.lane.b32.xlu0 %v8702_v11, %s8534_s24  ;;  %986 = vrot.lane.b32.xlu1 %v8707_v12, %s8534_s24 }
  0x32   :  { %1452 = vrot.lane.b32.xlu0 %v8627_v0, %s8536_s26  ;;  %1454 = vrot.lane.b32.xlu1 %v8641_v2, %s8536_s26 }
  0x36   :  { %1450 = vrot.lane.b32.xlu0 %v8632_v1, %s8536_s26  ;;  %1456 = vrot.lane.b32.xlu1 %v8646_v3, %s8536_s26 }
  0x3a   :  { %1458 = vrot.lane.b32.xlu0 %v8660_v5, %s8536_s26  ;;  %1448 = vrot.lane.b32.xlu1 %v8665_v6, %s8537_s27 }
  0x3e   :  { %1460 = vrot.lane.b32.xlu0 %v8674_v7, %s8536_s26  ;;  %1462 = vrot.lane.b32.xlu1 %v8679_v8, %s8536_s26 }
  0x42   :  { %1464 = vrot.lane.b32.xlu0 %v8688_v9, %s8536_s26  ;;  %1466 = vrot.lane.b32.xlu1 %v8693_v10, %s8536_s26 }
  0x46   :  { %1468 = vrot.lane.b32.xlu0 %v8702_v11, %s8536_s26  ;;  %1470 = vrot.lane.b32.xlu1 %v8707_v12, %s8536_s26 }
  0x4a   :  { %1936 = vrot.lane.b32.xlu0 %v8627_v0, %s10195_s28  ;;  %1938 = vrot.lane.b32.xlu1 %v8641_v2, %s10195_s28 }
  0x4e   :  { %1934 = vrot.lane.b32.xlu0 %v8632_v1, %s10195_s28  ;;  %1940 = vrot.lane.b32.xlu1 %v8646_v3, %s10195_s28 }
  0x52   :  { %1942 = vrot.lane.b32.xlu0 %v8660_v5, %s10195_s28  ;;  %1932 = vrot.lane.b32.xlu1 %v8665_v6, %s8539_s29 }
  0x56   :  { %1944 = vrot.lane.b32.xlu0 %v8674_v7, %s10195_s28  ;;  %1946 = vrot.lane.b32.xlu1 %v8679_v8, %s10195_s28 }
  0x5a   :  { %1948 = vrot.lane.b32.xlu0 %v8688_v9, %s10195_s28  ;;  %1950 = vrot.lane.b32.xlu1 %v8693_v10, %s10195_s28 }
  0x5e   :  { %1952 = vrot.lane.b32.xlu0 %v8702_v11, %s10195_s28  ;;  %1954 = vrot.lane.b32.xlu1 %v8707_v12, %s10195_s28 }
  0x62   :  { %2420 = vrot.lane.b32.xlu0 %v8627_v0, %s8540_s12  ;;  %2422 = vrot.lane.b32.xlu1 %v8641_v2, %s8540_s12 }
  0x66   :  { %2418 = vrot.lane.b32.xlu0 %v8632_v1, %s8540_s12  ;;  %2424 = vrot.lane.b32.xlu1 %v8646_v3, %s8540_s12 }
  0x6a   :  { %2426 = vrot.lane.b32.xlu0 %v8660_v5, %s8540_s12  ;;  %2416 = vrot.lane.b32.xlu1 %v8665_v6, %s8541_s13 }
  0x6e   :  { %2428 = vrot.lane.b32.xlu0 %v8674_v7, %s8540_s12  ;;  %2430 = vrot.lane.b32.xlu1 %v8679_v8, %s8540_s12 }
  0x72   :  { %2432 = vrot.lane.b32.xlu0 %v8688_v9, %s8540_s12  ;;  %2434 = vrot.lane.b32.xlu1 %v8693_v10, %s8540_s12 }
  0x74   :  { %v68_v13 = vpop.permute.xlu0 %67  ;;  %v66_v14 = vpop.permute.xlu1 %65 }
  0x75   :  { %v88_v18 = vsel %vm87_vm0, %v66_v14, %v68_v13 }
  0x76   :  { %2436 = vrot.lane.b32.xlu0 %v8702_v11, %s8540_s12  ;;  %2438 = vrot.lane.b32.xlu1 %v8707_v12, %s8540_s12 }
  0x78   :  { %v70_v15 = vpop.permute.xlu0 %69  ;;  %v72_v16 = vpop.permute.xlu1 %71 }
  0x79   :  { %v89_v17 = vsel %vm87_vm0, %v68_v13, %v70_v15  ;;  %v90_v22 = vsel %vm87_vm0, %v70_v15, %v72_v16 }
  0x7a   :  { %112 = vmatprep.subr.mxu0 %v89_v17  ;;  %2904 = vrot.lane.b32.xlu0 %v8627_v0, %s8542_s14 }
  0x7b   :  { %2906 = vrot.lane.b32.xlu1 %v8641_v2, %s8542_s14  ;;  %113 = vmatpush1.msra.mxu0 %v88_v18 }
  0x7c   :  { %v74_v19 = vpop.permute.xlu0 %73  ;;  %v53_v20 = vpop.permute.xlu1 %52 }
  0x7d   :  { %7616 = vmatmul.mubr.msk.f32.vlgmr.msra.gmra.mrb[0].mxu0 %vm109_vm1, %v53_v20  ;;  %v91_v21 = vsel %vm87_vm0, %v72_v16, %v74_v19 }
  0x7e   :  { %2902 = vrot.lane.b32.xlu0 %v8632_v1, %s8542_s14  ;;  %183 = vmatprep.subr.mxu1 %v91_v21 }
  0x7f   :  { %2908 = vrot.lane.b32.xlu1 %v8646_v3, %s8542_s14  ;;  %184 = vmatpush1.msra.mxu1 %v90_v22 }
  0x80   :  { %v76_v23 = vpop.permute.xlu0 %75  ;;  %7617 = vmatmul.mubr.msk.f32.vlgmr.msra.gmra.mrb[0].mxu1 %vm109_vm1, %v53_v20  ;;  %v78_v24 = vpop.permute.xlu1 %77  ;;  %318 = vmatprep.mubr.f32.mxu0 %v8532_v4 }
  0x81   :  { %v93_v25 = vsel %vm87_vm0, %v76_v23, %v78_v24  ;;  %v92_v26 = vsel %vm87_vm0, %v74_v19, %v76_v23  ;;  %389 = vmatprep.mubr.f32.mxu1 %v8532_v4 }
  0x82   :  { %2910 = vrot.lane.b32.xlu0 %v8660_v5, %s8542_s14  ;;  %254 = vmatprep.subr.mxu0 %v93_v25 }
  0x83   :  { %2900 = vrot.lane.b32.xlu1 %v8665_v6, %s8543_s15  ;;  %255 = vmatpush1.msra.mxu0 %v92_v26 }
  0x84   :  { %v80_v27 = vpop.permute.xlu0 %79  ;;  %7618 = vmatmul.mubr.msk.f32.vlgmr.msra.gmra.mrb[2].mxu0 %vm109_vm1, %v53_v20  ;;  %v82_v28 = vpop.permute.xlu1 %81 }
  0x85   :  { %v95_v29 = vsel %vm87_vm0, %v80_v27, %v82_v28  ;;  %v94_v30 = vsel %vm87_vm0, %v78_v24, %v80_v27  ;;  %460 = vmatprep.mubr.f32.mxu0 %v8532_v4 }
  0x86   :  { %2912 = vrot.lane.b32.xlu0 %v8674_v7, %s8542_s14  ;;  %325 = vmatprep.subr.mxu1 %v95_v29 }
  0x87   :  { %2914 = vrot.lane.b32.xlu1 %v8679_v8, %s8542_s14  ;;  %326 = vmatpush1.msra.mxu1 %v94_v30 }
  0x88   :  { %v84_v31 = vpop.permute.xlu0 %83  ;;  %7619 = vmatmul.mubr.msk.f32.vlgmr.msra.gmra.mrb[2].mxu1 %vm109_vm1, %v53_v20  ;;  %7912 = vmatprep.subr.mxu1 %v8532_v4  ;;  %v86_v32 = vpop.permute.xlu1 %85 }
  0x89   :  { %7913 = vmatpush3.msra.mxu1 %v86_v32  ;;  %v97_v33 = vsel %vm87_vm0, %v84_v31, %v86_v32  ;;  %v96_v34 = vsel %vm87_vm0, %v82_v28, %v84_v31  ;;  %7914 = vmatprep.mubr.msk.f32.mxu1 %vm8544_vm2, %v8532_v4 }
  0x8a   :  { %2916 = vrot.lane.b32.xlu0 %v8688_v9, %s8542_s14  ;;  %396 = vmatprep.subr.mxu0 %v97_v33 }
  0x8b   :  { %2918 = vrot.lane.b32.xlu1 %v8693_v10, %s8542_s14  ;;  %397 = vmatpush1.msra.mxu0 %v96_v34 }
  0x8c   :  { %v969_v35 = vpop.permute.xlu0 %968  ;;  %7620 = vmatmul.mubr.msk.f32.vlgmr.msra.gmra.mrb[4].mxu0 %vm109_vm1, %v53_v20  ;;  %7915 = vmatmul.mubr.msk.f32.vlgmr.msra.gmra.mrb[4].mxu1 %vm109_vm1, %v53_v20  ;;  %v971_v36 = vpop.permute.xlu1 %970 }
  0x8d   :  { %539 = vmatprep.subr.mxu0 %v8627_v0  ;;  %610 = vmatprep.subr.mxu1 %v8646_v3  ;;  %v990_v41 = vsel %vm988_vm3, %v969_v35, %v971_v36 }
  0x8e   :  { %2920 = vrot.lane.b32.xlu0 %v8702_v11, %s8542_s14  ;;  %540 = vmatpush1.msra.mxu0 %v8632_v1 }
  0x8f   :  { %2922 = vrot.lane.b32.xlu1 %v8707_v12, %s8542_s14  ;;  %603 = vmatprep.mubr.f32.mxu0 %v8532_v4 }
  0x90   :  { %611 = vmatpush1.msra.mxu1 %v8641_v2  ;;  %674 = vmatprep.mubr.f32.mxu1 %v8532_v4  ;;  %v967_v37 = vpop.permute.xlu0 %966  ;;  %v973_v38 = vpop.permute.xlu1 %972 }
  0x91   :  { %7622 = vmatmul.mubr.msk.f32.vlgmr.msra.gmra.mrb[0].mxu0 %vm109_vm1, %v8665_v6  ;;  %7623 = vmatmul.mubr.msk.f32.vlgmr.msra.gmra.mrb[0].mxu1 %vm109_vm1, %v8665_v6  ;;  %v989_v45 = vsel %vm988_vm3, %v967_v37, %v969_v35  ;;  %v991_v46 = vsel %vm988_vm3, %v971_v36, %v973_v38 }
  0x92   :  { %681 = vmatprep.subr.mxu0 %v8674_v7  ;;  %3388 = vrot.lane.b32.xlu0 %v8627_v0, %s8545_s1 }
  0x93   :  { %3390 = vrot.lane.b32.xlu1 %v8641_v2, %s8545_s1  ;;  %682 = vmatpush1.msra.mxu0 %v8660_v5 }
  0x94   :  { %752 = vmatprep.subr.mxu1 %v8688_v9  ;;  %745 = vmatprep.mubr.f32.mxu0 %v8532_v4  ;;  %v975_v39 = vpop.permute.xlu0 %974  ;;  %v8873_v40 = vpop.permute.xlu1 %964 }
  0x95   :  { %753 = vmatpush1.msra.mxu1 %v8679_v8  ;;  %816 = vmatprep.mubr.f32.mxu1 %v8532_v4  ;;  %v992_v42 = vsel %vm988_vm3, %v973_v38, %v975_v39 }
  0x96   :  { %823 = vmatprep.subr.mxu0 %v8702_v11  ;;  %7624 = vmatmul.mubr.msk.f32.vlgmr.msra.gmra.mrb[2].mxu0 %vm109_vm1, %v8665_v6 }
  0x97   :  { %7625 = vmatmul.mubr.msk.f32.vlgmr.msra.gmra.mrb[2].mxu1 %vm109_vm1, %v8665_v6  ;;  %824 = vmatpush1.msra.mxu0 %v8693_v10 }
  0x98   :  { %7917 = vmatprep.subr.mxu1 %v8532_v4  ;;  %1012 = vmatprep.subr.mxu0 %v990_v41  ;;  %v977_v43 = vpop.permute.xlu0 %976  ;;  %v979_v44 = vpop.permute.xlu1 %978 }
  0x99   :  { %7918 = vmatpush3.msra.mxu1 %v8707_v12  ;;  %3386 = vrot.lane.b32.xlu0 %v8632_v1, %s8545_s1  ;;  %v994_v47 = vsel %vm988_vm3, %v977_v43, %v979_v44  ;;  %v993_v50 = vsel %vm988_vm3, %v975_v39, %v977_v43 }
  0x9a   :  { %3392 = vrot.lane.b32.xlu1 %v8646_v3, %s8545_s1  ;;  %1083 = vmatprep.subr.mxu1 %v992_v42 }
  0x9b   :  { %887 = vmatprep.mubr.f32.mxu0 %v8532_v4  ;;  %7919 = vmatprep.mubr.msk.f32.mxu1 %vm8544_vm2, %v8532_v4 }
  0x9c   :  { %7626 = vmatmul.mubr.msk.f32.vlgmr.msra.gmra.mrb[4].mxu0 %vm109_vm1, %v8665_v6  ;;  %7920 = vmatmul.mubr.msk.f32.vlgmr.msra.gmra.mrb[6].mxu1 %vm109_vm1, %v8665_v6  ;;  %v981_v48 = vpop.permute.xlu0 %980  ;;  %v983_v49 = vpop.permute.xlu1 %982 }
  0x9d   :  { %1013 = vmatpush1.msra.mxu0 %v989_v45  ;;  %1084 = vmatpush1.msra.mxu1 %v991_v46  ;;  %v996_v51 = vsel %vm988_vm3, %v981_v48, %v983_v49  ;;  %v995_v54 = vsel %vm988_vm3, %v979_v44, %v981_v48 }
  0x9e   :  { %3394 = vrot.lane.b32.xlu0 %v8660_v5, %s8545_s1  ;;  %3384 = vrot.lane.b32.xlu1 %v8665_v6, %s8546_s16 }
  0x9f   :  { %1154 = vmatprep.subr.mxu0 %v994_v47  ;;  %1076 = vmatprep.mubr.f32.mxu0 %v8532_v4 }
  0xa0   :  { %1147 = vmatprep.mubr.f32.mxu1 %v8532_v4  ;;  %7628 = vmatmul.mubr.msk.f32.vlgmr.msra.gmra.mrb[0].mxu0 %vm109_vm1, %v8873_v40  ;;  %v985_v52 = vpop.permute.xlu0 %984  ;;  %v987_v53 = vpop.permute.xlu1 %986 }
  0xa1   :  { %7629 = vmatmul.mubr.msk.f32.vlgmr.msra.gmra.mrb[0].mxu1 %vm109_vm1, %v8873_v40  ;;  %1155 = vmatpush1.msra.mxu0 %v993_v50  ;;  %v998_v57 = vsel %vm988_vm3, %v985_v52, %v987_v53  ;;  %v997_v58 = vsel %vm988_vm3, %v983_v49, %v985_v52 }
  0xa2   :  { %3396 = vrot.lane.b32.xlu0 %v8674_v7, %s8545_s1  ;;  %3398 = vrot.lane.b32.xlu1 %v8679_v8, %s8545_s1 }
  0xa3   :  { %1225 = vmatprep.subr.mxu1 %v996_v51  ;;  %1218 = vmatprep.mubr.f32.mxu0 %v8532_v4 }
  0xa4   :  { %1226 = vmatpush1.msra.mxu1 %v995_v54  ;;  %1289 = vmatprep.mubr.f32.mxu1 %v8532_v4  ;;  %v1453_v55 = vpop.permute.xlu0 %1452  ;;  %v1455_v56 = vpop.permute.xlu1 %1454 }
  0xa5   :  { %7630 = vmatmul.mubr.msk.f32.vlgmr.msra.gmra.mrb[2].mxu0 %vm109_vm1, %v8873_v40  ;;  %7631 = vmatmul.mubr.msk.f32.vlgmr.msra.gmra.mrb[2].mxu1 %vm109_vm1, %v8873_v40  ;;  %v1474_v61 = vsel %vm1472_vm4, %v1453_v55, %v1455_v56 }
  0xa6   :  { %7922 = vmatprep.subr.mxu1 %v8532_v4  ;;  %3400 = vrot.lane.b32.xlu0 %v8688_v9, %s8545_s1 }
  0xa7   :  { %7923 = vmatpush3.msra.mxu1 %v987_v53  ;;  %3402 = vrot.lane.b32.xlu1 %v8693_v10, %s8545_s1 }
  0xa8   :  { %1296 = vmatprep.subr.mxu0 %v998_v57  ;;  %1360 = vmatprep.mubr.f32.mxu0 %v8532_v4  ;;  %v1451_v59 = vpop.permute.xlu0 %1450  ;;  %v1457_v60 = vpop.permute.xlu1 %1456 }
  0xa9   :  { %1297 = vmatpush1.msra.mxu0 %v997_v58  ;;  %7924 = vmatprep.mubr.msk.f32.mxu1 %vm8544_vm2, %v8532_v4  ;;  %v1473_v62 = vsel %vm1472_vm4, %v1451_v59, %v1453_v55  ;;  %v1475_v15 = vsel %vm1472_vm4, %v1455_v56, %v1457_v60 }
  0xaa   :  { %7632 = vmatmul.mubr.msk.f32.vlgmr.msra.gmra.mrb[4].mxu0 %vm109_vm1, %v8873_v40  ;;  %7925 = vmatmul.mubr.msk.f32.vlgmr.msra.gmra.mrb[8].mxu1 %vm109_vm1, %v8873_v40 }
  0xab   :  { %3404 = vrot.lane.b32.xlu0 %v8702_v11, %s8545_s1  ;;  %3406 = vrot.lane.b32.xlu1 %v8707_v12, %s8545_s1  ;;  %s8553_s1 = smov 111  }
  0xac   :  { %1496 = vmatprep.subr.mxu0 %v1474_v61  ;;  %v1459_v63 = vpop.permute.xlu0 %1458  ;;  %1560 = vmatprep.mubr.f32.mxu0 %v8532_v4  ;;  %v1449_v13 = vpop.permute.xlu1 %1448 }
  0xad   :  { %1497 = vmatpush1.msra.mxu0 %v1473_v62  ;;  %v1476_v14 = vsel %vm1472_vm4, %v1457_v60, %v1459_v63  ;;  %1631 = vmatprep.mubr.f32.mxu1 %v8532_v4 }
  0xae   :  { %7634 = vmatmul.mubr.msk.f32.vlgmr.msra.gmra.mrb[0].mxu0 %vm109_vm1, %v1449_v13  ;;  %1567 = vmatprep.subr.mxu1 %v1476_v14 }
  0xaf   :  { %3872 = vrot.lane.b32.xlu0 %v8627_v0, %s8547_s17  ;;  %3874 = vrot.lane.b32.xlu1 %v8641_v2, %s8547_s17 }
  0xb0   :  { %1568 = vmatpush1.msra.mxu1 %v1475_v15  ;;  %v1461_v16 = vpop.permute.xlu0 %1460  ;;  %v1463_v17 = vpop.permute.xlu1 %1462  ;;  %1702 = vmatprep.mubr.f32.mxu0 %v8532_v4 }
  0xb1   :  { %7635 = vmatmul.mubr.msk.f32.vlgmr.msra.gmra.mrb[0].mxu1 %vm109_vm1, %v1449_v13  ;;  %v1478_v18 = vsel %vm1472_vm4, %v1461_v16, %v1463_v17  ;;  %v1477_v19 = vsel %vm1472_vm4, %v1459_v63, %v1461_v16 }
  0xb2   :  { %1638 = vmatprep.subr.mxu0 %v1478_v18  ;;  %1773 = vmatprep.mubr.f32.mxu1 %v8532_v4 }
  0xb3   :  { %3870 = vrot.lane.b32.xlu0 %v8632_v1, %s8547_s17  ;;  %3876 = vrot.lane.b32.xlu1 %v8646_v3, %s8547_s17 }
  0xb4   :  { %1639 = vmatpush1.msra.mxu0 %v1477_v19  ;;  %v1465_v0 = vpop.permute.xlu0 %1464  ;;  %v1467_v2 = vpop.permute.xlu1 %1466 }
  0xb5   :  { %7636 = vmatmul.mubr.msk.f32.vlgmr.msra.gmra.mrb[2].mxu0 %vm109_vm1, %v1449_v13  ;;  %v1480_v20 = vsel %vm1472_vm4, %v1465_v0, %v1467_v2  ;;  %v1479_v21 = vsel %vm1472_vm4, %v1463_v17, %v1465_v0 }
  0xb6   :  { %1709 = vmatprep.subr.mxu1 %v1480_v20  ;;  %1844 = vmatprep.mubr.f32.mxu0 %v8532_v4 }
  0xb7   :  { %3878 = vrot.lane.b32.xlu0 %v8660_v5, %s8547_s17  ;;  %3868 = vrot.lane.b32.xlu1 %v8665_v6, %s10197_s18 }
  0xb8   :  { %1710 = vmatpush1.msra.mxu1 %v1479_v21  ;;  %v1469_v1 = vpop.permute.xlu0 %1468  ;;  %v1471_v3 = vpop.permute.xlu1 %1470 }
  0xb9   :  { %7637 = vmatmul.mubr.msk.f32.vlgmr.msra.gmra.mrb[2].mxu1 %vm109_vm1, %v1449_v13  ;;  %7927 = vmatprep.subr.mxu1 %v8532_v4  ;;  %v1482_v22 = vsel %vm1472_vm4, %v1469_v1, %v1471_v3  ;;  %v1481_v23 = vsel %vm1472_vm4, %v1467_v2, %v1469_v1 }
  0xba   :  { %7928 = vmatpush3.msra.mxu1 %v1471_v3  ;;  %1780 = vmatprep.subr.mxu0 %v1482_v22 }
  0xbb   :  { %3880 = vrot.lane.b32.xlu0 %v8674_v7, %s8547_s17  ;;  %3882 = vrot.lane.b32.xlu1 %v8679_v8, %s8547_s17 }
  0xbc   :  { %1781 = vmatpush1.msra.mxu0 %v1481_v23  ;;  %7929 = vmatprep.mubr.msk.f32.mxu1 %vm8544_vm2, %v8532_v4  ;;  %v1937_v5 = vpop.permute.xlu0 %1936  ;;  %v1939_v6 = vpop.permute.xlu1 %1938  ;;  %v8549_v23 = vmov 0  }
  0xbd   :  { %7638 = vmatmul.mubr.msk.f32.vlgmr.msra.gmra.mrb[4].mxu0 %vm109_vm1, %v1449_v13  ;;  %7930 = vmatmul.mubr.msk.f32.vlgmr.msra.gmra.mrb[10].mxu1 %vm109_vm1, %v1449_v13  ;;  %v1958_v24 = vsel %vm1956_vm5, %v1937_v5, %v1939_v6 }
  0xbe   :  { %1980 = vmatprep.subr.mxu0 %v1958_v24  ;;  %2044 = vmatprep.mubr.f32.mxu0 %v8532_v4 }
  0xbf   :  { %3884 = vrot.lane.b32.xlu0 %v8688_v9, %s8547_s17  ;;  %3886 = vrot.lane.b32.xlu1 %v8693_v10, %s8547_s17 }
  0xc0   :  { %v1935_v7 = vpop.permute.xlu0 %1934  ;;  %v1941_v8 = vpop.permute.xlu1 %1940  ;;  %2115 = vmatprep.mubr.f32.mxu1 %v8532_v4  ;;  %8400 = vset.pattern.permute.xlu0 %v8549_v23 }
  0xc1   :  { %v1957_v25 = vsel %vm1956_vm5, %v1935_v7, %v1937_v5  ;;  %v1959_v10 = vsel %vm1956_vm5, %v1939_v6, %v1941_v8  ;;  %v4352_v5 = vld [vmem:[%s10185_s2] sm:$0xff]  ;;  %8426 = vset.pattern.permute.xlu1 %v8549_v23  ;;  %s8555_s2 = smov 83  }
  0xc2   :  { %1981 = vmatpush1.msra.mxu0 %v1957_v25 }
  0xc3   :  { %3888 = vrot.lane.b32.xlu0 %v8702_v11, %s8547_s17  ;;  %3890 = vrot.lane.b32.xlu1 %v8707_v12, %s8547_s17  ;;  %s8554_s17 = smov 11  }
  0xc4   :  { %v1943_v26 = vpop.permute.xlu0 %1942  ;;  %v1933_v27 = vpop.permute.xlu1 %1932 }
  0xc5   :  { %7640 = vmatmul.mubr.msk.f32.vlgmr.msra.gmra.mrb[0].mxu0 %vm109_vm1, %v1933_v27  ;;  %v1960_v9 = vsel %vm1956_vm5, %v1941_v8, %v1943_v26 }
  0xc6   :  { %2051 = vmatprep.subr.mxu1 %v1960_v9  ;;  %2186 = vmatprep.mubr.f32.mxu0 %v8532_v4 }
  0xc7   :  { %2052 = vmatpush1.msra.mxu1 %v1959_v10  ;;  %4355 = vperm.xlu0 %8400, %v4352_v5  }
  0xc8   :  { %v1945_v28 = vpop.permute.xlu0 %1944  ;;  %7641 = vmatmul.mubr.msk.f32.vlgmr.msra.gmra.mrb[0].mxu1 %vm109_vm1, %v1933_v27  ;;  %v1947_v29 = vpop.permute.xlu1 %1946 }
  0xc9   :  { %v1962_v11 = vsel %vm1956_vm5, %v1945_v28, %v1947_v29  ;;  %v1961_v12 = vsel %vm1956_vm5, %v1943_v26, %v1945_v28  ;;  %2257 = vmatprep.mubr.f32.mxu1 %v8532_v4 }
  0xca   :  { %2122 = vmatprep.subr.mxu0 %v1962_v11 }
  0xcb   :  { %2123 = vmatpush1.msra.mxu0 %v1961_v12 }
  0xcc   :  { %v1949_v30 = vpop.permute.xlu0 %1948  ;;  %7642 = vmatmul.mubr.msk.f32.vlgmr.msra.gmra.mrb[2].mxu0 %vm109_vm1, %v1933_v27  ;;  %v1951_v31 = vpop.permute.xlu1 %1950 }
  0xcd   :  { %v1964_v32 = vsel %vm1956_vm5, %v1949_v30, %v1951_v31  ;;  %v1963_v33 = vsel %vm1956_vm5, %v1947_v29, %v1949_v30  ;;  %2328 = vmatprep.mubr.f32.mxu0 %v8532_v4 }
  0xce   :  { %2193 = vmatprep.subr.mxu1 %v1964_v32 }
  0xcf   :  { %2194 = vmatpush1.msra.mxu1 %v1963_v33 }
  0xd0   :  { %v1953_v34 = vpop.permute.xlu0 %1952  ;;  %7643 = vmatmul.mubr.msk.f32.vlgmr.msra.gmra.mrb[2].mxu1 %vm109_vm1, %v1933_v27  ;;  %7932 = vmatprep.subr.mxu1 %v8532_v4  ;;  %v1955_v35 = vpop.permute.xlu1 %1954 }
  0xd1   :  { %7933 = vmatpush3.msra.mxu1 %v1955_v35  ;;  %v1966_v36 = vsel %vm1956_vm5, %v1953_v34, %v1955_v35  ;;  %v1965_v37 = vsel %vm1956_vm5, %v1951_v31, %v1953_v34  ;;  %7934 = vmatprep.mubr.msk.f32.mxu1 %vm8544_vm2, %v8532_v4 }
  0xd2   :  { %2264 = vmatprep.subr.mxu0 %v1966_v36 }
  0xd3   :  { %2265 = vmatpush1.msra.mxu0 %v1965_v37 }
  0xd4   :  { %v2421_v38 = vpop.permute.xlu0 %2420  ;;  %7644 = vmatmul.mubr.msk.f32.vlgmr.msra.gmra.mrb[4].mxu0 %vm109_vm1, %v1933_v27  ;;  %7935 = vmatmul.mubr.msk.f32.vlgmr.msra.gmra.mrb[12].mxu1 %vm109_vm1, %v1933_v27  ;;  %v2423_v39 = vpop.permute.xlu1 %2422 }
  0xd5   :  { %v2442_v40 = vsel %vm2440_vm6, %v2421_v38, %v2423_v39  ;;  %2528 = vmatprep.mubr.f32.mxu0 %v8532_v4  ;;  %2599 = vmatprep.mubr.f32.mxu1 %v8532_v4 }
  0xd6   :  { %2464 = vmatprep.subr.mxu0 %v2442_v40 }
  0xd8   :  { %v2419_v41 = vpop.permute.xlu0 %2418  ;;  %v2425_v42 = vpop.permute.xlu1 %2424 }
  0xd9   :  { %v2441_v43 = vsel %vm2440_vm6, %v2419_v41, %v2421_v38  ;;  %v2443_v47 = vsel %vm2440_vm6, %v2423_v39, %v2425_v42 }
  0xda   :  { %2465 = vmatpush1.msra.mxu0 %v2441_v43 }
  0xdc   :  { %v2427_v44 = vpop.permute.xlu0 %2426  ;;  %v2417_v45 = vpop.permute.xlu1 %2416 }
  0xdd   :  { %7646 = vmatmul.mubr.msk.f32.vlgmr.msra.gmra.mrb[0].mxu0 %vm109_vm1, %v2417_v45  ;;  %v2444_v46 = vsel %vm2440_vm6, %v2425_v42, %v2427_v44 }
  0xde   :  { %2535 = vmatprep.subr.mxu1 %v2444_v46  ;;  %2670 = vmatprep.mubr.f32.mxu0 %v8532_v4 }
  0xdf   :  { %2536 = vmatpush1.msra.mxu1 %v2443_v47 }
  0xe0   :  { %v2429_v48 = vpop.permute.xlu0 %2428  ;;  %7647 = vmatmul.mubr.msk.f32.vlgmr.msra.gmra.mrb[0].mxu1 %vm109_vm1, %v2417_v45  ;;  %v2431_v49 = vpop.permute.xlu1 %2430 }
  0xe1   :  { %v2446_v50 = vsel %vm2440_vm6, %v2429_v48, %v2431_v49  ;;  %v2445_v51 = vsel %vm2440_vm6, %v2427_v44, %v2429_v48  ;;  %2741 = vmatprep.mubr.f32.mxu1 %v8532_v4 }
  0xe2   :  { %2606 = vmatprep.subr.mxu0 %v2446_v50 }
  0xe3   :  { %2607 = vmatpush1.msra.mxu0 %v2445_v51 }
  0xe4   :  { %v2433_v52 = vpop.permute.xlu0 %2432  ;;  %7648 = vmatmul.mubr.msk.f32.vlgmr.msra.gmra.mrb[2].mxu0 %vm109_vm1, %v2417_v45  ;;  %v2435_v53 = vpop.permute.xlu1 %2434 }
  0xe5   :  { %v2448_v54 = vsel %vm2440_vm6, %v2433_v52, %v2435_v53  ;;  %v2447_v55 = vsel %vm2440_vm6, %v2431_v49, %v2433_v52  ;;  %2812 = vmatprep.mubr.f32.mxu0 %v8532_v4 }
  0xe6   :  { %2677 = vmatprep.subr.mxu1 %v2448_v54 }
  0xe7   :  { %2678 = vmatpush1.msra.mxu1 %v2447_v55 }
  0xe8   :  { %v2437_v56 = vpop.permute.xlu0 %2436  ;;  %7649 = vmatmul.mubr.msk.f32.vlgmr.msra.gmra.mrb[2].mxu1 %vm109_vm1, %v2417_v45  ;;  %7937 = vmatprep.subr.mxu1 %v8532_v4  ;;  %v2439_v57 = vpop.permute.xlu1 %2438 }
  0xe9   :  { %7938 = vmatpush3.msra.mxu1 %v2439_v57  ;;  %v2450_v58 = vsel %vm2440_vm6, %v2437_v56, %v2439_v57  ;;  %v2449_v59 = vsel %vm2440_vm6, %v2435_v53, %v2437_v56  ;;  %7939 = vmatprep.mubr.msk.f32.mxu1 %vm8544_vm2, %v8532_v4 }
  0xea   :  { %2748 = vmatprep.subr.mxu0 %v2450_v58 }
  0xeb   :  { %2749 = vmatpush1.msra.mxu0 %v2449_v59 }
  0xec   :  { %v2905_v60 = vpop.permute.xlu0 %2904  ;;  %7650 = vmatmul.mubr.msk.f32.vlgmr.msra.gmra.mrb[4].mxu0 %vm109_vm1, %v2417_v45  ;;  %7940 = vmatmul.mubr.msk.f32.vlgmr.msra.gmra.mrb[14].mxu1 %vm109_vm1, %v2417_v45 }
  0xed   :  { %v2907_v61 = vpop.permute.xlu1 %2906  ;;  %3012 = vmatprep.mubr.f32.mxu0 %v8532_v4  ;;  %3083 = vmatprep.mubr.f32.mxu1 %v8532_v4 }
  0xee   :  { %v2926_v62 = vsel %vm2924_vm7, %v2905_v60, %v2907_v61 }
  0xef   :  { %2948 = vmatprep.subr.mxu0 %v2926_v62 }
  0xf0   :  { %v2903_v63 = vpop.permute.xlu0 %2902 }
  0xf1   :  { %v2925_v13 = vsel %vm2924_vm7, %v2903_v63, %v2905_v60  ;;  %v2909_v14 = vpop.permute.xlu1 %2908 }
  0xf2   :  { %2949 = vmatpush1.msra.mxu0 %v2925_v13  ;;  %v2927_v18 = vsel %vm2924_vm7, %v2907_v61, %v2909_v14  ;;  %v9104_v61 = vld [vmem:[#allocation3] sm:$0xff] }
  0xf3   :  { %4391 = vst.msk [vmem:[#allocation2 + $0x50] sm:$0xff] %vm4390_vm10, %v9104_v61  ;;  %vm5082_vm10 = vcmask 1048216  }
  0xf4   :  { %v2911_v15 = vpop.permute.xlu0 %2910 }
  0xf5   :  { %v2901_v16 = vpop.permute.xlu1 %2900  ;;  %v2928_v17 = vsel %vm2924_vm7, %v2909_v14, %v2911_v15 }
  0xf6   :  { %7652 = vmatmul.mubr.msk.f32.vlgmr.msra.gmra.mrb[0].mxu0 %vm109_vm1, %v2901_v16  ;;  %3019 = vmatprep.subr.mxu1 %v2928_v17 }
  0xf7   :  { %3020 = vmatpush1.msra.mxu1 %v2927_v18  ;;  %3154 = vmatprep.mubr.f32.mxu0 %v8532_v4 }
  0xf8   :  { %v2913_v19 = vpop.permute.xlu0 %2912  ;;  %7653 = vmatmul.mubr.msk.f32.vlgmr.msra.gmra.mrb[0].mxu1 %vm109_vm1, %v2901_v16 }
  0xf9   :  { %v2915_v0 = vpop.permute.xlu1 %2914  ;;  %v2929_v2 = vsel %vm2924_vm7, %v2911_v15, %v2913_v19  ;;  %3225 = vmatprep.mubr.f32.mxu1 %v8532_v4 }
  0xfa   :  { %v2930_v20 = vsel %vm2924_vm7, %v2913_v19, %v2915_v0 }
  0xfb   :  { %3090 = vmatprep.subr.mxu0 %v2930_v20 }
  0xfc   :  { %3091 = vmatpush1.msra.mxu0 %v2929_v2  ;;  %v2917_v21 = vpop.permute.xlu0 %2916 }
  0xfd   :  { %7654 = vmatmul.mubr.msk.f32.vlgmr.msra.gmra.mrb[2].mxu0 %vm109_vm1, %v2901_v16  ;;  %v2919_v1 = vpop.permute.xlu1 %2918  ;;  %v2931_v3 = vsel %vm2924_vm7, %v2915_v0, %v2917_v21 }
  0xfe   :  { %v2932_v22 = vsel %vm2924_vm7, %v2917_v21, %v2919_v1  ;;  %3296 = vmatprep.mubr.f32.mxu0 %v8532_v4 }
  0xff   :  { %3161 = vmatprep.subr.mxu1 %v2932_v22 }
 0x100   :  { %3162 = vmatpush1.msra.mxu1 %v2931_v3  ;;  %v2921_v6 = vpop.permute.xlu0 %2920 }
 0x101   :  { %7655 = vmatmul.mubr.msk.f32.vlgmr.msra.gmra.mrb[2].mxu1 %vm109_vm1, %v2901_v16  ;;  %7942 = vmatprep.subr.mxu1 %v8532_v4  ;;  %v2923_v24 = vpop.permute.xlu1 %2922  ;;  %v2933_v7 = vsel %vm2924_vm7, %v2919_v1, %v2921_v6 }
 0x102   :  { %7943 = vmatpush3.msra.mxu1 %v2923_v24  ;;  %v2934_v8 = vsel %vm2924_vm7, %v2921_v6, %v2923_v24  ;;  %7944 = vmatprep.mubr.msk.f32.mxu1 %vm8544_vm2, %v8532_v4  ;;  %vm4921_vm7 = vcmask 678912  }
 0x103   :  { %3232 = vmatprep.subr.mxu0 %v2934_v8 }
 0x104   :  { %3233 = vmatpush1.msra.mxu0 %v2933_v7  ;;  %v3389_v25 = vpop.permute.xlu0 %3388 }
 0x105   :  { %7656 = vmatmul.mubr.msk.f32.vlgmr.msra.gmra.mrb[4].mxu0 %vm109_vm1, %v2901_v16  ;;  %7945 = vmatmul.mubr.msk.f32.vlgmr.msra.gmra.mrb[16].mxu1 %vm109_vm1, %v2901_v16  ;;  %v3391_v26 = vpop.permute.xlu1 %3390 }
 0x106   :  { %v3410_v27 = vsel %vm3408_vm8, %v3389_v25, %v3391_v26  ;;  %3496 = vmatprep.mubr.f32.mxu0 %v8532_v4  ;;  %3567 = vmatprep.mubr.f32.mxu1 %v8532_v4 }
 0x107   :  { %3432 = vmatprep.subr.mxu0 %v3410_v27 }
 0x10b   :  { %v3387_v9 = vpop.permute.xlu0 %3386 }
 0x10c   :  { %v3409_v10 = vsel %vm3408_vm8, %v3387_v9, %v3389_v25  ;;  %v3393_v28 = vpop.permute.xlu1 %3392 }
 0x10d   :  { %3433 = vmatpush1.msra.mxu0 %v3409_v10  ;;  %v3411_v30 = vsel %vm3408_vm8, %v3391_v26, %v3393_v28 }
 0x110   :  { %v3395_v29 = vpop.permute.xlu0 %3394  ;;  %v3385_v11 = vpop.permute.xlu1 %3384 }
 0x111   :  { %7658 = vmatmul.mubr.msk.f32.vlgmr.msra.gmra.mrb[0].mxu0 %vm109_vm1, %v3385_v11  ;;  %v3412_v12 = vsel %vm3408_vm8, %v3393_v28, %v3395_v29 }
 0x112   :  { %3503 = vmatprep.subr.mxu1 %v3412_v12  ;;  %3638 = vmatprep.mubr.f32.mxu0 %v8532_v4 }
 0x113   :  { %3504 = vmatpush1.msra.mxu1 %v3411_v30 }
 0x114   :  { %v3397_v31 = vpop.permute.xlu0 %3396  ;;  %7659 = vmatmul.mubr.msk.f32.vlgmr.msra.gmra.mrb[0].mxu1 %vm109_vm1, %v3385_v11  ;;  %v3399_v32 = vpop.permute.xlu1 %3398 }
 0x115   :  { %v3414_v33 = vsel %vm3408_vm8, %v3397_v31, %v3399_v32  ;;  %v3413_v34 = vsel %vm3408_vm8, %v3395_v29, %v3397_v31  ;;  %3709 = vmatprep.mubr.f32.mxu1 %v8532_v4 }
 0x116   :  { %3574 = vmatprep.subr.mxu0 %v3414_v33 }
 0x117   :  { %3575 = vmatpush1.msra.mxu0 %v3413_v34 }
 0x118   :  { %v3401_v35 = vpop.permute.xlu0 %3400  ;;  %7660 = vmatmul.mubr.msk.f32.vlgmr.msra.gmra.mrb[2].mxu0 %vm109_vm1, %v3385_v11 }
 0x119   :  { %v3403_v36 = vpop.permute.xlu1 %3402  ;;  %v3415_v37 = vsel %vm3408_vm8, %v3399_v32, %v3401_v35  ;;  %3780 = vmatprep.mubr.f32.mxu0 %v8532_v4 }
 0x11a   :  { %v3416_v38 = vsel %vm3408_vm8, %v3401_v35, %v3403_v36 }
 0x11b   :  { %3645 = vmatprep.subr.mxu1 %v3416_v38 }
 0x11c   :  { %3646 = vmatpush1.msra.mxu1 %v3415_v37 }
 0x11d   :  { %v3405_v39 = vpop.permute.xlu0 %3404  ;;  %7661 = vmatmul.mubr.msk.f32.vlgmr.msra.gmra.mrb[2].mxu1 %vm109_vm1, %v3385_v11  ;;  %7947 = vmatprep.subr.mxu1 %v8532_v4  ;;  %v3407_v40 = vpop.permute.xlu1 %3406 }
 0x11e   :  { %7948 = vmatpush3.msra.mxu1 %v3407_v40  ;;  %v3418_v41 = vsel %vm3408_vm8, %v3405_v39, %v3407_v40  ;;  %v3417_v42 = vsel %vm3408_vm8, %v3403_v36, %v3405_v39  ;;  %7949 = vmatprep.mubr.msk.f32.mxu1 %vm8544_vm2, %v8532_v4  ;;  %vm4754_vm8 = vcmask 908376  }
 0x11f   :  { %3716 = vmatprep.subr.mxu0 %v3418_v41 }
 0x120   :  { %3717 = vmatpush1.msra.mxu0 %v3417_v42 }
 0x121   :  { %v3873_v43 = vpop.permute.xlu0 %3872  ;;  %7662 = vmatmul.mubr.msk.f32.vlgmr.msra.gmra.mrb[4].mxu0 %vm109_vm1, %v3385_v11  ;;  %7950 = vmatmul.mubr.msk.f32.vlgmr.msra.gmra.mrb[18].mxu1 %vm109_vm1, %v3385_v11  ;;  %v3875_v44 = vpop.permute.xlu1 %3874 }
 0x122   :  { %v3894_v45 = vsel %vm3892_vm9, %v3873_v43, %v3875_v44  ;;  %3980 = vmatprep.mubr.f32.mxu0 %v8532_v4  ;;  %4051 = vmatprep.mubr.f32.mxu1 %v8532_v4 }
 0x123   :  { %3916 = vmatprep.subr.mxu0 %v3894_v45 }
 0x125   :  { %v3871_v46 = vpop.permute.xlu0 %3870  ;;  %v3877_v47 = vpop.permute.xlu1 %3876 }
 0x126   :  { %v3893_v48 = vsel %vm3892_vm9, %v3871_v46, %v3873_v43  ;;  %v3895_v52 = vsel %vm3892_vm9, %v3875_v44, %v3877_v47 }
 0x127   :  { %3917 = vmatpush1.msra.mxu0 %v3893_v48 }
 0x129   :  { %v3879_v49 = vpop.permute.xlu0 %3878  ;;  %v3869_v50 = vpop.permute.xlu1 %3868 }
 0x12a   :  { %7664 = vmatmul.mubr.msk.f32.vlgmr.msra.gmra.mrb[0].mxu0 %vm109_vm1, %v3869_v50  ;;  %v3896_v51 = vsel %vm3892_vm9, %v3877_v47, %v3879_v49 }
 0x12b   :  { %3987 = vmatprep.subr.mxu1 %v3896_v51  ;;  %4122 = vmatprep.mubr.f32.mxu0 %v8532_v4 }
 0x12c   :  { %3988 = vmatpush1.msra.mxu1 %v3895_v52 }
 0x12d   :  { %v3881_v53 = vpop.permute.xlu0 %3880  ;;  %7665 = vmatmul.mubr.msk.f32.vlgmr.msra.gmra.mrb[0].mxu1 %vm109_vm1, %v3869_v50  ;;  %v3883_v54 = vpop.permute.xlu1 %3882 }
 0x12e   :  { %v3898_v55 = vsel %vm3892_vm9, %v3881_v53, %v3883_v54  ;;  %v3897_v56 = vsel %vm3892_vm9, %v3879_v49, %v3881_v53  ;;  %4193 = vmatprep.mubr.f32.mxu1 %v8532_v4 }
 0x12f   :  { %4058 = vmatprep.subr.mxu0 %v3898_v55 }
 0x130   :  { %4059 = vmatpush1.msra.mxu0 %v3897_v56 }
 0x131   :  { %v3885_v57 = vpop.permute.xlu0 %3884  ;;  %7666 = vmatmul.mubr.msk.f32.vlgmr.msra.gmra.mrb[2].mxu0 %vm109_vm1, %v3869_v50  ;;  %v3887_v58 = vpop.permute.xlu1 %3886 }
 0x132   :  { %v3900_v59 = vsel %vm3892_vm9, %v3885_v57, %v3887_v58  ;;  %v3899_v60 = vsel %vm3892_vm9, %v3883_v54, %v3885_v57  ;;  %4264 = vmatprep.mubr.f32.mxu0 %v9104_v61 }
 0x133   :  { %4129 = vmatprep.subr.mxu1 %v3900_v59 }
 0x134   :  { %4130 = vmatpush1.msra.mxu1 %v3899_v60 }
 0x135   :  { %v3889_v62 = vpop.permute.xlu0 %3888  ;;  %7667 = vmatmul.mubr.msk.f32.vlgmr.msra.gmra.mrb[2].mxu1 %vm109_vm1, %v3869_v50  ;;  %v3891_v4 = vpop.permute.xlu1 %3890  ;;  %7952 = vmatprep.subr.mxu1 %v9104_v61 }
 0x136   :  { %v3902_v63 = vsel %vm3892_vm9, %v3889_v62, %v3891_v4  ;;  %v3901_v13 = vsel %vm3892_vm9, %v3887_v58, %v3889_v62  ;;  %7953 = vmatpush3.msra.mxu1 %v3891_v4  ;;  %7954 = vmatprep.mubr.msk.f32.mxu1 %vm8544_vm2, %v9104_v61  ;;  %v4577_v4 = vld [vmem:[%s10187_s4 + $0x80] sm:$0xff]  ;;  %vm4919_vm9 = vcmask 1048440  }
 0x137   :  { %4200 = vmatprep.subr.mxu0 %v3902_v63  ;;  %v4578_v63 = vld [vmem:[%s10187_s4 + $0x88] sm:$0xff] }
 0x138   :  { %4201 = vmatpush1.msra.mxu0 %v3901_v13  ;;  %v4593_v13 = vld [vmem:[%s10187_s4 + $0x100] sm:$0xff] }
 0x139   :  { %7668 = vmatmul.mubr.msk.f32.vlgmr.msra.gmra.mrb[4].mxu0 %vm109_vm1, %v3869_v50  ;;  %7955 = vmatmul.mubr.msk.f32.vlgmr.msra.gmra.mrb[20].mxu1 %vm109_vm1, %v3869_v50 }
 0x13a   :  { %7975 = vmatprep.mubr.msk.f32.mxu1 %vm8544_vm2, %v9104_v61 }
 0x146   :  { %v4356_v10 = vpop.permute.xlu0 %4355 }
 0x15f   :  { %v533_v14 = vpop.f32.mrb[4].mxu1 }
 0x160   :  { %v7916_v15 = vpop.f32.mrb[5].mxu1 }
 0x161   :  { %v9178_v15 = vpack.c.bf16 %v4578_v63, %v4577_v4 }
 0x163   :  { %8042 = vmatprep.subr.bf16.mxu0 %v9178_v15 }
 0x16f   :  { %v960_v16 = vpop.f32.mrb[6].mxu1 }
 0x170   :  { %v961_v17 = vadd.f32 %v960_v16, %v533_v14  ;;  %v7921_v18 = vpop.f32.mrb[7].mxu1  ;;  %v8550_v14 = vmov 0.0|0.0   ;;  %v4594_v16 = vld [vmem:[%s10187_s4 + $0x108] sm:$0xff] }
 0x171   :  { %8073 = vmatprep.subr.bf16.mxu1 %v8550_v14  ;;  %v4562_v18 = vld [vmem:[%s10187_s4 + $0x8] sm:$0xff] }
 0x17d   :  { %v1433_v19 = vpop.f32.mrb[8].mxu1 }
 0x17e   :  { %v1447_v0 = vadd.f32 %v1433_v19, %v961_v17  ;;  %v7926_v2 = vpop.f32.mrb[9].mxu1  ;;  %v4561_v17 = vld [vmem:[%s10187_s4] sm:$0xff]  ;;  %v9192_v19 = vpack.c.bf16 %v4594_v16, %v4593_v13 }
 0x17f   :  { %v4579_v2 = vld [vmem:[%s10187_s4 + $0x90] sm:$0xff] }
 0x180   :  { %8075 = vmatpush3.bf16.msra.mxu1 %v9192_v19 }
 0x181   :  { %8076 = vmatprep.subr.bf16.mxu1 %v8550_v14 }
 0x190   :  { %v1917_v20 = vpop.f32.mrb[10].mxu1 }
 0x191   :  { %v1931_v21 = vadd.f32 %v1917_v20, %v1447_v0  ;;  %v7931_v1 = vpop.f32.mrb[11].mxu1  ;;  %v9194_v0 = vpack.c.bf16 %v4562_v18, %v4561_v17  ;;  %v4580_v20 = vld [vmem:[%s10187_s4 + $0x98] sm:$0xff] }
 0x192   :  { %v9206_v1 = vpack.c.bf16 %v4580_v20, %v4579_v2  ;;  %v4588_v17 = vld [vmem:[%s10187_s4 + $0xd8] sm:$0xff]  ;;  %v4571_v20 = vld [vmem:[%s10187_s4 + $0x50] sm:$0xff] }
 0x193   :  { %8044 = vmatpush3.bf16.msra.mxu0 %v9194_v0 }
 0x194   :  { %8046 = vmatprep.subr.bf16.mxu0 %v9206_v1 }
 0x1a7   :  { %v2401_v3 = vpop.f32.mrb[12].mxu1 }
 0x1a8   :  { %v2415_v22 = vadd.f32 %v2401_v3, %v1931_v21  ;;  %v7936_v23 = vpop.f32.mrb[13].mxu1  ;;  %v4595_v21 = vld [vmem:[%s10187_s4 + $0x110] sm:$0xff]  ;;  %v4596_v3 = vld [vmem:[%s10187_s4 + $0x118] sm:$0xff] }
 0x1a9   :  { %v4564_v23 = vld [vmem:[%s10187_s4 + $0x18] sm:$0xff] }
 0x1bf   :  { %v2885_v5 = vpop.f32.mrb[14].mxu1 }
 0x1c0   :  { %v2899_v6 = vadd.f32 %v2885_v5, %v2415_v22  ;;  %v7941_v24 = vpop.f32.mrb[15].mxu1  ;;  %v4563_v22 = vld [vmem:[%s10187_s4 + $0x10] sm:$0xff]  ;;  %v9219_v5 = vpack.c.bf16 %v4596_v3, %v4595_v21  ;;  %v4572_v21 = vld [vmem:[%s10187_s4 + $0x58] sm:$0xff] }
 0x1c1   :  { %v4581_v24 = vld [vmem:[%s10187_s4 + $0xa0] sm:$0xff]  ;;  %v9350_v3 = vpack.c.bf16 %v4572_v21, %v4571_v20 }
 0x1c2   :  { %8078 = vmatpush3.bf16.msra.mxu1 %v9219_v5 }
 0x1c3   :  { %8079 = vmatprep.subr.bf16.mxu1 %v8550_v14 }
 0x1d8   :  { %v3369_v7 = vpop.f32.mrb[16].mxu1 }
 0x1d9   :  { %v3383_v8 = vadd.f32 %v3369_v7, %v2899_v6  ;;  %v7946_v25 = vpop.f32.mrb[17].mxu1  ;;  %v9221_v6 = vpack.c.bf16 %v4564_v23, %v4563_v22  ;;  %v4582_v7 = vld [vmem:[%s10187_s4 + $0xa8] sm:$0xff]  ;;  %v4573_v23 = vld [vmem:[%s10187_s4 + $0x60] sm:$0xff] }
 0x1da   :  { %v9234_v25 = vpack.c.bf16 %v4582_v7, %v4581_v24  ;;  %v4590_v22 = vld [vmem:[%s10187_s4 + $0xe8] sm:$0xff] }
 0x1db   :  { %8048 = vmatpush3.bf16.msra.mxu0 %v9221_v6  ;;  %v4574_v7 = vld [vmem:[%s10187_s4 + $0x68] sm:$0xff] }
 0x1dc   :  { %8050 = vmatprep.subr.bf16.mxu0 %v9234_v25 }
 0x1f4   :  { %v3853_v26 = vpop.f32.mrb[18].mxu1 }
 0x1f5   :  { %v3867_v27 = vadd.f32 %v3853_v26, %v3383_v8  ;;  %v7951_v9 = vpop.f32.mrb[19].mxu1  ;;  %v4597_v8 = vld [vmem:[%s10187_s4 + $0x120] sm:$0xff]  ;;  %v4598_v26 = vld [vmem:[%s10187_s4 + $0x128] sm:$0xff] }
 0x1f6   :  { %v4566_v9 = vld [vmem:[%s10187_s4 + $0x28] sm:$0xff] }
 0x1fd   :  { %v3982_v28 = vpop.f32.mrb[0].mxu0 }
 0x1fe   :  { %v4358_v29 = vadd.f32 %v4356_v10, %v3982_v28  ;;  %v3984_v11 = vpop.f32.mrb[1].mxu0 }
 0x1ff   :  { %v4359_v12 = vadd.f32 %v4356_v10, %v3984_v11  ;;  %v4583_v11 = vld [vmem:[%s10187_s4 + $0xb0] sm:$0xff] }
 0x200   :  { %v9118_v30 = vmax.f32 %v4358_v29, 0.0  ;;  %v4053_v31 = vpop.f32.mrb[0].mxu1 }
 0x201   :  { %v9120_v32 = vmax.f32 %v4359_v12, 0.0  ;;  %v4360_v33 = vadd.f32 %v4356_v10, %v4053_v31  ;;  %v4055_v34 = vpop.f32.mrb[1].mxu1  ;;  %v4584_v12 = vld [vmem:[%s10187_s4 + $0xb8] sm:$0xff]  ;;  %v4599_v31 = vld [vmem:[%s10187_s4 + $0x130] sm:$0xff] }
 0x202   :  { %4392 = vst [vmem:[#allocation2] sm:$0xff] %v9118_v30  ;;  %v4361_v35 = vadd.f32 %v4356_v10, %v4055_v34  ;;  %v4600_v34 = vld [vmem:[%s10187_s4 + $0x138] sm:$0xff] }
 0x203   :  { %4393 = vst [vmem:[#allocation2 + $0x8] sm:$0xff] %v9120_v32  ;;  %v9124_v36 = vmax.f32 %v4360_v33, 0.0  ;;  %v8401_v62 = vpack.i.bf16 %v9118_v30, %v9120_v32  ;;  %v9269_v33 = vpack.c.bf16 %v4584_v12, %v4583_v11 }
 0x204   :  { %v9126_v37 = vmax.f32 %v4361_v35, 0.0  ;;  %v4124_v38 = vpop.f32.mrb[2].mxu0  ;;  %v4567_v35 = vld [vmem:[%s10187_s4 + $0x30] sm:$0xff] }
 0x205   :  { %4394 = vst [vmem:[#allocation2 + $0x10] sm:$0xff] %v9124_v36  ;;  %v4362_v39 = vadd.f32 %v4356_v10, %v4124_v38  ;;  %v4126_v40 = vpop.f32.mrb[3].mxu0  ;;  %v4568_v38 = vld [vmem:[%s10187_s4 + $0x38] sm:$0xff] }
 0x206   :  { %4395 = vst [vmem:[#allocation2 + $0x18] sm:$0xff] %v9126_v37  ;;  %v4363_v41 = vadd.f32 %v4356_v10, %v4126_v40  ;;  %4432 = vrot.lane.b32.xlu1 %v9126_v37, %s8531_s21  ;;  %v9282_v40 = vpack.c.bf16 %v4568_v38, %v4567_v35 }
 0x207   :  { %v9132_v42 = vmax.f32 %v4362_v39, 0.0  ;;  %v9280_v39 = vpack.c.bf16 %v4600_v34, %v4599_v31  ;;  %v4591_v31 = vld [vmem:[%s10187_s4 + $0xf0] sm:$0xff]  ;;  %v4592_v34 = vld [vmem:[%s10187_s4 + $0xf8] sm:$0xff] }
 0x208   :  { %v9134_v43 = vmax.f32 %v4363_v41, 0.0  ;;  %v4195_v44 = vpop.f32.mrb[2].mxu1  ;;  %v9388_v38 = vpack.c.bf16 %v4592_v34, %v4591_v31 }
 0x209   :  { %4396 = vst [vmem:[#allocation2 + $0x20] sm:$0xff] %v9132_v42  ;;  %v4364_v45 = vadd.f32 %v4356_v10, %v4195_v44  ;;  %v4197_v46 = vpop.f32.mrb[3].mxu1  ;;  %v4585_v44 = vld [vmem:[%s10187_s4 + $0xc0] sm:$0xff] }
 0x20a   :  { %4397 = vst [vmem:[#allocation2 + $0x28] sm:$0xff] %v9134_v43  ;;  %4434 = vrot.lane.b32.xlu1 %v9132_v42, %s8531_s21  ;;  %4436 = vrot.lane.b32.xlu0 %v9134_v43, %s8531_s21  ;;  %v4365_v52 = vadd.f32 %v4356_v10, %v4197_v46  ;;  %v9297_v46 = vld [vmem:[%s10187_s4 + $0x140] sm:$0xf] }
 0x20b   :  { %v9140_v47 = vmax.f32 %v4364_v45, 0.0  ;;  %v4586_v45 = vld [vmem:[%s10187_s4 + $0xc8] sm:$0xff] }
 0x20c   :  { %v4266_v48 = vpop.f32.mrb[4].mxu0  ;;  %v4337_v49 = vpop.f32.mrb[20].mxu1  ;;  %v9149_v53 = vmax.f32 %v4365_v52, 0.0 }
 0x20d   :  { %4398 = vst [vmem:[#allocation2 + $0x30] sm:$0xff] %v9140_v47  ;;  %v4268_v50 = vpop.f32.mrb[5].mxu0  ;;  %v7956_v51 = vpop.f32.mrb[21].mxu1  ;;  %v4366_v54 = vadd.f32 %v4356_v10, %v4266_v48  ;;  %v4351_v56 = vadd.f32 %v4337_v49, %v3867_v27  ;;  %v4565_v27 = vld [vmem:[%s10187_s4 + $0x20] sm:$0xff]  ;;  %v9299_v49 = vpack.c.bf16 %v4586_v45, %v4585_v44  ;;  %v4576_v44 = vld [vmem:[%s10187_s4 + $0x78] sm:$0xff] }
 0x20e   :  { %4438 = vrot.lane.b32.xlu1 %v9140_v47, %s8531_s21  ;;  %4430 = vrot.lane.b32.xlu0 %v9124_v36, %s8531_s21  ;;  %4399 = vst [vmem:[#allocation2 + $0x38] sm:$0xff] %v9149_v53  ;;  %v4367_v57 = vadd.f32 %v4356_v10, %v4268_v50  ;;  %v9249_v28 = vpack.c.bf16 %v4566_v9, %v4565_v27  ;;  %v4569_v50 = vld [vmem:[%s10187_s4 + $0x40] sm:$0xff]  ;;  %v4570_v51 = vld [vmem:[%s10187_s4 + $0x48] sm:$0xff] }
 0x20f   :  { %v9154_v55 = vmax.f32 %v4366_v54, 0.0  ;;  %v4368_v58 = vadd.f32 %v4356_v10, %v4351_v56  ;;  %v9247_v10 = vpack.c.bf16 %v4598_v26, %v4597_v8  ;;  %v9310_v56 = vpack.c.bf16 %v4570_v51, %v4569_v50 }
 0x210   :  { %v9159_v59 = vmax.f32 %v4367_v57, 0.0  ;;  %8052 = vmatpush3.bf16.msra.mxu0 %v9249_v28  ;;  %v9370_v26 = vpack.c.bf16 %v4574_v7, %v4573_v23 }
 0x211   :  { %4400 = vst [vmem:[#allocation2 + $0x40] sm:$0xff] %v9154_v55  ;;  %v9161_v60 = vmax.f32 %v4368_v58, 0.0  ;;  %8081 = vmatpush3.bf16.msra.mxu1 %v9247_v10  ;;  %8054 = vmatprep.subr.bf16.mxu0 %v9269_v33 }
 0x212   :  { %4440 = vrot.lane.b32.xlu1 %v9149_v53, %s8531_s21  ;;  %4442 = vrot.lane.b32.xlu0 %v9154_v55, %s8531_s21  ;;  %4401 = vst [vmem:[#allocation2 + $0x48] sm:$0xff] %v9159_v59 }
 0x213   :  { %4403 = vst.msk [vmem:[#allocation2 + $0x50] sm:$0xff] %vm4402_vm11, %v9161_v60  ;;  %8082 = vmatprep.subr.bf16.mxu1 %v8550_v14 }
 0x214   :  { %8056 = vmatpush3.bf16.msra.mxu0 %v9282_v40 }
 0x215   :  { %8084 = vmatpush3.bf16.msra.mxu1 %v9280_v39  ;;  %8058 = vmatprep.subr.bf16.mxu0 %v9299_v49 }
 0x216   :  { %4444 = vrot.lane.b32.xlu1 %v9159_v59, %s8531_s21  ;;  %8402 = vrot.lane.b32.xlu0 %v8401_v62, %s8531_s21 }
 0x217   :  { %7973 = vmatprep.subr.mxu1 %v9104_v61 }
 0x218   :  { %8060 = vmatpush3.bf16.msra.mxu0 %v9310_v56 }
 0x219   :  { %7974 = vmatpush3.msk.msra.mxu1 %vm4606_vm12, %v9297_v46 }
 0x21a   :  { %v9251_v29 = vld [vmem:[#allocation2 + $0x50] sm:$0xff]  ;;  %8086 = vmatprep.subr.bf16.mxu1 %v9178_v15 }
 0x21b   :  { %4446 = vrot.lane.b32.xlu1 %v9251_v29, %s8531_s21 }
 0x278   :  { %v4433_v41 = vpop.permute.xlu1 %4432 }
 0x27c   :  { %v4435_v48 = vpop.permute.xlu1 %4434  ;;  %v4437_v52 = vpop.permute.xlu0 %4436 }
 0x27d   :  { %v4451_v54 = vsel %vm87_vm0, %v4433_v41, %v4435_v48  ;;  %v4452_v57 = vsel %vm87_vm0, %v4435_v48, %v4437_v52 }
 0x27e   :  { %v9314_v58 = vmax.f32 %v9126_v37, %v4451_v54  ;;  %v9319_v62 = vmax.f32 %v9132_v42, %v4452_v57  ;;  %v4587_v42 = vld [vmem:[%s10187_s4 + $0xd0] sm:$0xff] }
 0x27f   :  { %v9340_v2 = vpack.c.bf16 %v4588_v17, %v4587_v42 }
 0x280   :  { %4508 = vrot.lane.b32.xlu0 %v9314_v58, %s8536_s26  ;;  %v4439_v4 = vpop.permute.xlu1 %4438  ;;  %v4431_v63 = vpop.permute.xlu0 %4430  ;;  %4510 = vrot.lane.b32.xlu1 %v9319_v62, %s8536_s26 }
 0x281   :  { %v4453_v37 = vsel %vm87_vm0, %v4437_v52, %v4439_v4  ;;  %v4450_v13 = vsel %vm87_vm0, %v4431_v63, %v4433_v41  ;;  %8062 = vmatprep.subr.bf16.mxu0 %v9340_v2  ;;  %v4575_v41 = vld [vmem:[%s10187_s4 + $0x70] sm:$0xff] }
 0x282   :  { %v9329_v16 = vmax.f32 %v9134_v43, %v4453_v37  ;;  %v9338_v18 = vmax.f32 %v9124_v36, %v4450_v13  ;;  %v4589_v36 = vld [vmem:[%s10187_s4 + $0xe0] sm:$0xff]  ;;  %8064 = vmatpush3.bf16.msra.mxu0 %v9350_v3  ;;  %v9396_v48 = vpack.c.bf16 %v4576_v44, %v4575_v41  ;;  %s8551_s4 = smov 60  }
 0x283   :  { %v9364_v24 = vpack.c.bf16 %v4590_v22, %v4589_v36 }
 0x284   :  { %4512 = vrot.lane.b32.xlu0 %v9329_v16, %s8536_s26  ;;  %4506 = vrot.lane.b32.xlu1 %v9338_v18, %s8536_s26  ;;  %v4441_v8 = vpop.permute.xlu1 %4440  ;;  %v4443_v11 = vpop.permute.xlu0 %4442 }
 0x285   :  { %v4454_v27 = vsel %vm87_vm0, %v4439_v4, %v4441_v8  ;;  %8066 = vmatprep.subr.bf16.mxu0 %v9364_v24  ;;  %v4455_v12 = vsel %vm87_vm0, %v4441_v8, %v4443_v11 }
 0x286   :  { %v9375_v9 = vmax.f32 %v9140_v47, %v4454_v27  ;;  %8068 = vmatpush3.bf16.msra.mxu0 %v9370_v26  ;;  %v4476_v35 = vmax.f32 %v9149_v53, %v4455_v12 }
 0x287   :  { %8070 = vmatprep.subr.bf16.mxu0 %v9388_v38 }
 0x288   :  { %4514 = vrot.lane.b32.xlu0 %v9375_v9, %s8536_s26  ;;  %v4445_v45 = vpop.permute.xlu1 %4444  ;;  %v8403_v50 = vpop.permute.xlu0 %8402  ;;  %4516 = vrot.lane.b32.xlu1 %v4476_v35, %s8536_s26 }
 0x289   :  { %v4456_v51 = vsel %vm87_vm0, %v4443_v11, %v4445_v45  ;;  %v8405_v52 = vunpack.i.h.bf16 %v8403_v50  ;;  %v8404_v54 = vunpack.i.l.bf16 %v8403_v50 }
 0x28a   :  { %v9402_v57 = vmax.f32 %v9154_v55, %v4456_v51  ;;  %8072 = vmatpush3.bf16.msra.mxu0 %v9396_v48 }
 0x28b   :  { %8117 = vmatprep.subr.bf16.mxu0 %v8550_v14  ;;  %v4448_v4 = vsel %vm87_vm0, %v8405_v52, %v8404_v54  ;;  %v4449_v37 = vsel %vm87_vm0, %v8404_v54, %v4431_v63 }
 0x28c   :  { %4518 = vrot.lane.b32.xlu0 %v9402_v57, %s8536_s26  ;;  %v9411_v13 = vmax.f32 %v9118_v30, %v4448_v4  ;;  %v4481_v42 = vmax.f32 %v9120_v32, %v4449_v37 }
 0x28d   :  { %v9415_v20 = vpop.permute.xlu1 %4446 }
 0x28e   :  { %v8406_v17 = vpack.i.bf16 %v9411_v13, %v4481_v42  ;;  %v4457_v21 = vsel %vm87_vm0, %v4445_v45, %v9415_v20  ;;  %v4490_v63 = vmax.f32 %v9251_v29, %v9415_v20 }
 0x28f   :  { %v4489_v36 = vmax.f32 %v9159_v59, %v4457_v21 }
 0x290   :  { %8407 = vrot.lane.b32.xlu1 %v8406_v17, %s8536_s26 }
 0x291   :  { %4520 = vrot.lane.b32.xlu0 %v4489_v36, %s8536_s26 }
 0x294   :  { %4522 = vrot.lane.b32.xlu1 %v4490_v63, %s8536_s26  ;;  %s8552_s26 = smov 52  }
 0x2f2   :  { %v4509_v30 = vpop.permute.xlu0 %4508  ;;  %v4511_v32 = vpop.permute.xlu1 %4510 }
 0x2f3   :  { %v4527_v22 = vsel %vm1472_vm4, %v4509_v30, %v4511_v32 }
 0x2f4   :  { %v4548_v12 = vmax.f32 %v9314_v58, %v4527_v22 }
 0x2f6   :  { %v4513_v23 = vpop.permute.xlu0 %4512  ;;  %v4507_v8 = vpop.permute.xlu1 %4506 }
 0x2f7   :  { %v4528_v7 = vsel %vm1472_vm4, %v4511_v32, %v4513_v23  ;;  %v4526_v11 = vsel %vm1472_vm4, %v4507_v8, %v4509_v30 }
 0x2f8   :  { %v4549_v27 = vmax.f32 %v9319_v62, %v4528_v7  ;;  %v4547_v29 = vmax.f32 %v9338_v18, %v4526_v11 }
 0x2fa   :  { %4763 = vrot.lane.b32.xlu1 %v4549_v27, %s8551_s4  ;;  %v8411_v31 = vpack.i.bf16 %v4547_v29, %v4548_v12  ;;  %7976 = vmatmul.mubr.msk.f32.vlgmr.msra.gmra.mrb[22].mxu1 %vm4602_vm13, %v4547_v29  ;;  %v4515_v34 = vpop.permute.xlu0 %4514  ;;  %v4517_v44 = vpop.permute.xlu1 %4516 }
 0x2fb   :  { %8088 = vmatpush3.bf16.msra.mxu1 %v9194_v0  ;;  %v4529_v41 = vsel %vm1472_vm4, %v4513_v23, %v4515_v34  ;;  %v4530_v58 = vsel %vm1472_vm4, %v4515_v34, %v4517_v44 }
 0x2fc   :  { %8412 = vrot.lane.b32.xlu0 %v8411_v31, %s8551_s4  ;;  %8090 = vmatprep.subr.bf16.mxu1 %v9206_v1  ;;  %v4550_v62 = vmax.f32 %v9329_v16, %v4529_v41  ;;  %v4551_v18 = vmax.f32 %v9375_v9, %v4530_v58 }
 0x2fe   :  { %v4519_v45 = vpop.permute.xlu0 %4518  ;;  %v8416_v50 = vpack.i.bf16 %v4550_v62, %v4551_v18 }
 0x2ff   :  { %8092 = vmatpush3.bf16.msra.mxu1 %v9221_v6  ;;  %v4531_v51 = vsel %vm1472_vm4, %v4517_v44, %v4519_v45 }
 0x300   :  { %4765 = vrot.lane.b32.xlu0 %v4550_v62, %s8551_s4  ;;  %8094 = vmatprep.subr.bf16.mxu1 %v9234_v25  ;;  %v4552_v52 = vmax.f32 %v4476_v35, %v4531_v51 }
 0x302   :  { %4929 = vrot.lane.b32.xlu1 %v4552_v52, %s8533_s30  ;;  %v8408_v16 = vpop.permute.xlu1 %8407 }
 0x303   :  { %8096 = vmatpush3.bf16.msra.mxu1 %v9249_v28  ;;  %v8410_v54 = vunpack.i.h.bf16 %v8408_v16  ;;  %v8409_v4 = vunpack.i.l.bf16 %v8408_v16  ;;  %v4521_v35 = vpop.permute.xlu0 %4520 }
 0x304   :  { %8417 = vrot.lane.b32.xlu0 %v8416_v50, %s8533_s30  ;;  %8098 = vmatprep.subr.bf16.mxu1 %v9269_v33  ;;  %v4532_v30 = vsel %vm1472_vm4, %v4519_v45, %v4521_v35 }
 0x305   :  { %v4524_v9 = vsel %vm1472_vm4, %v8410_v54, %v8409_v4  ;;  %v4525_v37 = vsel %vm1472_vm4, %v8409_v4, %v4507_v8  ;;  %v4553_v22 = vmax.f32 %v9402_v57, %v4532_v30 }
 0x306   :  { %v4545_v17 = vmax.f32 %v9411_v13, %v4524_v9  ;;  %v4523_v21 = vpop.permute.xlu1 %4522  ;;  %v4546_v63 = vmax.f32 %v4481_v42, %v4525_v37  ;;  %v4479_v13 = vmax.f32 %v9161_v60, %v9415_v20 }
 0x307   :  { %8100 = vmatpush3.bf16.msra.mxu1 %v9282_v40  ;;  %v4533_v32 = vsel %vm1472_vm4, %v4521_v35, %v4523_v21  ;;  %v8421_v7 = vpack.i.bf16 %v4552_v52, %v4553_v22  ;;  %vm5097_vm4 = vcmask 424960  }
 0x308   :  { %8102 = vmatprep.subr.bf16.mxu1 %v9299_v49  ;;  %v4554_v23 = vmax.f32 %v4489_v36, %v4533_v32  ;;  %4674 = vmatprep.mubr.f32.mxu0 %v4546_v63  ;;  %v4555_v57 = vmax.f32 %v4479_v13, %v4523_v21 }
 0x309   :  { %4675 = vmatmul.mubr.f32.vlgmr.msra.gmra.mrb[6].mxu0 %v4545_v17  ;;  %8422 = vrot.lane.b32.xlu1 %v8421_v7, %s8552_s26  ;;  %v9557_v17 = vld [vmem:[%s10188_s5 + $0x8] sm:$0xff] }
 0x30a   :  { %5093 = vrot.lane.b32.xlu0 %v4554_v23, %s8552_s26  ;;  %8119 = vmatpush3.bf16.msra.mxu0 %v9192_v19 }
 0x30b   :  { %8104 = vmatpush3.bf16.msra.mxu1 %v9310_v56  ;;  %8120 = vmatprep.subr.bf16.mxu0 %v8550_v14 }
 0x30c   :  { %8106 = vmatprep.subr.bf16.mxu1 %v9340_v2  ;;  %7996 = vmatprep.mubr.msk.f32.mxu0 %vm8544_vm2, %v9104_v61 }
 0x30d   :  { %5095 = vrot.lane.b32.xlu1 %v4555_v57, %s8552_s26  ;;  %v9603_v57 = vmul.f32 %v9134_v43, %v9134_v43  ;;  %v7027_v43 = vmul.f32 %v9140_v47, %v9140_v47 }
 0x30e   :  { %8122 = vmatpush3.bf16.msra.mxu0 %v9219_v5 }
 0x30f   :  { %8108 = vmatpush3.bf16.msra.mxu1 %v9350_v3  ;;  %8123 = vmatprep.subr.bf16.mxu0 %v8550_v14 }
 0x310   :  { %8110 = vmatprep.subr.bf16.mxu1 %v9364_v24 }
 0x312   :  { %8125 = vmatpush3.bf16.msra.mxu0 %v9247_v10 }
 0x313   :  { %8112 = vmatpush3.bf16.msra.mxu1 %v9370_v26  ;;  %8126 = vmatprep.subr.bf16.mxu0 %v8550_v14 }
 0x314   :  { %8114 = vmatprep.subr.bf16.mxu1 %v9388_v38 }
 0x316   :  { %8128 = vmatpush3.bf16.msra.mxu0 %v9280_v39 }
 0x317   :  { %8116 = vmatpush3.bf16.msra.mxu1 %v9396_v48  ;;  %7994 = vmatprep.subr.mxu0 %v9104_v61 }
 0x318   :  { %8161 = vmatprep.subr.bf16.mxu1 %v8550_v14 }
 0x31a   :  { %7995 = vmatpush3.msk.msra.mxu0 %vm4606_vm12, %v9297_v46 }
 0x31b   :  { %8130 = vmatprep.subr.bf16.mxu0 %v9178_v15 }
 0x36c   :  { %v4764_v8 = vpop.permute.xlu1 %4763 }
 0x36e   :  { %v8413_v42 = vpop.permute.xlu0 %8412 }
 0x36f   :  { %v8415_v20 = vunpack.i.h.bf16 %v8413_v42  ;;  %v8414_v36 = vunpack.i.l.bf16 %v8413_v42 }
 0x371   :  { %v4769_v27 = vsel %vm4767_vm14, %v8414_v36, %v4764_v8  ;;  %v4768_v11 = vsel %vm4767_vm14, %v8415_v20, %v8414_v36  ;;  %v7028_v36 = vmul.f32 %v9149_v53, %v9149_v53 }
 0x372   :  { %v4766_v12 = vpop.permute.xlu0 %4765  ;;  %4839 = vmatprep.mubr.f32.mxu1 %v4769_v27  ;;  %v7040_v27 = vrot.slane %v7027_v43, 4 }
 0x373   :  { %v4770_v29 = vsel %vm4767_vm14, %v4764_v8, %v4766_v12  ;;  %4840 = vmatmul.mubr.f32.vlgmr.msra.gmra.mrb[24].mxu1 %v4768_v11  ;;  %vm5251_vm14 = vcmask 220160   ;;  %v7046_v11 = vrot.slane %v7028_v36, 4  ;;  %v7029_v12 = vmul.f32 %v9154_v55, %v9154_v55 }
 0x374   :  { %8163 = vmatpush3.bf16.msra.mxu1 %v9192_v19  ;;  %7997 = vmatmul.mubr.msk.f32.vlgmr.msra.gmra.mrb[8].mxu0 %vm4602_vm13, %v4770_v29  ;;  %v4930_v41 = vpop.permute.xlu1 %4929  ;;  %v7041_v29 = vadd.f32 %v7040_v27, %v7027_v43  ;;  %v7538_v27 = vld [vmem:[%s10193_s10] sm:$0xff] }
 0x375   :  { %8132 = vmatpush3.bf16.msra.mxu0 %v9194_v0  ;;  %8164 = vmatprep.subr.bf16.mxu1 %v8550_v14  ;;  %v7052_v53 = vrot.slane %v7029_v12, 4 }
 0x376   :  { %v8418_v31 = vpop.permute.xlu0 %8417  ;;  %8134 = vmatprep.subr.bf16.mxu0 %v9206_v1  ;;  %8017 = vmatprep.mubr.msk.f32.mxu1 %vm8544_vm2, %v9104_v61 }
 0x377   :  { %v8419_v34 = vunpack.i.l.bf16 %v8418_v31 }
 0x378   :  { %8166 = vmatpush3.bf16.msra.mxu1 %v9219_v5 }
 0x379   :  { %8136 = vmatpush3.bf16.msra.mxu0 %v9221_v6  ;;  %8167 = vmatprep.subr.bf16.mxu1 %v8550_v14  ;;  %v4933_v62 = vsel %vm4931_vm15, %v8419_v34, %v4930_v41 }
 0x37a   :  { %5002 = vmatprep.mubr.f32.mxu0 %v4933_v62  ;;  %8138 = vmatprep.subr.bf16.mxu0 %v9234_v25  ;;  %v7042_v62 = vrot.slane %v7041_v29, 2 }
 0x37b   :  { %v8423_v44 = vpop.permute.xlu1 %8422 }
 0x37c   :  { %8169 = vmatpush3.bf16.msra.mxu1 %v9247_v10  ;;  %v5094_v58 = vpop.permute.xlu0 %5093  ;;  %v8424_v18 = vunpack.i.l.bf16 %v8423_v44 }
 0x37d   :  { %8140 = vmatpush3.bf16.msra.mxu0 %v9249_v28  ;;  %8170 = vmatprep.subr.bf16.mxu1 %v8550_v14 }
 0x37e   :  { %8142 = vmatprep.subr.bf16.mxu0 %v9269_v33  ;;  %v5099_v45 = vsel %vm5097_vm4, %v8424_v18, %v5094_v58 }
 0x380   :  { %8172 = vmatpush3.bf16.msra.mxu1 %v9280_v39 }
 0x381   :  { %8144 = vmatpush3.bf16.msra.mxu0 %v9282_v40  ;;  %8015 = vmatprep.subr.mxu1 %v9104_v61 }
 0x382   :  { %8146 = vmatprep.subr.bf16.mxu0 %v9299_v49 }
 0x384   :  { %8016 = vmatpush3.msk.msra.mxu1 %vm4606_vm12, %v9297_v46 }
 0x385   :  { %8148 = vmatpush3.bf16.msra.mxu0 %v9310_v56  ;;  %8018 = vmatmul.mubr.msk.f32.vlgmr.msra.gmra.mrb[26].mxu1 %vm4602_vm13, %v4930_v41  ;;  %v7031_v41 = vmul.f32 %v9161_v60, %v9161_v60 }
 0x386   :  { %8174 = vmatprep.subr.bf16.mxu1 %v9178_v15  ;;  %5169 = vmatprep.mubr.f32.mxu1 %v5099_v45  ;;  %v8420_v15 = vunpack.i.h.bf16 %v8418_v31  ;;  %v7047_v31 = vadd.f32 %v7046_v11, %v7028_v36  ;;  %v6901_v11 = vld [vmem:[%s10189_s6 + $0x8] sm:$0xff] }
 0x387   :  { %8176 = vmatpush3.bf16.msra.mxu1 %v9194_v0  ;;  %8150 = vmatprep.subr.bf16.mxu0 %v9340_v2  ;;  %v7064_v45 = vsel %vm4402_vm11, %v7031_v41, 0.0 }
 0x388   :  { %8178 = vmatprep.subr.bf16.mxu1 %v9206_v1  ;;  %v4932_v0 = vsel %vm4931_vm15, %v8420_v15, %v8419_v34  ;;  %v5096_v1 = vpop.permute.xlu1 %5095  ;;  %v7030_v34 = vmul.f32 %v9159_v59, %v9159_v59  ;;  %v7043_v15 = vadd.f32 %v7042_v62, %v7041_v29  ;;  %v7492_v62 = vld [vmem:[%s10183_s0 + $0x30] sm:$0xff] }
 0x389   :  { %8152 = vmatpush3.bf16.msra.mxu0 %v9350_v3 }
 0x38a   :  { %8154 = vmatprep.subr.bf16.mxu0 %v9364_v24 }
 0x38b   :  { %8180 = vmatpush3.bf16.msra.mxu1 %v9221_v6 }
 0x38c   :  { %8182 = vmatprep.subr.bf16.mxu1 %v9234_v25 }
 0x38d   :  { %8156 = vmatpush3.bf16.msra.mxu0 %v9370_v26 }
 0x38e   :  { %8158 = vmatprep.subr.bf16.mxu0 %v9388_v38 }
 0x38f   :  { %8184 = vmatpush3.bf16.msra.mxu1 %v9249_v28 }
 0x390   :  { %8186 = vmatprep.subr.bf16.mxu1 %v9269_v33 }
 0x391   :  { %8160 = vmatpush3.bf16.msra.mxu0 %v9396_v48 }
 0x392   :  { %8205 = vmatprep.subr.bf16.mxu0 %v8550_v14 }
 0x393   :  { %8188 = vmatpush3.bf16.msra.mxu1 %v9282_v40 }
 0x394   :  { %5003 = vmatmul.mubr.f32.vlgmr.msra.gmra.mrb[10].mxu0 %v4932_v0  ;;  %8190 = vmatprep.subr.bf16.mxu1 %v9299_v49 }
 0x395   :  { %8207 = vmatpush3.bf16.msra.mxu0 %v9192_v19  ;;  %8038 = vmatprep.mubr.msk.f32.mxu0 %vm8544_vm2, %v9104_v61  ;;  %v8425_v19 = vunpack.i.h.bf16 %v8423_v44  ;;  %vm4559_vm2 = vcmask 310272   ;;  %v7048_v44 = vrot.slane %v7047_v31, 2 }
 0x396   :  { %8208 = vmatprep.subr.bf16.mxu0 %v8550_v14  ;;  %4560 = vst.msk [vmem:[#allocation3 + $0x18] sm:$0xff] %vm4559_vm2, %v9104_v61 }
 0x397   :  { %8192 = vmatpush3.bf16.msra.mxu1 %v9310_v56  ;;  %v5098_v6 = vsel %vm5097_vm4, %v8425_v19, %v8424_v18  ;;  %v7058_v18 = vrot.slane %v7030_v34, 4  ;;  %v7049_v0 = vadd.f32 %v7048_v44, %v7047_v31  ;;  %v7491_v44 = vld [vmem:[%s10183_s0 + $0x28] sm:$0xff] }
 0x398   :  { %8194 = vmatprep.subr.bf16.mxu1 %v9340_v2 }
 0x399   :  { %8210 = vmatpush3.bf16.msra.mxu0 %v9219_v5  ;;  %v5100_v5 = vsel %vm5097_vm4, %v5094_v58, %v5096_v1  ;;  %vm7032_vm4 = vcmask 1047616   ;;  %v7053_v58 = vadd.f32 %v7052_v53, %v7029_v12  ;;  %v7065_v1 = vrot.slane %v7064_v45, 4 }
 0x39a   :  { %8211 = vmatprep.subr.bf16.mxu0 %v8550_v14  ;;  %v7033_v42 = vsel %vm7032_vm4, %v9603_v57, 0.0 }
 0x39b   :  { %8196 = vmatpush3.bf16.msra.mxu1 %v9350_v3  ;;  %v7034_v20 = vrot.slane %v7033_v42, 4  ;;  %v7054_v19 = vrot.slane %v7053_v58, 2 }
 0x39c   :  { %8198 = vmatprep.subr.bf16.mxu1 %v9364_v24 }
 0x39d   :  { %8213 = vmatpush3.bf16.msra.mxu0 %v9247_v10  ;;  %v7035_v8 = vadd.f32 %v7034_v20, %v7033_v42 }
 0x39e   :  { %8214 = vmatprep.subr.bf16.mxu0 %v8550_v14 }
 0x39f   :  { %8200 = vmatpush3.bf16.msra.mxu1 %v9370_v26  ;;  %v7036_v47 = vrot.slane %v7035_v8, 2 }
 0x3a0   :  { %8202 = vmatprep.subr.bf16.mxu1 %v9388_v38 }
 0x3a1   :  { %8216 = vmatpush3.bf16.msra.mxu0 %v9280_v39  ;;  %v7037_v55 = vadd.f32 %v7036_v47, %v7035_v8 }
 0x3a2   :  { %8036 = vmatprep.subr.mxu0 %v9104_v61 }
 0x3a3   :  { %8204 = vmatpush3.bf16.msra.mxu1 %v9396_v48  ;;  %v7038_v59 = vrot.slane %v7037_v55, 1 }
 0x3a5   :  { %8037 = vmatpush3.msk.msra.mxu0 %vm4606_vm12, %v9297_v46  ;;  %v9545_v46 = vld [vmem:[%s10188_s5] sm:$0xff]  ;;  %s8557_s5 = smov 118   ;;  %vm5084_vm12 = vcmask 449536  }
 0x3a6   :  { %5170 = vmatmul.mubr.f32.vlgmr.msra.gmra.mrb[28].mxu1 %v5098_v6  ;;  %8039 = vmatmul.mubr.msk.f32.vlgmr.msra.gmra.mrb[12].mxu0 %vm4602_vm13, %v5100_v5  ;;  %vm5249_vm13 = vcmask 1047992   ;;  %v7059_v5 = vadd.f32 %v7058_v18, %v7030_v34  ;;  %v7039_v6 = vadd.f32 %v7038_v59, %v7037_v55 }
 0x3a7   :  { %5429 = vmatprep.mubr.f32.mxu1 %v9104_v61  ;;  %5352 = vmatprep.mubr.f32.mxu0 %v9104_v61 }
 0x3a8   :  { %8427 = vrsqrt.f32 %v7039_v6  ;;  %vm7073_vm2 = vcmp.eq.f32.partialorder %v7039_v6, inf }
 0x3cd   :  { %v4746_v14 = vpop.f32.mrb[22].mxu1 }
 0x3ce   :  { %v7977_v25 = vpop.f32.mrb[23].mxu1 }
 0x3cf   :  { %v7050_v25 = vrot.slane %v7049_v0, 1 }
 0x3dc   :  { %v7764_v10 = vpop.f32.mrb[6].mxu0 }
 0x3dd   :  { %v7765_v28 = vpop.f32.mrb[7].mxu0 }
 0x3de   :  { %v7766_v33 = vadd.f32 %v7765_v28, %v7764_v10  ;;  %v7055_v10 = vadd.f32 %v7054_v19, %v7053_v58  ;;  %v7066_v28 = vadd.f32 %v7065_v1, %v7064_v45  ;;  %v7494_v19 = vld [vmem:[%s10183_s0 + $0x40] sm:$0xff]  ;;  %v7493_v1 = vld [vmem:[%s10183_s0 + $0x38] sm:$0xff] }
 0x3e0   :  { %v4747_v39 = vadd.f32 %v7766_v33, %v4746_v14  ;;  %v7044_v14 = vrot.slane %v7043_v15, 1  ;;  %v7060_v33 = vrot.slane %v7059_v5, 2 }
 0x446   :  { %v7809_v40 = vpop.f32.mrb[24].mxu1 }
 0x447   :  { %v7810_v49 = vpop.f32.mrb[25].mxu1  ;;  %v4911_v56 = vpop.f32.mrb[8].mxu0 }
 0x448   :  { %v7811_v2 = vadd.f32 %v7810_v49, %v7809_v40  ;;  %v7998_v3 = vpop.f32.mrb[9].mxu0  ;;  %v7051_v40 = vadd.f32 %v7050_v25, %v7049_v0  ;;  %v7056_v49 = vrot.slane %v7055_v10, 1 }
 0x44a   :  { %v4912_v24 = vadd.f32 %v7811_v2, %v4911_v56  ;;  %v7067_v56 = vrot.slane %v7066_v28, 2  ;;  %v7061_v2 = vadd.f32 %v7060_v33, %v7059_v5  ;;  %v9649_v3 = vadd.f32 %v7056_v49, %v7055_v10  ;;  %v7496_v10 = vld [vmem:[%s10183_s0 + $0x50] sm:$0xff] }
 0x44b   :  { %v7090_v8 = vand.u32 2147483648, %v7051_v40 }
 0x44c   :  { %4916 = vrot.lane.b32.xlu0 %v4912_v24, %s8553_s1  ;;  %v7068_v24 = vadd.f32 %v7067_v56, %v7066_v28  ;;  %v7097_v55 = vand.u32 2147483648, %v9649_v3  ;;  %v7495_v28 = vld [vmem:[%s10183_s0 + $0x48] sm:$0xff]  ;;  %s10200_s1 = smov 109  }
 0x450   :  { %4751 = vrot.lane.b32.xlu0 %v4747_v39, %s8554_s17  ;;  %v7045_v39 = vadd.f32 %v7044_v14, %v7043_v15 }
 0x452   :  { %8429 = vrsqrt.f32 %v7045_v39  ;;  %v7083_v20 = vand.u32 2147483648, %v7045_v39 }
 0x453   :  { %8431 = vrsqrt.f32 %v7051_v40 }
 0x454   :  { %5261 = vrot.lane.b32.xlu0 %v9545_v46, %s8533_s30  ;;  %8433 = vrsqrt.f32 %v9649_v3 }
 0x458   :  { %v5074_v26 = vpop.f32.mrb[26].mxu1  ;;  %5600 = vrot.lane.b32.xlu0 %v9545_v46, %s8535_s25 }
 0x459   :  { %v8019_v38 = vpop.f32.mrb[27].mxu1 }
 0x45a   :  { %v7069_v38 = vrot.slane %v7068_v24, 1 }
 0x45c   :  { %5785 = vrot.lane.b32.xlu0 %v9545_v46, %s8537_s27 }
 0x467   :  { %v7854_v48 = vpop.f32.mrb[10].mxu0 }
 0x468   :  { %v7855_v50 = vpop.f32.mrb[11].mxu0 }
 0x469   :  { %v7856_v51 = vadd.f32 %v7855_v50, %v7854_v48  ;;  %v8428_v50 = vpop.eup %8427 }
 0x46b   :  { %v5075_v52 = vadd.f32 %v7856_v51, %v5074_v26  ;;  %v7062_v26 = vrot.slane %v7061_v2, 1  ;;  %v9659_v51 = vadd.f32 %v7069_v38, %v7068_v24 }
 0x46d   :  { %5079 = vrot.lane.b32.xlu1 %v5075_v52, %s8555_s2  ;;  %v9654_v48 = vadd.f32 %v7062_v26, %v7061_v2  ;;  %v8430_v52 = vpop.eup %8429  ;;  %v7111_v25 = vand.u32 2147483648, %v9659_v51  ;;  %v6928_v2 = vld [vmem:[%s10186_s3] sm:$0xff]  ;;  %v9727_v26 = vld [vmem:[#allocation2 + $0x28] sm:$0xff] }
 0x46f   :  { %8435 = vrsqrt.f32 %v9654_v48  ;;  %vm7101_vm4 = vcmp.eq.f32.partialorder %v9654_v48, inf  ;;  %v7104_v0 = vand.u32 2147483648, %v9654_v48 }
 0x470   :  { %8437 = vrsqrt.f32 %v9659_v51 }
 0x479   :  { %v7899_v16 = vpop.f32.mrb[28].mxu1  ;;  %v5241_v54 = vpop.f32.mrb[12].mxu0 }
 0x47a   :  { %v7900_v4 = vpop.f32.mrb[29].mxu1  ;;  %v8040_v9 = vpop.f32.mrb[13].mxu0 }
 0x47b   :  { %v7901_v37 = vadd.f32 %v7900_v4, %v7899_v16  ;;  %v7072_v16 = vmul.f32 %v8428_v50, %v7039_v6  ;;  %v7079_v4 = vmul.f32 %v8430_v52, %v7045_v39  ;;  %v8497_v52 = vld [vmem:[#allocation2 + $0x38] sm:$0xff] }
 0x47d   :  { %v5242_v35 = vadd.f32 %v7901_v37, %v5241_v54  ;;  %v8432_v54 = vpop.eup %8431  ;;  %v7074_v9 = vsel %vm7073_vm2, %v7039_v6, %v7072_v16  ;;  %vm7103_vm2 = vcmp.eq.f32.partialorder %v9654_v48, 0.0 }
 0x47e   :  { %v7086_v37 = vmul.f32 %v8432_v54, %v7051_v40  ;;  %v8498_v54 = vld [vmem:[#allocation2 + $0x30] sm:$0xff] }
 0x47f   :  { %5246 = vrot.lane.b32.xlu1 %v5242_v35, %s8556_s22  ;;  %v8434_v35 = vpop.eup %8433 }
 0x480   :  { %v7093_v43 = vmul.f32 %v8434_v35, %v9649_v3  ;;  %v8436_v36 = vpop.eup %8435 }
 0x481   :  { %v7100_v53 = vmul.f32 %v8436_v36, %v9654_v48  ;;  %v8438_v34 = vpop.eup %8437 }
 0x482   :  { %v7107_v59 = vmul.f32 %v8438_v34, %v9659_v51 }
 0x483   :  { %5263 = vrot.lane.b32.xlu1 %v9557_v17, %s8533_s30  ;;  %v7102_v45 = vsel %vm7101_vm4, %v9654_v48, %v7100_v53 }
 0x487   :  { %5602 = vrot.lane.b32.xlu1 %v9557_v17, %s8535_s25  ;;  %s8558_s25 = smov 117  }
 0x4be   :  { %v4917_v21 = vpop.permute.xlu0 %4916 }
 0x4bf   :  { %4922 = vst.msk [vmem:[#allocation3 + $0x8] sm:$0xff] %vm4921_vm7, %v4917_v21  ;;  %vm7075_vm7 = vcmp.eq.f32.partialorder %v7039_v6, 0.0 }
 0x4c2   :  { %v4752_v63 = vpop.permute.xlu0 %4751 }
 0x4c3   :  { %4755 = vst.msk [vmem:[#allocation3] sm:$0xff] %vm4754_vm8, %v4752_v63  ;;  %v6900_v63 = vld [vmem:[%s10189_s6] sm:$0xff]  ;;  %vm7080_vm8 = vcmp.eq.f32.partialorder %v7045_v39, inf }
 0x4c4   :  { %4920 = vst.msk [vmem:[#allocation3] sm:$0xff] %vm4919_vm9, %v4917_v21  ;;  %v7076_v21 = vand.u32 2147483648, %v7039_v6  ;;  %vm7087_vm9 = vcmp.eq.f32.partialorder %v7051_v40, inf  ;;  %v7105_v6 = vsel %vm7103_vm2, %v7104_v0, %v7102_v45 }
 0x4c5   :  { %v7088_v42 = vsel %vm7087_vm9, %v7051_v40, %v7086_v37  ;;  %v7117_v33 = vadd.f32 1e-10, %v7105_v6  ;;  %v7285_v37 = vld [vmem:[%s10190_s7] sm:$0xff]  ;;  %vm6169_vm9 = vcmask 949248  }
 0x4c6   :  { %v9696_v15 = vpop.permute.xlu0 %5261 }
 0x4cb   :  { %v9563_v30 = vld [vmem:[#allocation3] sm:$0xff] }
 0x4cc   :  { %5269 = vrot.lane.b32.xlu1 %v9563_v30, %s8531_s21 }
 0x4d0   :  { %5604 = vrot.lane.b32.xlu1 %v9563_v30, %s8534_s24 }
 0x4d4   :  { %5789 = vrot.lane.b32.xlu1 %v9563_v30, %s8557_s5 }
 0x4df   :  { %v5080_v32 = vpop.permute.xlu1 %5079 }
 0x4e0   :  { %5083 = vst.msk [vmem:[#allocation3 + $0x8] sm:$0xff] %vm5082_vm10, %v5080_v32  ;;  %vm7082_vm10 = vcmp.eq.f32.partialorder %v7045_v39, 0.0 }
 0x4e1   :  { %5085 = vst.msk [vmem:[#allocation3 + $0x10] sm:$0xff] %vm5084_vm12, %v5080_v32  ;;  %v7077_v32 = vsel %vm7075_vm7, %v7076_v21, %v7074_v9  ;;  %vm7089_vm12 = vcmp.eq.f32.partialorder %v7051_v40, 0.0  ;;  %vm7108_vm7 = vcmp.eq.f32.partialorder %v9659_v51, inf  ;;  %v9720_v40 = vpop.permute.xlu0 %5600 }
 0x4e2   :  { %v7113_v12 = vadd.f32 1e-10, %v7077_v32  ;;  %v7091_v29 = vsel %vm7089_vm12, %v7090_v8, %v7088_v42  ;;  %v7109_v14 = vsel %vm7108_vm7, %v9659_v51, %v7107_v59  ;;  %v7286_v42 = vld [vmem:[%s10190_s7 + $0x8] sm:$0xff] }
 0x4e3   :  { %v7115_v58 = vadd.f32 1e-10, %v7091_v29 }
 0x4e4   :  { %8439 = vrcp.f32 %v7113_v12 }
 0x4e7   :  { %v9571_v22 = vld [vmem:[#allocation3 + $0x8] sm:$0xff] }
 0x4e8   :  { %5271 = vrot.lane.b32.xlu0 %v9571_v22, %s8531_s21 }
 0x4ec   :  { %5606 = vrot.lane.b32.xlu0 %v9571_v22, %s8534_s24 }
 0x4ee   :  { %v8440_v56 = vpop.eup %8439 }
 0x4ef   :  { %v7131_v38 = vmul.f32 %v9727_v26, %v8440_v56 }
 0x4f0   :  { %5791 = vrot.lane.b32.xlu0 %v9571_v22, %s8557_s5 }
 0x4f1   :  { %v5247_v23 = vpop.permute.xlu1 %5246 }
 0x4f2   :  { %5250 = vst.msk [vmem:[#allocation3 + $0x10] sm:$0xff] %vm5249_vm13, %v5247_v23  ;;  %vm7094_vm13 = vcmp.eq.f32.partialorder %v9649_v3, inf }
 0x4f3   :  { %5252 = vst.msk [vmem:[#allocation3 + $0x18] sm:$0xff] %vm5251_vm14, %v5247_v23  ;;  %v7081_v23 = vsel %vm7080_vm8, %v7045_v39, %v7079_v4  ;;  %v7095_v31 = vsel %vm7094_vm13, %v9649_v3, %v7093_v43  ;;  %vm7096_vm14 = vcmp.eq.f32.partialorder %v9649_v3, 0.0  ;;  %vm7110_vm8 = vcmp.eq.f32.partialorder %v9659_v51, 0.0  ;;  %v9733_v51 = vpop.permute.xlu0 %5785 }
 0x4f4   :  { %v7084_v47 = vsel %vm7082_vm10, %v7083_v20, %v7081_v23  ;;  %v7098_v18 = vsel %vm7096_vm14, %v7097_v55, %v7095_v31  ;;  %v7112_v49 = vsel %vm7110_vm8, %v7111_v25, %v7109_v14  ;;  %v8500_v20 = vld [vmem:[#allocation2 + $0x48] sm:$0xff]  ;;  %vm6540_vm10 = vcmask 875520  }
 0x4f5   :  { %v7114_v41 = vadd.f32 1e-10, %v7084_v47  ;;  %v7116_v5 = vadd.f32 1e-10, %v7098_v18  ;;  %v9718_v39 = vpop.permute.xlu1 %5263  ;;  %v7118_v3 = vadd.f32 1e-10, %v7112_v49 }
 0x4f6   :  { %vm7299_vm13 = vcmask 588800   ;;  %vm7331_vm14 = vcmask 1048128  }
 0x4f7   :  { %8441 = vrcp.f32 %v7114_v41 }
 0x4f8   :  { %8443 = vrcp.f32 %v7115_v58 }
 0x4f9   :  { %v9581_v13 = vld [vmem:[#allocation3 + $0x10] sm:$0xff]  ;;  %8445 = vrcp.f32 %v7116_v5  ;;  %v9730_v50 = vpop.permute.xlu1 %5602 }
 0x4fa   :  { %v9579_v7 = vld [vmem:[#allocation3 + $0x18] sm:$0xff]  ;;  %5273 = vrot.lane.b32.xlu1 %v9581_v13, %s8531_s21  ;;  %8447 = vrcp.f32 %v7117_v33 }
 0x4fb   :  { %5275 = vrot.lane.b32.xlu0 %v9579_v7, %s8531_s21  ;;  %s8560_s21 = smov 107   ;;  %8449 = vrcp.f32 %v7118_v3 }
 0x4fe   :  { %5787 = vrot.lane.b32.xlu1 %v9557_v17, %s8537_s27  ;;  %s10199_s27 = smov 64  }
 0x4ff   :  { %5977 = vrot.lane.b32.xlu0 %v9571_v22, %s8558_s25 }
 0x501   :  { %v8442_v24 = vpop.eup %8441 }
 0x502   :  { %5975 = vrot.lane.b32.xlu1 %v9563_v30, %s8558_s25  ;;  %v8444_v48 = vpop.eup %8443  ;;  %v7132_v4 = vmul.f32 %v8498_v54, %v8442_v24 }
 0x503   :  { %5971 = vrot.lane.b32.xlu0 %v9545_v46, %s8539_s29  ;;  %v7133_v16 = vmul.f32 %v8497_v52, %v8444_v48  ;;  %v8446_v9 = vpop.eup %8445 }
 0x504   :  { %v8448_v23 = vpop.eup %8447 }
 0x505   :  { %v7135_v43 = vmul.f32 %v8500_v20, %v8448_v23  ;;  %v8450_v36 = vpop.eup %8449 }
 0x506   :  { %5973 = vrot.lane.b32.xlu1 %v9557_v17, %s8539_s29 }
 0x507   :  { %6163 = vrot.lane.b32.xlu0 %v9571_v22, %s8559_s23 }
 0x50a   :  { %5608 = vrot.lane.b32.xlu1 %v9581_v13, %s8534_s24 }
 0x50b   :  { %5610 = vrot.lane.b32.xlu0 %v9579_v7, %s8534_s24  ;;  %s8561_s24 = smov 106  }
 0x50e   :  { %6161 = vrot.lane.b32.xlu1 %v9563_v30, %s8559_s23 }
 0x50f   :  { %6157 = vrot.lane.b32.xlu0 %v9545_v46, %s8541_s13 }
 0x512   :  { %5793 = vrot.lane.b32.xlu1 %v9581_v13, %s8557_s5 }
 0x513   :  { %5795 = vrot.lane.b32.xlu0 %v9579_v7, %s8557_s5  ;;  %s8563_s5 = smov [#allocation4]  }
 0x516   :  { %6159 = vrot.lane.b32.xlu1 %v9557_v17, %s8541_s13 }
 0x517   :  { %6349 = vrot.lane.b32.xlu0 %v9571_v22, %s8540_s12 }
 0x51a   :  { %5979 = vrot.lane.b32.xlu1 %v9581_v13, %s8558_s25 }
 0x51b   :  { %5981 = vrot.lane.b32.xlu0 %v9579_v7, %s8558_s25  ;;  %s7608_s25 = sshll.u32 %s8563_s5, 4  ;;  %s7609_s25 = int_to_ptr.vmem [resolvable:$true] %s7608_s25 }
 0x51c   :  { %p8512_p1 = scmp.lt.s32.totalorder %s7609_s25, %s7609_s25 }
 0x51e   :  { %6347 = vrot.lane.b32.xlu1 %v9563_v30, %s8540_s12 }
 0x51f   :  { %6343 = vrot.lane.b32.xlu0 %v9545_v46, %s8543_s15 }
 0x522   :  { %6165 = vrot.lane.b32.xlu1 %v9581_v13, %s8559_s23 }
 0x523   :  { %6167 = vrot.lane.b32.xlu0 %v9579_v7, %s8559_s23  ;;  %s8507_s23 = scalar_lea.vmem %s7609_s25, 16 }
 0x524   :  { %p8508_p0 = scmp.ne.s32.totalorder %s7609_s25, %s8507_s23 }
 0x526   :  { %6345 = vrot.lane.b32.xlu1 %v9557_v17, %s8543_s15 }
 0x527   :  { %6534 = vrot.lane.b32.xlu0 %v9571_v22, %s8560_s21 }
 0x52a   :  { %6351 = vrot.lane.b32.xlu1 %v9581_v13, %s8540_s12 }
 0x52b   :  { %6353 = vrot.lane.b32.xlu0 %v9579_v7, %s8540_s12 }
 0x52e   :  { %6532 = vrot.lane.b32.xlu1 %v9563_v30, %s8560_s21 }
 0x52f   :  { %6528 = vrot.lane.b32.xlu0 %v9545_v46, %s8546_s16 }
 0x532   :  { %6536 = vrot.lane.b32.xlu1 %v9581_v13, %s8560_s21 }
 0x533   :  { %6538 = vrot.lane.b32.xlu0 %v9579_v7, %s8560_s21  ;;  %s8511_s21 = scalar_lea.vmem %s7609_s25, 32 }
 0x534   :  { %p8513_p2 = scmp.lt.s32.totalorder %s8511_s21, %s8507_s23 }
 0x536   :  { %6530 = vrot.lane.b32.xlu1 %v9557_v17, %s8546_s16  ;;  %p8514_p3 = por %p8513_p2, %p8512_p1 }
 0x537   :  { %6720 = vrot.lane.b32.xlu0 %v9571_v22, %s8561_s24 }
 0x538   :  { %p8515_p4 = pnand %p8514_p3, %p8508_p0 }
 0x53a   :  { %6722 = vrot.lane.b32.xlu1 %v9581_v13, %s8561_s24 }
 0x53b   :  { %6724 = vrot.lane.b32.xlu0 %v9579_v7, %s8561_s24 }
 0x53e   :  { %6718 = vrot.lane.b32.xlu1 %v9563_v30, %s8561_s24  ;;  %v5270_v35 = vpop.permute.xlu1 %5269 }
 0x53f   :  { %6714 = vrot.lane.b32.xlu0 %v9545_v46, %s10199_s27 }
 0x542   :  { %6716 = vrot.lane.b32.xlu1 %v9557_v17, %s10199_s27  ;;  %v5605_v8 = vpop.permute.xlu1 %5604  ;;  %s8562_s27 = smov 56  }
 0x543   :  { %6904 = vperm.xlu0 %8400, %v6900_v63   ;;  %v8499_v63 = vld [vmem:[#allocation2 + $0x40] sm:$0xff] }
 0x544   :  { %v7134_v32 = vmul.f32 %v8499_v63, %v8446_v9 }
 0x546   :  { %6909 = vperm.xlu1 %8426, %v6901_v11   ;;  %v7136_v11 = vmul.f32 %v8450_v36, %v9161_v60  ;;  %v9747_v12 = vpop.permute.xlu1 %5789 }
 0x547   :  { %7541 = vperm.xlu0 %8400, %v7538_v27  }
 0x54a   :  { %7503 = vrot.lane.b32.xlu1 %v7491_v44, %s8533_s30 }
 0x54b   :  { %7505 = vrot.lane.b32.xlu0 %v7492_v62, %s8533_s30 }
 0x54e   :  { %7507 = vrot.lane.b32.xlu1 %v7493_v1, %s8533_s30 }
 0x54f   :  { %7509 = vrot.lane.b32.xlu0 %v7494_v19, %s8533_s30 }
 0x552   :  { %7511 = vrot.lane.b32.xlu1 %v7495_v28, %s8533_s30 }
 0x553   :  { %7513 = vrot.lane.b32.xlu0 %v7496_v10, %s8533_s30 }
 0x556   :  { %7180 = vperm.xlu1 %8426, %v6928_v2  }
 0x557   :  { %7143 = vrot.lane.b32.xlu0 %v7131_v38, %s8533_s30 }
 0x55a   :  { %7145 = vrot.lane.b32.xlu1 %v7132_v4, %s8533_s30  ;;  %v5272_v21 = vpop.permute.xlu0 %5271 }
 0x55b   :  { %7147 = vrot.lane.b32.xlu0 %v7133_v16, %s8533_s30  ;;  %v5277_v41 = vsel %vm87_vm0, %v5270_v35, %v5272_v21 }
 0x55e   :  { %7149 = vrot.lane.b32.xlu1 %v7134_v32, %s8533_s30  ;;  %v5607_v27 = vpop.permute.xlu0 %5606 }
 0x55f   :  { %7431 = vperm.xlu0 %8400, %v7285_v37   ;;  %v5612_v18 = vsel %vm988_vm3, %v5605_v8, %v5607_v27 }
 0x562   :  { %7436 = vperm.xlu1 %8426, %v7286_v42   ;;  %v5792_v47 = vpop.permute.xlu0 %5791 }
 0x563   :  { %7151 = vrot.lane.b32.xlu0 %v7135_v43, %s8533_s30 }
 0x566   :  { %7153 = vrot.lane.b32.xlu1 %v7136_v11, %s8533_s30 }
 0x56c   :  { %v5274_v29 = vpop.permute.xlu1 %5273 }
 0x56d   :  { %v5276_v31 = vpop.permute.xlu0 %5275  ;;  %v5278_v34 = vsel %vm87_vm0, %v5272_v21, %v5274_v29 }
 0x56e   :  { %v5279_v53 = vsel %vm87_vm0, %v5274_v29, %v5276_v31  ;;  %5365 = vmatprep.subr.mxu1 %v5276_v31  ;;  %5288 = vmatprep.subr.mxu0 %v5278_v34  ;;  %vm5797_vm0 = vcmask 965632   ;;  %v9863_v29 = vld [vmem:[#allocation2] sm:$0xff] }
 0x56f   :  { %5366 = vmatpush1.msra.mxu1 %v5279_v53  ;;  %5289 = vmatpush1.msra.mxu0 %v5277_v41  ;;  %v5798_v1 = vsel %vm5797_vm0, %v9747_v12, %v5792_v47  ;;  %v6930_v31 = vmul.f32 %v9863_v29, %v9863_v29  ;;  %v9867_v41 = vld [vmem:[#allocation2 + $0x8] sm:$0xff] }
 0x570   :  { %7680 = vmatmul.mubr.msk.f32.vlgmr.msra.gmra.mrb[30].mxu1 %vm109_vm1, %v9696_v15  ;;  %5523 = vmatprep.subr.mxu1 %v9579_v7  ;;  %v5788_v60 = vpop.permute.xlu1 %5787 }
 0x571   :  { %7678 = vmatmul.mubr.msk.f32.vlgmr.msra.gmra.mrb[14].mxu0 %vm109_vm1, %v9696_v15  ;;  %v9757_v55 = vpop.permute.xlu0 %5977  ;;  %5446 = vmatprep.subr.mxu0 %v9571_v22  ;;  %v6936_v53 = vrot.slane %v6930_v31, 4 }
 0x572   :  { %5524 = vmatpush1.msra.mxu1 %v9581_v13  ;;  %5447 = vmatpush1.msra.mxu0 %v9563_v30 }
 0x573   :  { %5435 = vmatprep.mubr.f32.mxu1 %v9104_v61  ;;  %5358 = vmatprep.mubr.f32.mxu0 %v9104_v61  ;;  %v6937_v34 = vadd.f32 %v6936_v53, %v6930_v31 }
 0x574   :  { %7681 = vmatmul.mubr.msk.f32.gmra.mrb[32].mxu1 %vm109_vm1, %v9718_v39  ;;  %v5976_v7 = vpop.permute.xlu1 %5975 }
 0x575   :  { %7679 = vmatmul.mubr.msk.f32.gmra.mrb[16].mxu0 %vm109_vm1, %v9718_v39  ;;  %v9768_v62 = vpop.permute.xlu0 %5971  ;;  %5587 = vmatprep.mubr.f32.mxu1 %v9104_v61 }
 0x576   :  { %5510 = vmatprep.mubr.f32.mxu0 %v9104_v61 }
 0x578   :  { %7684 = vmatmul.mubr.msk.f32.vlgmr.msra.gmra.mrb[30].mxu1 %vm109_vm1, %v9545_v46  ;;  %v9774_v30 = vpop.permute.xlu1 %5973 }
 0x579   :  { %7682 = vmatmul.mubr.msk.f32.vlgmr.msra.gmra.mrb[14].mxu0 %vm109_vm1, %v9545_v46  ;;  %v9778_v22 = vpop.permute.xlu0 %6163  ;;  %5593 = vmatprep.mubr.f32.mxu1 %v9104_v61 }
 0x57a   :  { %5516 = vmatprep.mubr.f32.mxu0 %v9104_v61 }
 0x57c   :  { %7685 = vmatmul.mubr.msk.f32.gmra.mrb[32].mxu1 %vm109_vm1, %v9557_v17  ;;  %v5609_v13 = vpop.permute.xlu1 %5608 }
 0x57d   :  { %7683 = vmatmul.mubr.msk.f32.gmra.mrb[16].mxu0 %vm109_vm1, %v9557_v17  ;;  %v5611_v44 = vpop.permute.xlu0 %5610  ;;  %5764 = vmatprep.mubr.f32.mxu1 %v9104_v61  ;;  %v5613_v46 = vsel %vm988_vm3, %v5607_v27, %v5609_v13 }
 0x57e   :  { %v5614_v58 = vsel %vm988_vm3, %v5609_v13, %v5611_v44  ;;  %5700 = vmatprep.subr.mxu1 %v5611_v44  ;;  %5687 = vmatprep.mubr.f32.mxu0 %v9104_v61  ;;  %vm5983_vm3 = vcmask 957440  }
 0x57f   :  { %5623 = vmatprep.subr.mxu0 %v5613_v46  ;;  %5701 = vmatpush1.msra.mxu1 %v5614_v58  ;;  %v5984_v33 = vsel %vm5983_vm3, %v5976_v7, %v9757_v55  ;;  %v9871_v7 = vld [vmem:[#allocation2 + $0x10] sm:$0xff] }
 0x580   :  { %5624 = vmatpush1.msra.mxu0 %v5612_v18  ;;  %7688 = vmatmul.mubr.msk.f32.vlgmr.msra.gmra.mrb[30].mxu1 %vm109_vm1, %v9720_v40  ;;  %v6162_v45 = vpop.permute.xlu1 %6161  ;;  %v6966_v18 = vsel %vm109_vm1, %v9603_v57, 0.0 }
 0x581   :  { %7686 = vmatmul.mubr.msk.f32.vlgmr.msra.gmra.mrb[14].mxu0 %vm109_vm1, %v9720_v40  ;;  %v6158_v17 = vpop.permute.xlu0 %6157  ;;  %5770 = vmatprep.mubr.f32.mxu1 %v9104_v61  ;;  %v6170_v24 = vsel %vm6169_vm9, %v6162_v45, %v9778_v22 }
 0x582   :  { %5693 = vmatprep.mubr.f32.mxu0 %v9104_v61 }
 0x584   :  { %7689 = vmatmul.mubr.msk.f32.gmra.mrb[32].mxu1 %vm109_vm1, %v9730_v50  ;;  %v5794_v59 = vpop.permute.xlu1 %5793 }
 0x585   :  { %7687 = vmatmul.mubr.msk.f32.gmra.mrb[16].mxu0 %vm109_vm1, %v9730_v50  ;;  %v5796_v15 = vpop.permute.xlu0 %5795  ;;  %5950 = vmatprep.mubr.f32.mxu1 %v9104_v61  ;;  %v5799_v19 = vsel %vm5797_vm0, %v5792_v47, %v5794_v59 }
 0x586   :  { %v5800_v0 = vsel %vm5797_vm0, %v5794_v59, %v5796_v15  ;;  %5886 = vmatprep.subr.mxu1 %v5796_v15  ;;  %5873 = vmatprep.mubr.f32.mxu0 %v9104_v61  ;;  %v6967_v15 = vrot.slane %v6966_v18, 4 }
 0x587   :  { %5809 = vmatprep.subr.mxu0 %v5799_v19  ;;  %5887 = vmatpush1.msra.mxu1 %v5800_v0 }
 0x588   :  { %5810 = vmatpush1.msra.mxu0 %v5798_v1  ;;  %7692 = vmatmul.mubr.msk.f32.vlgmr.msra.gmra.mrb[30].mxu1 %vm109_vm1, %v9733_v51  ;;  %v6160_v5 = vpop.permute.xlu1 %6159 }
 0x589   :  { %7690 = vmatmul.mubr.msk.f32.vlgmr.msra.gmra.mrb[14].mxu0 %vm109_vm1, %v9733_v51  ;;  %v6350_v6 = vpop.permute.xlu0 %6349  ;;  %5956 = vmatprep.mubr.f32.mxu1 %v9104_v61 }
 0x58a   :  { %5879 = vmatprep.mubr.f32.mxu0 %v9104_v61 }
 0x58c   :  { %7693 = vmatmul.mubr.msk.f32.gmra.mrb[32].mxu1 %vm109_vm1, %v5788_v60  ;;  %v5980_v14 = vpop.permute.xlu1 %5979 }
 0x58d   :  { %7691 = vmatmul.mubr.msk.f32.gmra.mrb[16].mxu0 %vm109_vm1, %v5788_v60  ;;  %v5982_v25 = vpop.permute.xlu0 %5981  ;;  %6136 = vmatprep.mubr.f32.mxu1 %v9104_v61  ;;  %v5985_v28 = vsel %vm5983_vm3, %v9757_v55, %v5980_v14  ;;  %v6931_v60 = vmul.f32 %v9867_v41, %v9867_v41  ;;  %v6938_v55 = vrot.slane %v6937_v34, 2 }
 0x58e   :  { %v5986_v10 = vsel %vm5983_vm3, %v5980_v14, %v5982_v25  ;;  %6072 = vmatprep.subr.mxu1 %v5982_v25  ;;  %6059 = vmatprep.mubr.f32.mxu0 %v9104_v61  ;;  %v6968_v14 = vadd.f32 %v6967_v15, %v6966_v18 }
 0x58f   :  { %5995 = vmatprep.subr.mxu0 %v5985_v28  ;;  %6073 = vmatpush1.msra.mxu1 %v5986_v10  ;;  %v6942_v44 = vrot.slane %v6931_v60, 4  ;;  %v6939_v58 = vadd.f32 %v6938_v55, %v6937_v34 }
 0x590   :  { %5996 = vmatpush1.msra.mxu0 %v5984_v33  ;;  %7696 = vmatmul.mubr.msk.f32.vlgmr.msra.gmra.mrb[30].mxu1 %vm109_vm1, %v9768_v62  ;;  %v6348_v39 = vpop.permute.xlu1 %6347 }
 0x591   :  { %7694 = vmatmul.mubr.msk.f32.vlgmr.msra.gmra.mrb[14].mxu0 %vm109_vm1, %v9768_v62  ;;  %v6344_v40 = vpop.permute.xlu0 %6343  ;;  %6142 = vmatprep.mubr.f32.mxu1 %v9104_v61  ;;  %v6355_v54 = vsel %vm2440_vm6, %v6348_v39, %v6350_v6  ;;  %v9875_v62 = vld [vmem:[#allocation2 + $0x18] sm:$0xff]  ;;  %v6943_v59 = vadd.f32 %v6942_v44, %v6931_v60  ;;  %v6940_v0 = vrot.slane %v6939_v58, 1 }
 0x592   :  { %6065 = vmatprep.mubr.f32.mxu0 %v9104_v61 }
 0x593   :  { %v9885_v25 = vadd.f32 %v6940_v0, %v6939_v58 }
 0x594   :  { %7697 = vmatmul.mubr.msk.f32.gmra.mrb[32].mxu1 %vm109_vm1, %v9774_v30  ;;  %v6166_v49 = vpop.permute.xlu1 %6165 }
 0x595   :  { %7695 = vmatmul.mubr.msk.f32.gmra.mrb[16].mxu0 %vm109_vm1, %v9774_v30  ;;  %v6168_v56 = vpop.permute.xlu0 %6167  ;;  %6322 = vmatprep.mubr.f32.mxu1 %v9104_v61  ;;  %v6171_v3 = vsel %vm6169_vm9, %v9778_v22, %v6166_v49  ;;  %v6933_v30 = vmul.f32 %v9875_v62, %v9875_v62  ;;  %v9879_v22 = vld [vmem:[#allocation2 + $0x20] sm:$0xff]  ;;  %8451 = vrsqrt.f32 %v9885_v25  ;;  %vm6975_vm12 = vcmp.eq.f32.partialorder %v9885_v25, inf }
 0x596   :  { %v6172_v2 = vsel %vm6169_vm9, %v6166_v49, %v6168_v56  ;;  %6258 = vmatprep.subr.mxu1 %v6168_v56  ;;  %6245 = vmatprep.mubr.f32.mxu0 %v9104_v61  ;;  %v6934_v13 = vmul.f32 %v9879_v22, %v9879_v22  ;;  %vm6977_vm4 = vcmp.eq.f32.partialorder %v9885_v25, 0.0 }
 0x597   :  { %6181 = vmatprep.subr.mxu0 %v6171_v3  ;;  %6259 = vmatpush1.msra.mxu1 %v6172_v2  ;;  %v6954_v45 = vrot.slane %v6933_v30, 4 }
 0x598   :  { %6182 = vmatpush1.msra.mxu0 %v6170_v24  ;;  %7700 = vmatmul.mubr.msk.f32.vlgmr.msra.gmra.mrb[30].mxu1 %vm109_vm1, %v6158_v17  ;;  %v6346_v38 = vpop.permute.xlu1 %6345 }
 0x599   :  { %7698 = vmatmul.mubr.msk.f32.vlgmr.msra.gmra.mrb[14].mxu0 %vm109_vm1, %v6158_v17  ;;  %v6535_v48 = vpop.permute.xlu0 %6534  ;;  %6328 = vmatprep.mubr.f32.mxu1 %v9104_v61  ;;  %v6960_v17 = vrot.slane %v6934_v13, 4  ;;  %v6955_v1 = vadd.f32 %v6954_v45, %v6933_v30  ;;  %v6978_v45 = vand.u32 2147483648, %v9885_v25 }
 0x59a   :  { %6251 = vmatprep.mubr.f32.mxu0 %v9104_v61 }
 0x59b   :  { %v6956_v28 = vrot.slane %v6955_v1, 2 }
 0x59c   :  { %7701 = vmatmul.mubr.msk.f32.gmra.mrb[32].mxu1 %vm109_vm1, %v6160_v5  ;;  %v6352_v50 = vpop.permute.xlu1 %6351 }
 0x59d   :  { %7699 = vmatmul.mubr.msk.f32.gmra.mrb[16].mxu0 %vm109_vm1, %v6160_v5  ;;  %v6354_v51 = vpop.permute.xlu0 %6353  ;;  %6507 = vmatprep.mubr.f32.mxu1 %v9104_v61  ;;  %v6356_v16 = vsel %vm2440_vm6, %v6350_v6, %v6352_v50  ;;  %v6961_v5 = vadd.f32 %v6960_v17, %v6934_v13  ;;  %v6944_v6 = vrot.slane %v6943_v59, 2  ;;  %v6957_v49 = vadd.f32 %v6956_v28, %v6955_v1 }
 0x59e   :  { %v6357_v52 = vsel %vm2440_vm6, %v6352_v50, %v6354_v51  ;;  %6443 = vmatprep.subr.mxu1 %v6354_v51  ;;  %6430 = vmatprep.mubr.f32.mxu0 %v9104_v61  ;;  %vm6726_vm6 = vcmask 867328  }
 0x59f   :  { %6366 = vmatprep.subr.mxu0 %v6356_v16  ;;  %6444 = vmatpush1.msra.mxu1 %v6357_v52  ;;  %v6962_v33 = vrot.slane %v6961_v5, 2  ;;  %v6945_v39 = vadd.f32 %v6944_v6, %v6943_v59 }
 0x5a0   :  { %6367 = vmatpush1.msra.mxu0 %v6355_v54  ;;  %7704 = vmatmul.mubr.msk.f32.vlgmr.msra.gmra.mrb[30].mxu1 %vm109_vm1, %v6344_v40  ;;  %v6533_v4 = vpop.permute.xlu1 %6532 }
 0x5a1   :  { %7702 = vmatmul.mubr.msk.f32.vlgmr.msra.gmra.mrb[14].mxu0 %vm109_vm1, %v6344_v40  ;;  %v6529_v9 = vpop.permute.xlu0 %6528  ;;  %6513 = vmatprep.mubr.f32.mxu1 %v9104_v61  ;;  %v6541_v32 = vsel %vm6540_vm10, %v6533_v4, %v6535_v48  ;;  %v6969_v40 = vrot.slane %v6968_v14, 2  ;;  %v6963_v56 = vadd.f32 %v6962_v33, %v6961_v5  ;;  %v6946_v2 = vrot.slane %v6945_v39, 1 }
 0x5a2   :  { %6436 = vmatprep.mubr.f32.mxu0 %v9104_v61 }
 0x5a3   :  { %v6970_v3 = vadd.f32 %v6969_v40, %v6968_v14  ;;  %v9888_v50 = vadd.f32 %v6946_v2, %v6945_v39 }
 0x5a4   :  { %7705 = vmatmul.mubr.msk.f32.gmra.mrb[32].mxu1 %vm109_vm1, %v6346_v38  ;;  %v6537_v37 = vpop.permute.xlu1 %6536 }
 0x5a5   :  { %7703 = vmatmul.mubr.msk.f32.gmra.mrb[16].mxu0 %vm109_vm1, %v6346_v38  ;;  %v6539_v35 = vpop.permute.xlu0 %6538  ;;  %6693 = vmatprep.mubr.f32.mxu1 %v9104_v61  ;;  %v6542_v63 = vsel %vm6540_vm10, %v6535_v48, %v6537_v37  ;;  %v6958_v38 = vrot.slane %v6957_v49, 1  ;;  %v6964_v48 = vrot.slane %v6963_v56, 1  ;;  %v6971_v51 = vrot.slane %v6970_v3, 1 }
 0x5a6   :  { %v6543_v21 = vsel %vm6540_vm10, %v6537_v37, %v6539_v35  ;;  %6629 = vmatprep.subr.mxu1 %v6539_v35  ;;  %6616 = vmatprep.mubr.f32.mxu0 %v9104_v61  ;;  %8453 = vrsqrt.f32 %v9888_v50  ;;  %vm6984_vm7 = vcmp.eq.f32.partialorder %v9888_v50, 0.0 }
 0x5a7   :  { %6552 = vmatprep.subr.mxu0 %v6542_v63  ;;  %6630 = vmatpush1.msra.mxu1 %v6543_v21  ;;  %v9892_v16 = vadd.f32 %v6958_v38, %v6957_v49  ;;  %v9894_v37 = vadd.f32 %v6964_v48, %v6963_v56  ;;  %v9897_v63 = vadd.f32 %v6971_v51, %v6970_v3 }
 0x5a8   :  { %6553 = vmatpush1.msra.mxu0 %v6541_v32  ;;  %7708 = vmatmul.mubr.msk.f32.vlgmr.msra.gmra.mrb[30].mxu1 %vm109_vm1, %v6529_v9  ;;  %v6531_v23 = vpop.permute.xlu1 %6530 }
 0x5a9   :  { %7706 = vmatmul.mubr.msk.f32.vlgmr.msra.gmra.mrb[14].mxu0 %vm109_vm1, %v6529_v9  ;;  %v6721_v42 = vpop.permute.xlu0 %6720  ;;  %6699 = vmatprep.mubr.f32.mxu1 %v9104_v61  ;;  %v8452_v9 = vpop.eup %8451  ;;  %vm6996_vm0 = vcmp.eq.f32.partialorder %v9892_v16, inf  ;;  %vm7003_vm3 = vcmp.eq.f32.partialorder %v9894_v37, inf  ;;  %vm6998_vm9 = vcmp.eq.f32.partialorder %v9892_v16, 0.0  ;;  %vm7010_vm10 = vcmp.eq.f32.partialorder %v9897_v63, inf }
 0x5aa   :  { %6622 = vmatprep.mubr.f32.mxu0 %v9104_v61 }
 0x5ac   :  { %7709 = vmatmul.mubr.msk.f32.gmra.mrb[32].mxu1 %vm109_vm1, %v6531_v23  ;;  %v6723_v20 = vpop.permute.xlu1 %6722 }
 0x5ad   :  { %7707 = vmatmul.mubr.msk.f32.gmra.mrb[16].mxu0 %vm109_vm1, %v6531_v23  ;;  %v6725_v43 = vpop.permute.xlu0 %6724  ;;  %6879 = vmatprep.mubr.f32.mxu1 %v9104_v61  ;;  %v6728_v8 = vsel %vm6726_vm6, %v6721_v42, %v6723_v20 }
 0x5ae   :  { %v6729_v36 = vsel %vm6726_vm6, %v6723_v20, %v6725_v43  ;;  %6815 = vmatprep.subr.mxu1 %v6725_v43  ;;  %6802 = vmatprep.mubr.f32.mxu0 %v9104_v61 }
 0x5af   :  { %6738 = vmatprep.subr.mxu0 %v6728_v8  ;;  %6816 = vmatpush1.msra.mxu1 %v6729_v36  ;;  %v6974_v36 = vmul.f32 %v8452_v9, %v9885_v25 }
 0x5b0   :  { %v6719_v27 = vpop.permute.xlu1 %6718  ;;  %v8454_v28 = vpop.eup %8453 }
 0x5b1   :  { %v6715_v11 = vpop.permute.xlu0 %6714  ;;  %v6727_v12 = vsel %vm6726_vm6, %v6719_v27, %v6721_v42  ;;  %v6976_v44 = vsel %vm6975_vm12, %v9885_v25, %v6974_v36  ;;  %vm7005_vm6 = vcmp.eq.f32.partialorder %v9894_v37, 0.0  ;;  %vm7012_vm12 = vcmp.eq.f32.partialorder %v9897_v63, 0.0 }
 0x5b2   :  { %7712 = vmatmul.mubr.msk.f32.vlgmr.msra.gmra.mrb[30].mxu1 %vm109_vm1, %v6715_v11  ;;  %6739 = vmatpush1.msra.mxu0 %v6727_v12  ;;  %v6979_v56 = vsel %vm6977_vm4, %v6978_v45, %v6976_v44 }
 0x5b3   :  { %6885 = vmatprep.mubr.f32.mxu1 %v9104_v61  ;;  %7710 = vmatmul.mubr.msk.f32.vlgmr.msra.gmra.mrb[14].mxu0 %vm109_vm1, %v6715_v11 }
 0x5b4   :  { %v6717_v47 = vpop.permute.xlu1 %6716  ;;  %6808 = vmatprep.mubr.f32.mxu0 %v9104_v61  ;;  %v6932_v61 = vmul.f32 %v9871_v7, %v9871_v7 }
 0x5b6   :  { %7713 = vmatmul.mubr.msk.f32.gmra.mrb[32].mxu1 %vm109_vm1, %v6717_v47  ;;  %v6948_v46 = vrot.slane %v6932_v61, 4 }
 0x5b7   :  { %7711 = vmatmul.mubr.msk.f32.gmra.mrb[16].mxu0 %vm109_vm1, %v6717_v47 }
 0x5b8   :  { %v6949_v19 = vadd.f32 %v6948_v46, %v6932_v61 }
 0x5ba   :  { %v6950_v10 = vrot.slane %v6949_v19, 2 }
 0x5bc   :  { %v6951_v57 = vadd.f32 %v6950_v10, %v6949_v19 }
 0x5be   :  { %v6952_v24 = vrot.slane %v6951_v57, 1 }
 0x5c0   :  { %v9890_v52 = vadd.f32 %v6952_v24, %v6951_v57 }
 0x5c2   :  { %v6905_v54 = vpop.permute.xlu0 %6904  ;;  %8455 = vrsqrt.f32 %v9890_v52  ;;  %vm6989_vm2 = vcmp.eq.f32.partialorder %v9890_v52, inf  ;;  %vm6991_vm8 = vcmp.eq.f32.partialorder %v9890_v52, 0.0 }
 0x5c3   :  { %8457 = vrsqrt.f32 %v9892_v16 }
 0x5c4   :  { %8459 = vrsqrt.f32 %v9894_v37 }
 0x5c5   :  { %v6910_v43 = vpop.permute.xlu1 %6909  ;;  %8461 = vrsqrt.f32 %v9897_v63 }
 0x5c6   :  { %v9927_v0 = vpop.permute.xlu0 %7541 }
 0x5c9   :  { %v9939_v33 = vpop.permute.xlu1 %7503 }
 0x5cc   :  { %v8456_v49 = vpop.eup %8455 }
 0x5cd   :  { %v8458_v38 = vpop.eup %8457 }
 0x685   :  { %v6881_v4 = vpop.f32.mrb[30].mxu1 }
 0x686   :  { %v6914_v35 = vadd.f32 %v6905_v54, %v6881_v4  ;;  %v6883_v21 = vpop.f32.mrb[31].mxu1  ;;  %v6804_v23 = vpop.f32.mrb[14].mxu0 }
 0x687   :  { %v6915_v32 = vadd.f32 %v6905_v54, %v6883_v21  ;;  %v6912_v42 = vadd.f32 %v6905_v54, %v6804_v23  ;;  %v6806_v20 = vpop.f32.mrb[15].mxu0  ;;  %v8460_v4 = vpop.eup %8459 }
 0x688   :  { %v6913_v27 = vadd.f32 %v6905_v54, %v6806_v20  ;;  %v9905_v12 = vmax.f32 %v6914_v35, 0.0  ;;  %v8462_v23 = vpop.eup %8461  ;;  %v6981_v20 = vmul.f32 %v8454_v28, %v9888_v50  ;;  %v6985_v28 = vand.u32 2147483648, %v9888_v50 }
 0x689   :  { %v9902_v8 = vmax.f32 %v6915_v32, 0.0  ;;  %v6887_v11 = vpop.f32.mrb[32].mxu1  ;;  %v9911_v55 = vmax.f32 %v6912_v42, 0.0  ;;  %v9950_v42 = vpop.permute.xlu0 %7505 }
 0x68a   :  { %v6918_v47 = vadd.f32 %v6910_v43, %v6887_v11  ;;  %v6889_v31 = vpop.f32.mrb[33].mxu1  ;;  %v9908_v53 = vmax.f32 %v6913_v27, 0.0  ;;  %v6810_v60 = vpop.f32.mrb[16].mxu0  ;;  %v7327_v17 = vmul.f32 %v9905_v12, %v9905_v12 }
 0x68b   :  { %v6919_v34 = vadd.f32 %v6910_v43, %v6889_v31  ;;  %v6916_v30 = vadd.f32 %v6910_v43, %v6810_v60  ;;  %v6812_v13 = vpop.f32.mrb[17].mxu0  ;;  %v7328_v58 = vmul.f32 %v9902_v8, %v9902_v8  ;;  %v7288_v6 = vmul.f32 %v9911_v55, %v9911_v55  ;;  %v9953_v31 = vpop.permute.xlu1 %7507 }
 0x68c   :  { %v9913_v61 = vmax.f32 %v6918_v47, 0.0  ;;  %v6917_v18 = vadd.f32 %v6910_v43, %v6812_v13  ;;  %v7289_v19 = vmul.f32 %v9908_v53, %v9908_v53  ;;  %v6988_v60 = vmul.f32 %v8456_v49, %v9890_v52 }
 0x68d   :  { %v9918_v46 = vmax.f32 %v6919_v34, 0.0  ;;  %v9925_v15 = vmax.f32 %v6916_v30, 0.0  ;;  %v7348_v39 = vsel %vm4402_vm11, %v7328_v58, 0.0  ;;  %v9955_v34 = vadd.f32 1e-10, %v6979_v56 }
 0x68e   :  { %v7329_v59 = vmul.f32 %v9913_v61, %v9913_v61  ;;  %v9933_v5 = vmax.f32 %v6917_v18, 0.0  ;;  %v7300_v48 = vsel %vm7299_vm13, %v7289_v19, 0.0  ;;  %v7332_v51 = vsel %vm7331_vm14, %v7289_v19, 0.0 }
 0x68f   :  { %v7330_v1 = vmul.f32 %v9918_v46, %v9918_v46  ;;  %v7290_v10 = vmul.f32 %v9925_v15, %v9925_v15 }
 0x690   :  { %v7341_v14 = vadd.f32 %v7329_v59, %v7327_v17  ;;  %v7291_v57 = vmul.f32 %v9933_v5, %v9933_v5  ;;  %v6995_v17 = vmul.f32 %v8458_v38, %v9892_v16 }
 0x691   :  { %v7349_v40 = vsel %vm4402_vm11, %v7330_v1, 0.0  ;;  %v7292_v24 = vadd.f32 %v7290_v10, %v7288_v6  ;;  %vm6982_vm11 = vcmp.eq.f32.partialorder %v9888_v50, inf  ;;  %v9962_v10 = vpop.permute.xlu0 %7509 }
 0x692   :  { %v7342_v2 = vrot.slane %v7341_v14, 4  ;;  %v7350_v3 = vadd.f32 %v7349_v40, %v7348_v39  ;;  %v7301_v54 = vsel %vm7299_vm13, %v7291_v57, 0.0  ;;  %v7333_v25 = vsel %vm7331_vm14, %v7291_v57, 0.0 }
 0x693   :  { %v7293_v21 = vrot.slane %v7292_v24, 4  ;;  %v7302_v32 = vadd.f32 %v7301_v54, %v7300_v48  ;;  %v7334_v43 = vadd.f32 %v7333_v25, %v7332_v51  ;;  %v6983_v45 = vsel %vm6982_vm11, %v9888_v50, %v6981_v20 }
 0x694   :  { %v7343_v9 = vadd.f32 %v7342_v2, %v7341_v14  ;;  %v7351_v35 = vrot.slane %v7350_v3, 4  ;;  %v6990_v39 = vsel %vm6989_vm2, %v9890_v52, %v6988_v60  ;;  %v6992_v48 = vand.u32 2147483648, %v9890_v52 }
 0x695   :  { %v7294_v11 = vadd.f32 %v7293_v21, %v7292_v24  ;;  %v7303_v47 = vrot.slane %v7302_v32, 4  ;;  %v7335_v30 = vrot.slane %v7334_v43, 4  ;;  %v7002_v24 = vmul.f32 %v8460_v4, %v9894_v37  ;;  %v9986_v52 = vpop.permute.xlu0 %7513 }
 0x696   :  { %v7344_v36 = vrot.slane %v7343_v9, 2  ;;  %v7352_v27 = vadd.f32 %v7351_v35, %v7350_v3  ;;  %v9969_v3 = vpop.permute.xlu1 %7511  ;;  %v6997_v51 = vsel %vm6996_vm0, %v9892_v16, %v6995_v17  ;;  %v7009_v54 = vmul.f32 %v8462_v23, %v9897_v63 }
 0x697   :  { %v7295_v58 = vrot.slane %v7294_v11, 2  ;;  %v7304_v18 = vadd.f32 %v7303_v47, %v7302_v32  ;;  %v7336_v59 = vadd.f32 %v7335_v30, %v7334_v43  ;;  %v6986_v32 = vsel %vm6984_vm7, %v6985_v28, %v6983_v45 }
 0x698   :  { %v7345_v13 = vadd.f32 %v7344_v36, %v7343_v9  ;;  %v7353_v44 = vrot.slane %v7352_v27, 2  ;;  %v6993_v20 = vsel %vm6991_vm8, %v6992_v48, %v6990_v39  ;;  %v6999_v4 = vand.u32 2147483648, %v9892_v16 }
 0x699   :  { %v7296_v6 = vadd.f32 %v7295_v58, %v7294_v11  ;;  %v7305_v14 = vrot.slane %v7304_v18, 2  ;;  %v7337_v40 = vrot.slane %v7336_v59, 2  ;;  %v7004_v23 = vsel %vm7003_vm3, %v9894_v37, %v7002_v24 }
 0x69a   :  { %v7346_v19 = vrot.slane %v7345_v13, 1  ;;  %v7354_v1 = vadd.f32 %v7353_v44, %v7352_v27  ;;  %v7000_v43 = vsel %vm6998_vm9, %v6999_v4, %v6997_v51  ;;  %v7006_v36 = vand.u32 2147483648, %v9894_v37  ;;  %v9995_v27 = vpop.permute.xlu1 %7180 }
 0x69b   :  { %v7297_v56 = vrot.slane %v7296_v6, 1  ;;  %v7306_v2 = vadd.f32 %v7305_v14, %v7304_v18  ;;  %v7338_v38 = vadd.f32 %v7337_v40, %v7336_v59  ;;  %v7011_v50 = vsel %vm7010_vm10, %v9897_v63, %v7009_v54  ;;  %v10006_v18 = vpop.permute.xlu0 %7143 }
 0x69c   :  { %v9967_v57 = vadd.f32 %v7346_v19, %v7345_v13  ;;  %v7355_v49 = vrot.slane %v7354_v1, 1  ;;  %v7013_v11 = vand.u32 2147483648, %v9897_v63  ;;  %v7016_v60 = vadd.f32 1e-10, %v6986_v32 }
 0x69d   :  { %v9980_v9 = vadd.f32 %v7297_v56, %v7296_v6  ;;  %v7307_v35 = vrot.slane %v7306_v2, 1  ;;  %v7339_v21 = vrot.slane %v7338_v38, 1  ;;  %v7007_v30 = vsel %vm7005_vm6, %v7006_v36, %v7004_v23 }
 0x69e   :  { %8463 = vrsqrt.f32 %v9967_v57  ;;  %v9978_v25 = vadd.f32 %v7355_v49, %v7354_v1  ;;  %v7017_v13 = vadd.f32 1e-10, %v6993_v20  ;;  %v7014_v44 = vsel %vm7012_vm12, %v7013_v11, %v7011_v50  ;;  %v7146_v59 = vpop.permute.xlu1 %7145 }
 0x69f   :  { %v9999_v16 = vadd.f32 %v7307_v35, %v7306_v2  ;;  %v10001_v47 = vadd.f32 %v7339_v21, %v7338_v38  ;;  %v7018_v58 = vadd.f32 1e-10, %v7000_v43  ;;  %v7019_v37 = vadd.f32 1e-10, %v7007_v30  ;;  %v7148_v39 = vpop.permute.xlu0 %7147 }
 0x6a0   :  { %8465 = vrsqrt.f32 %v9978_v25  ;;  %v7020_v17 = vadd.f32 1e-10, %v7014_v44  ;;  %vm7366_vm14 = vcmp.eq.f32.partialorder %v9967_v57, inf  ;;  %v7369_v63 = vand.u32 2147483648, %v9967_v57 }
 0x6a1   :  { %8467 = vrsqrt.f32 %v9980_v9  ;;  %vm7368_vm4 = vcmp.eq.f32.partialorder %v9967_v57, 0.0  ;;  %vm7373_vm11 = vcmp.eq.f32.partialorder %v9978_v25, inf  ;;  %v7376_v49 = vand.u32 2147483648, %v9978_v25 }
 0x6a2   :  { %8469 = vrsqrt.f32 %v9999_v16  ;;  %vm7375_vm2 = vcmp.eq.f32.partialorder %v9978_v25, 0.0  ;;  %vm7311_vm7 = vcmp.eq.f32.partialorder %v9980_v9, inf  ;;  %v7150_v38 = vpop.permute.xlu1 %7149  ;;  %vm7313_vm8 = vcmp.eq.f32.partialorder %v9980_v9, 0.0 }
 0x6a3   :  { %8471 = vrsqrt.f32 %v10001_v47  ;;  %vm7359_vm0 = vcmp.eq.f32.partialorder %v10001_v47, inf  ;;  %vm7318_vm3 = vcmp.eq.f32.partialorder %v9999_v16, inf  ;;  %v7321_v23 = vand.u32 2147483648, %v9999_v16  ;;  %v10032_v11 = vpop.permute.xlu0 %7431 }
 0x6a4   :  { %8473 = vrcp.f32 %v9955_v34  ;;  %v7362_v36 = vand.u32 2147483648, %v10001_v47  ;;  %vm7320_vm9 = vcmp.eq.f32.partialorder %v9999_v16, 0.0  ;;  %vm7361_vm10 = vcmp.eq.f32.partialorder %v10001_v47, 0.0 }
 0x6a5   :  { %8475 = vrcp.f32 %v7016_v60  ;;  %vm7273_vm6 = vcmask 57344   ;;  %vm7412_vm12 = vcmask 457728  }
 0x6a6   :  { %8477 = vrcp.f32 %v7017_v13 }
 0x6a7   :  { %8479 = vrcp.f32 %v7018_v58 }
 0x6a8   :  { %v8464_v45 = vpop.eup %8463  ;;  %8481 = vrcp.f32 %v7019_v37 }
 0x6a9   :  { %v7365_v19 = vmul.f32 %v8464_v45, %v9967_v57  ;;  %8483 = vrcp.f32 %v7020_v17  ;;  %v10036_v45 = vpop.permute.xlu1 %7436 }
 0x6aa   :  { %v8466_v1 = vpop.eup %8465 }
 0x6ab   :  { %v7367_v6 = vsel %vm7366_vm14, %v9967_v57, %v7365_v19  ;;  %v8468_v34 = vpop.eup %8467  ;;  %v7372_v28 = vmul.f32 %v8466_v1, %v9978_v25  ;;  %v7314_v57 = vand.u32 2147483648, %v9980_v9 }
 0x6ac   :  { %v7370_v14 = vsel %vm7368_vm4, %v7369_v63, %v7367_v6  ;;  %v7310_v56 = vmul.f32 %v8468_v34, %v9980_v9  ;;  %v8470_v24 = vpop.eup %8469  ;;  %v7156_v63 = vsel %vm4931_vm15, %v7146_v59, %v7148_v39  ;;  %v7152_v34 = vpop.permute.xlu0 %7151 }
 0x6ad   :  { %v7379_v40 = vadd.f32 1e-10, %v7370_v14  ;;  %v7374_v2 = vsel %vm7373_vm11, %v9978_v25, %v7372_v28  ;;  %v8472_v54 = vpop.eup %8471  ;;  %v7317_v32 = vmul.f32 %v8470_v24, %v9999_v16  ;;  %v7157_v14 = vsel %vm4931_vm15, %v7148_v39, %v7150_v38  ;;  %v7486_v24 = vld [vmem:[%s10183_s0] sm:$0xff] }
 0x6ae   :  { %v7377_v48 = vsel %vm7375_vm2, %v7376_v49, %v7374_v2  ;;  %v7312_v51 = vsel %vm7311_vm7, %v9980_v9, %v7310_v56  ;;  %v8474_v25 = vpop.eup %8473  ;;  %v7358_v4 = vmul.f32 %v8472_v54, %v10001_v47  ;;  %v7487_v49 = vld [vmem:[%s10183_s0 + $0x8] sm:$0xff] }
 0x6af   :  { %8485 = vrcp.f32 %v7379_v40  ;;  %v7380_v35 = vadd.f32 1e-10, %v7377_v48  ;;  %v7315_v21 = vsel %vm7313_vm8, %v7314_v57, %v7312_v51  ;;  %v8476_v43 = vpop.eup %8475  ;;  %v7319_v9 = vsel %vm7318_vm3, %v9999_v16, %v7317_v32 }
 0x6b0   :  { %v7323_v20 = vadd.f32 1e-10, %v7315_v21  ;;  %v8478_v50 = vpop.eup %8477  ;;  %v7360_v60 = vsel %vm7359_vm0, %v10001_v47, %v7358_v4  ;;  %v7322_v30 = vsel %vm7320_vm9, %v7321_v23, %v7319_v9  ;;  %v7155_v16 = vsel %vm4931_vm15, %v10006_v18, %v7146_v59  ;;  %v7489_v21 = vld [vmem:[%s10183_s0 + $0x18] sm:$0xff] }
 0x6b1   :  { %8487 = vrcp.f32 %v7380_v35  ;;  %v8480_v13 = vpop.eup %8479  ;;  %v7363_v44 = vsel %vm7361_vm10, %v7362_v36, %v7360_v60  ;;  %v7324_v58 = vadd.f32 1e-10, %v7322_v30  ;;  %v7125_v6 = vmul.f32 %v9863_v29, %v8474_v25 }
 0x6b2   :  { %8489 = vrcp.f32 %v7323_v20  ;;  %v8482_v37 = vpop.eup %8481  ;;  %v7378_v17 = vadd.f32 1e-10, %v7363_v44  ;;  %v7126_v47 = vmul.f32 %v9867_v41, %v8476_v43  ;;  %v7516_v18 = vsel %vm4931_vm15, %v9950_v42, %v9953_v31  ;;  %v7154_v41 = vpop.permute.xlu1 %7153 }
 0x6b3   :  { %v8484_v19 = vpop.eup %8483  ;;  %8491 = vrcp.f32 %v7324_v58  ;;  %v7166_v59 = vsub.f32 %v7125_v6, %v7155_v16  ;;  %v7127_v29 = vmul.f32 %v9871_v7, %v8478_v50  ;;  %v7128_v39 = vmul.f32 %v9875_v62, %v8480_v13  ;;  %v7488_v50 = vld [vmem:[%s10183_s0 + $0x10] sm:$0xff] }
 0x6b4   :  { %8493 = vrcp.f32 %v7378_v17  ;;  %v7167_v56 = vsub.f32 %v7126_v47, %v7156_v63  ;;  %v7515_v7 = vsel %vm4931_vm15, %v9939_v33, %v9950_v42  ;;  %v7518_v33 = vsel %vm4931_vm15, %v9962_v10, %v9969_v3 }
 0x6b5   :  { %v7168_v48 = vsub.f32 %v7127_v29, %v7157_v14  ;;  %v7526_v25 = vsub.f32 %v7486_v24, %v7515_v7  ;;  %v7529_v60 = vsub.f32 %v7489_v21, %v7518_v33  ;;  %v7519_v63 = vsel %vm4931_vm15, %v9969_v3, %v9986_v52 }
 0x6b6   :  { %v7173_v42 = vmul.f32 %v7167_v56, %v7167_v56 }
 0x6b7   :  { %v7174_v4 = vmul.f32 %v7168_v48, %v7168_v48  ;;  %v7532_v44 = vmul.f32 %v7526_v25, %v7526_v25  ;;  %v7227_v48 = vlaneseq }
 0x6b8   :  { %v7184_v30 = vmul.f32 %v9995_v27, %v7173_v42 }
 0x6b9   :  { %v8486_v1 = vpop.eup %8485  ;;  %v7185_v17 = vmul.f32 %v9995_v27, %v7174_v4 }
 0x6ba   :  { %v7392_v28 = vmul.f32 %v8486_v1, %v9913_v61  ;;  %v7389_v40 = vmul.f32 %v8486_v1, %v9905_v12  ;;  %v7158_v61 = vsel %vm4931_vm15, %v7150_v38, %v7152_v34  ;;  %v7129_v12 = vmul.f32 %v9879_v22, %v8482_v37  ;;  %v8506_v1 = vld [vmem:[%s10183_s0 + $0x28] sm:$0xff] }
 0x6bb   :  { %v8488_v2 = vpop.eup %8487  ;;  %v7527_v38 = vsub.f32 %v7487_v49, %v7516_v18  ;;  %v7159_v22 = vsel %vm4931_vm15, %v7152_v34, %v7154_v41  ;;  %v7531_v6 = vsub.f32 %v8506_v1, %v9986_v52  ;;  %v7195_v34 = vrot.slane %v7184_v30, 4 }
 0x6bc   :  { %7402 = vrot.lane.b32.xlu1 %v7389_v40, %s8562_s27  ;;  %v8490_v57 = vpop.eup %8489  ;;  %v7393_v51 = vmul.f32 %v8488_v2, %v9918_v46  ;;  %v7390_v62 = vmul.f32 %v8488_v2, %v9902_v8  ;;  %v7172_v46 = vmul.f32 %v7166_v59, %v7166_v59  ;;  %v7169_v8 = vsub.f32 %v7128_v39, %v7158_v61 }
 0x6bd   :  { %v10067_v54 = vmul.f32 %v8490_v57, %v9925_v15  ;;  %v10070_v35 = vmul.f32 %v8490_v57, %v9911_v55  ;;  %v8492_v32 = vpop.eup %8491  ;;  %v7517_v55 = vsel %vm4931_vm15, %v9953_v31, %v9962_v10  ;;  %v7130_v15 = vmul.f32 %v9727_v26, %v8484_v19 }
 0x6be   :  { %7404 = vrot.lane.b32.xlu0 %v7390_v62, %s8562_s27  ;;  %v8494_v20 = vpop.eup %8493  ;;  %v7170_v23 = vsub.f32 %v7129_v12, %v7159_v22  ;;  %v10085_v43 = vmul.f32 %v8492_v32, %v9908_v53  ;;  %v10088_v36 = vmul.f32 %v8492_v32, %v9933_v5  ;;  %v7533_v9 = vmul.f32 %v7527_v38, %v7527_v38 }
 0x6bf   :  { %v7391_v31 = vmul.f32 %v8494_v20, %v9933_v5  ;;  %v7388_v26 = vmul.f32 %v8494_v20, %v9908_v53  ;;  %v7183_v10 = vmul.f32 %v9995_v27, %v7172_v46  ;;  %v7175_v13 = vmul.f32 %v7169_v8, %v7169_v8  ;;  %v7490_v53 = vld [vmem:[%s10183_s0 + $0x20] sm:$0xff] }
 0x6c0   :  { %7408 = vrot.lane.b32.xlu1 %v7392_v28, %s8562_s27  ;;  %v7171_v58 = vsub.f32 %v7130_v15, %v7154_v41  ;;  %v7528_v37 = vsub.f32 %v7488_v50, %v7517_v55  ;;  %v7176_v19 = vmul.f32 %v7170_v23, %v7170_v23  ;;  %v7545_v16 = vmul.f32 %v9927_v0, %v7533_v9 }
 0x6c1   :  { %v7535_v5 = vmul.f32 %v7529_v60, %v7529_v60  ;;  %v7189_v47 = vrot.slane %v7183_v10, 4  ;;  %v7186_v14 = vmul.f32 %v9995_v27, %v7175_v13  ;;  %v7544_v28 = vmul.f32 %v9927_v0, %v7532_v44 }
 0x6c2   :  { %7410 = vrot.lane.b32.xlu0 %v7393_v51, %s8562_s27  ;;  %v7177_v40 = vmul.f32 %v7171_v58, %v7171_v58  ;;  %v7534_v49 = vmul.f32 %v7528_v37, %v7528_v37  ;;  %v7530_v18 = vsub.f32 %v7490_v53, %v7519_v63  ;;  %v7201_v3 = vrot.slane %v7185_v17, 4 }
 0x6c3   :  { %v7187_v59 = vmul.f32 %v9995_v27, %v7176_v19  ;;  %v7547_v56 = vmul.f32 %v9927_v0, %v7535_v5  ;;  %v7537_v29 = vmul.f32 %v7531_v6, %v7531_v6  ;;  %v7190_v52 = vadd.f32 %v7189_v47, %v7183_v10 }
 0x6c4   :  { %7406 = vrot.lane.b32.xlu1 %v7391_v31, %s8562_s27  ;;  %v7196_v41 = vadd.f32 %v7195_v34, %v7184_v30  ;;  %v7207_v2 = vrot.slane %v7186_v14, 4  ;;  %v7188_v39 = vmul.f32 %v9995_v27, %v7177_v40  ;;  %v7546_v61 = vmul.f32 %v9927_v0, %v7534_v49 }
 0x6c5   :  { %v7536_v12 = vmul.f32 %v7530_v18, %v7530_v18  ;;  %v7202_v57 = vadd.f32 %v7201_v3, %v7185_v17  ;;  %v7213_v24 = vrot.slane %v7187_v59, 4  ;;  %v7549_v7 = vmul.f32 %v9927_v0, %v7537_v29 }
 0x6c6   :  { %7400 = vrot.lane.b32.xlu0 %v7388_v26, %s8562_s27  ;;  %v7191_v51 = vrot.slane %v7190_v52, 2  ;;  %v7197_v62 = vrot.slane %v7196_v41, 2  ;;  %v7208_v38 = vadd.f32 %v7207_v2, %v7186_v14  ;;  %v7219_v22 = vsel %vm109_vm1, %v7188_v39, 0.0 }
 0x6c7   :  { %v7548_v27 = vmul.f32 %v9927_v0, %v7536_v12  ;;  %v7203_v21 = vrot.slane %v7202_v57, 2  ;;  %v7214_v33 = vadd.f32 %v7213_v24, %v7187_v59  ;;  %v10126_v46 = vshrl.u32 %v7227_v48, 7  ;;  %v6929_v0 = vld [vmem:[%s10191_s8] sm:$0x3f] }
 0x6c8   :  { %7558 = vrot.lane.b32.xlu1 %v7545_v16, %s10200_s1  ;;  %v7192_v42 = vadd.f32 %v7191_v51, %v7190_v52  ;;  %v7198_v8 = vadd.f32 %v7197_v62, %v7196_v41  ;;  %v7209_v32 = vrot.slane %v7208_v38, 2  ;;  %v7220_v25 = vrot.slane %v7219_v22, 4 }
 0x6c9   :  { %v7204_v55 = vadd.f32 %v7203_v21, %v7202_v57  ;;  %v7215_v15 = vrot.slane %v7214_v33, 2  ;;  %v7229_v20 = vsub.s32 0, %v10126_v46  ;;  %v7233_v4 = vsub.s32 1, %v10126_v46 }
 0x6ca   :  { %7556 = vrot.lane.b32.xlu0 %v7544_v28, %s10200_s1  ;;  %v7193_v23 = vrot.slane %v7192_v42, 1  ;;  %v7199_v9 = vrot.slane %v7198_v8, 1  ;;  %v7210_v50 = vadd.f32 %v7209_v32, %v7208_v38  ;;  %v7221_v60 = vadd.f32 %v7220_v25, %v7219_v22 }
 0x6cb   :  { %v7205_v31 = vrot.slane %v7204_v55, 1  ;;  %v7216_v26 = vadd.f32 %v7215_v15, %v7214_v33  ;;  %v7237_v10 = vsub.s32 2, %v10126_v46  ;;  %v7230_v30 = vrot.slane %v6929_v0, %v7229_v20 }
 0x6cc   :  { %7562 = vrot.lane.b32.xlu1 %v7547_v56, %s10200_s1  ;;  %v7234_v13 = vrot.slane %v6929_v0, %v7233_v4  ;;  %v7241_v44 = vsub.s32 3, %v10126_v46  ;;  %v7194_v58 = vadd.f32 %v7193_v23, %v7192_v42  ;;  %v7200_v37 = vadd.f32 %v7199_v9, %v7198_v8 }
 0x6cd   :  { %v7211_v17 = vrot.slane %v7210_v50, 1  ;;  %v7222_v19 = vrot.slane %v7221_v60, 2  ;;  %v7206_v16 = vadd.f32 %v7205_v31, %v7204_v55  ;;  %v7217_v5 = vrot.slane %v7216_v26, 1 }
 0x6ce   :  { %7560 = vrot.lane.b32.xlu0 %v7546_v61, %s10200_s1  ;;  %v7238_v53 = vrot.slane %v6929_v0, %v7237_v10  ;;  %v7245_v63 = vsub.s32 4, %v10126_v46  ;;  %v7242_v1 = vrot.slane %v6929_v0, %v7241_v44  ;;  %v7257_v6 = vmul.f32 %v7230_v30, %v7194_v58 }
 0x6cf   :  { %v7258_v47 = vmul.f32 %v7234_v13, %v7200_v37  ;;  %v7212_v34 = vadd.f32 %v7211_v17, %v7210_v50  ;;  %v7223_v14 = vadd.f32 %v7222_v19, %v7221_v60  ;;  %vm7263_vm15 = vcmask 1040384  }
 0x6d0   :  { %7566 = vrot.lane.b32.xlu1 %v7549_v7, %s10200_s1  ;;  %v7218_v28 = vadd.f32 %v7217_v5, %v7216_v26  ;;  %v7246_v40 = vrot.slane %v6929_v0, %v7245_v63  ;;  %v7259_v49 = vmul.f32 %v7238_v53, %v7206_v16  ;;  %v7249_v18 = vsub.s32 5, %v10126_v46 }
 0x6d1   :  { %v7224_v3 = vrot.slane %v7223_v14, 1  ;;  %v7260_v59 = vmul.f32 %v7242_v1, %v7212_v34  ;;  %v7264_v56 = vsel %vm7263_vm15, %v7257_v6, 0.0  ;;  %v7265_v29 = vsel %vm7263_vm15, %v7258_v47, 0.0 }
 0x6d2   :  { %7564 = vrot.lane.b32.xlu0 %v7548_v27, %s10200_s1  ;;  %v7261_v52 = vmul.f32 %v7246_v40, %v7218_v28  ;;  %v7267_v41 = vsel %vm7263_vm15, %v7259_v49, 0.0  ;;  %v7266_v2 = vadd.f32 %v7265_v29, %v7264_v56  ;;  %v7250_v61 = vrot.slane %v6929_v0, %v7249_v18 }
 0x6d3   :  { %v7225_v39 = vadd.f32 %v7224_v3, %v7223_v14  ;;  %v7269_v12 = vsel %vm7263_vm15, %v7260_v59, 0.0 }
 0x6d4   :  { %v7268_v57 = vadd.f32 %v7267_v41, %v7266_v2  ;;  %v7271_v24 = vsel %vm7263_vm15, %v7261_v52, 0.0 }
 0x6d5   :  { %v7262_v48 = vmul.f32 %v7250_v61, %v7225_v39 }
 0x6d6   :  { %v7270_v7 = vadd.f32 %v7269_v12, %v7268_v57 }
 0x6d7   :  { %v7274_v62 = vsel %vm7273_vm6, %v7262_v48, 0.0 }
 0x6d8   :  { %v7272_v51 = vadd.f32 %v7271_v24, %v7270_v7 }
 0x6da   :  { %v7275_v38 = vadd.f32 %v7274_v62, %v7272_v51 }
 0x6f1   :  { %7276 = vadd.xlane.f32.xlu0 %v7275_v38 }
 0x72e   :  { %v7403_v22 = vpop.permute.xlu1 %7402 }
 0x730   :  { %v7405_v27 = vpop.permute.xlu0 %7404 }
 0x731   :  { %v7414_v21 = vsel %vm7412_vm12, %v7403_v22, %v7405_v27 }
 0x732   :  { %v7409_v33 = vpop.permute.xlu1 %7408  ;;  %v7422_v42 = vsub.f32 %v10085_v43, %v7414_v21 }
 0x734   :  { %v7426_v8 = vmul.f32 %v7422_v42, %v7422_v42  ;;  %v7411_v32 = vpop.permute.xlu0 %7410 }
 0x735   :  { %v7416_v25 = vsel %vm7412_vm12, %v7409_v33, %v7411_v32 }
 0x736   :  { %v7407_v55 = vpop.permute.xlu1 %7406  ;;  %v7424_v15 = vsub.f32 %v10088_v36, %v7416_v25  ;;  %v7440_v9 = vmul.f32 %v10032_v11, %v7426_v8 }
 0x737   :  { %v7415_v0 = vsel %vm7412_vm12, %v7407_v55, %v7409_v33 }
 0x738   :  { %v7423_v23 = vsub.f32 %v10067_v54, %v7415_v0  ;;  %v7428_v50 = vmul.f32 %v7424_v15, %v7424_v15  ;;  %v7401_v60 = vpop.permute.xlu0 %7400  ;;  %v7450_v13 = vsel %vm7299_vm13, %v7440_v9, 0.0 }
 0x739   :  { %v7413_v31 = vsel %vm7412_vm12, %v7401_v60, %v7403_v22 }
 0x73a   :  { %v7442_v26 = vmul.f32 %v10036_v45, %v7428_v50  ;;  %v7427_v10 = vmul.f32 %v7423_v23, %v7423_v23  ;;  %v7421_v30 = vsub.f32 %v10070_v35, %v7413_v31  ;;  %v7559_v43 = vpop.permute.xlu1 %7558 }
 0x73c   :  { %v7451_v44 = vsel %vm7299_vm13, %v7442_v26, 0.0  ;;  %v7425_v58 = vmul.f32 %v7421_v30, %v7421_v30  ;;  %v7557_v36 = vpop.permute.xlu0 %7556  ;;  %v7441_v54 = vmul.f32 %v10036_v45, %v7427_v10  ;;  %vm7473_vm13 = vcmask 581632  }
 0x73d   :  { %v7452_v37 = vadd.f32 %v7451_v44, %v7450_v13  ;;  %v7568_v1 = vsel %vm1956_vm5, %v7557_v36, %v7559_v43 }
 0x73e   :  { %v7439_v17 = vmul.f32 %v10032_v11, %v7425_v58  ;;  %v7563_v5 = vpop.permute.xlu1 %7562  ;;  %v7287_v11 = vld [vmem:[%s10192_s9] sm:$0x3] }
 0x73f   :  { %v7453_v19 = vrot.slane %v7452_v37, 4  ;;  %v7467_v39 = vrot.slane %v7287_v11, %v7233_v4  ;;  %v7463_v7 = vrot.slane %v7287_v11, %v7229_v20 }
 0x740   :  { %v7443_v16 = vadd.f32 %v7441_v54, %v7439_v17  ;;  %v7561_v53 = vpop.permute.xlu0 %7560 }
 0x741   :  { %v7454_v63 = vadd.f32 %v7453_v19, %v7452_v37  ;;  %v7569_v35 = vsel %vm1956_vm5, %v7559_v43, %v7561_v53  ;;  %v7570_v14 = vsel %vm1956_vm5, %v7561_v53, %v7563_v5 }
 0x742   :  { %v7444_v6 = vrot.slane %v7443_v16, 4  ;;  %v7579_v47 = vadd.f32 %v7569_v35, %v7568_v1  ;;  %v7567_v59 = vpop.permute.xlu1 %7566 }
 0x743   :  { %v7455_v34 = vrot.slane %v7454_v63, 2  ;;  %v7583_v61 = vsel %vm109_vm1, %v7567_v59, 0.0 }
 0x744   :  { %v7445_v28 = vadd.f32 %v7444_v6, %v7443_v16  ;;  %v7580_v40 = vadd.f32 %v7579_v47, %v7570_v14  ;;  %v7565_v49 = vpop.permute.xlu0 %7564 }
 0x745   :  { %v7571_v45 = vsel %vm1956_vm5, %v7563_v5, %v7565_v49  ;;  %v7456_v18 = vadd.f32 %v7455_v34, %v7454_v63  ;;  %v7572_v29 = vsel %vm1956_vm5, %v7565_v49, %v7567_v59 }
 0x746   :  { %v7446_v3 = vrot.slane %v7445_v28, 2  ;;  %v7581_v56 = vadd.f32 %v7580_v40, %v7571_v45 }
 0x747   :  { %v7457_v52 = vrot.slane %v7456_v18, 1 }
 0x748   :  { %v7582_v41 = vadd.f32 %v7581_v56, %v7572_v29  ;;  %v7447_v2 = vadd.f32 %v7446_v3, %v7445_v28 }
 0x749   :  { %v7458_v12 = vadd.f32 %v7457_v52, %v7456_v18 }
 0x74a   :  { %v7584_v57 = vadd.f32 %v7583_v61, %v7582_v41  ;;  %v7448_v24 = vrot.slane %v7447_v2, 1 }
 0x74b   :  { %v7471_v51 = vmul.f32 %v7467_v39, %v7458_v12 }
 0x74c   :  { %7585 = vadd.xlane.f32.xlu0 %v7584_v57  ;;  %v7449_v48 = vadd.f32 %v7448_v24, %v7447_v2 }
 0x74d   :  { %v7474_v22 = vsel %vm7473_vm13, %v7471_v51, 0.0 }
 0x74e   :  { %v7470_v62 = vmul.f32 %v7463_v7, %v7449_v48 }
 0x750   :  { %v7472_v38 = vsel %vm7263_vm15, %v7470_v62, 0.0 }
 0x751   :  { %v7475_v27 = vadd.f32 %v7474_v22, %v7472_v38 }
 0x753   :  { %7476 = vadd.xlane.f32.xlu1 %v7475_v27 }
 0x77e   :  { %v7277_v21 = vpop.xlane.xlu0 %7276 }
 0x77f   :  { %v7278_v4 = vrot.slane %v7277_v21, 4 }
 0x781   :  { %v7279_v33 = vadd.f32 %v7278_v4, %v7277_v21 }
 0x783   :  { %v7280_v42 = vrot.slane %v7279_v33, 2 }
 0x785   :  { %v7281_v8 = vadd.f32 %v7280_v42, %v7279_v33 }
 0x787   :  { %v7282_v32 = vrot.slane %v7281_v8, 1 }
 0x789   :  { %v7283_v25 = vadd.f32 %v7282_v32, %v7281_v8 }
 0x78b   :  { %8361 = vpush %v7283_v25 }
 0x7bc   :  { %s8362_s9 = spop %8361 }
 0x7d9   :  { %v7586_v46 = vpop.xlane.xlu0 %7585 }
 0x7da   :  { %v7587_v20 = vrot.slane %v7586_v46, 4 }
 0x7dc   :  { %v7588_v55 = vadd.f32 %v7587_v20, %v7586_v46 }
 0x7de   :  { %v7589_v15 = vrot.slane %v7588_v55, 2 }
 0x7e0   :  { %v7477_v0 = vpop.xlane.xlu1 %7476  ;;  %v7590_v50 = vadd.f32 %v7589_v15, %v7588_v55 }
 0x7e1   :  { %v7478_v23 = vrot.slane %v7477_v0, 4 }
 0x7e2   :  { %v7591_v26 = vrot.slane %v7590_v50, 1 }
 0x7e3   :  { %v7479_v9 = vadd.f32 %v7478_v23, %v7477_v0 }
 0x7e4   :  { %v7592_v43 = vadd.f32 %v7591_v26, %v7590_v50 }
 0x7e5   :  { %v7480_v60 = vrot.slane %v7479_v9, 2 }
 0x7e7   :  { %v7481_v31 = vadd.f32 %v7480_v60, %v7479_v9 }
 0x7e9   :  { %v7482_v10 = vrot.slane %v7481_v31, 1 }
 0x7eb   :  { %v7483_v30 = vadd.f32 %v7482_v10, %v7481_v31 }
 0x7ed   :  { %8363 = vpush %v7483_v30 }
 0x7ee   :  { %8365 = vpush %v7592_v43 }
 0x81e   :  { %s8364_s20 = spop %8363 }
 0x81f   :  { %s7485_s2 = sadd.f32 %s8364_s20, %s8362_s9  ;;  %s8366_s22 = spop %8365 }
 0x820   :  { %s7596_s28 = smul.f32 0.0006510417, %s8366_s22 }
 0x821   :  { %s7597_s18 = smul.f32 0.25, %s7485_s2 }
 0x823   :  { %s7598_s3 = sadd.f32 %s7597_s18, %s7596_s28 }
 0x825   :  { %v7599_v13 = vstv %s7598_s3 }
 0x826   :  { %7601 = vst [vmem:[#allocation4] sm:$0x1] %v7599_v13 }
 0x827   :  { %8518 = shalt.err (!%p8515_p4)
}
 0x828   :  { %s8519_s30 = scalar_lea.hbm %s10194_s11, 16 }
 0x829   :  { %p8520_p5 = scmp.ne.s32.totalorder %s10194_s11, %s8519_s30  ;;  %p8523_p6 = scmp.lt.u32.totalorder %s8519_s30, %s10194_s11 }
 0x82b   :  { %p8525_p7 = pnand %p8523_p6, %p8520_p5 }
 0x82d   :  { %8528 = shalt.err (!%p8525_p7)
}
 0x82e   :  { %7611 = dma.vmem_to_hbm [thread:$0]  %s7609_s25, 16, %s10194_s11, [#allocation5]  }
 0x82f   :  { %8529 = dma.done.wait [#allocation5], 16  }
 0x830   :  { %8530 = vsyncadd [#allocation5], 4294967280 }
 0x831   :  { %7615 = vsyncpa [#allocation5], 1 }

</bundles_post_ra>
